<compile_context>
chip_gen: v5e
topology: v5e:2x2
jax: 0.10.0
libtpu: 0.0.40
codegen_flags: <defaults>
</compile_context>

<pallas_src>
import jax
import jax.numpy as jnp
from jax import lax
from jax.experimental import pallas as pl
from jax.experimental.pallas import tpu as pltpu

# ----------------------- mini-BERT config (scaled bert-base) ----------------
VOCAB = 100          # bert-base: 30522
TYPE_VOCAB = 2
MAX_POS = 32         # bert-base: 512
HIDDEN = 32          # bert-base: 768
N_LAYERS = 2         # bert-base: 12
N_HEADS = 2          # bert-base: 12
HEAD_DIM = HIDDEN // N_HEADS
INTERMEDIATE = 64    # bert-base: 3072
NUM_LABELS = 19      # torch.nn.Linear(768, 19)
PAD_LABELS = 128     # lane-dense padded classifier width
BATCH_TILE = 8       # samples per grid step
LN_EPS = 1e-12
_SQRT1_2 = 0.7071067811865476
_ATTN_SCALE = 1.0 / float(HEAD_DIM) ** 0.5
_NEG_INF = -1e9


# ----------------------------- in-kernel helpers ------------------------------

def _layer_norm(x, g, b):
    mu = jnp.mean(x, axis=-1, keepdims=True)
    var = jnp.mean(jnp.square(x - mu), axis=-1, keepdims=True)
    return (x - mu) * lax.rsqrt(var + LN_EPS) * g + b


def _gelu(x):
    # exact (erf) GELU, as used by BERT
    return 0.5 * x * (1.0 + lax.erf(x * _SQRT1_2))


# --------------------------- fully fused BERT kernel --------------------------
# One grid step == Bt batch samples.  `h` ([Bt*S, HIDDEN] f32) never leaves VMEM.

def _bert_kernel(emb_ref, bias_ref,
                 emb_ln_g_ref, emb_ln_b_ref,
                 wqkv_ref, bqkv_ref, wo_ref, bo_ref,
                 ln1_g_ref, ln1_b_ref,
                 w1_ref, b1_ref, w2_ref, b2_ref,
                 ln2_g_ref, ln2_b_ref,
                 pool_w_ref, pool_b_ref, cls_w_ref, cls_b_ref,
                 out_ref):
    Bt, S, H = emb_ref.shape
    R = Bt * S

    # Flatten the batch block to (Bt*S, H) rows; embedding LayerNorm in f32.
    x = emb_ref[...].reshape(R, H)
    h = _layer_norm(x, emb_ln_g_ref[...], emb_ln_b_ref[...])            # (R, H)
    bias = bias_ref[0]                                                  # (R, R)

    for l in range(N_LAYERS):
        # ---- fused QKV projection: one bf16 MXU matmul, f32 accumulate ----
        h_bf = h.astype(jnp.bfloat16)                                   # hoisted cast
        qkv = jnp.dot(h_bf, wqkv_ref[l],
                      preferred_element_type=jnp.float32) + bqkv_ref[l]  # (R, 3H) f32
        qkv_bf = qkv.astype(jnp.bfloat16)                               # cast once

        # ---- attention: block-diagonal over the Bt samples, softmax in f32 ---
        ctxs = []
        for hh in range(N_HEADS):
            lo = hh * HEAD_DIM
            qh = qkv_bf[:, lo:lo + HEAD_DIM]
            kh = qkv_bf[:, HIDDEN + lo:HIDDEN + lo + HEAD_DIM]
            vh = qkv_bf[:, 2 * HIDDEN + lo:2 * HIDDEN + lo + HEAD_DIM]
            # scores: contract last axes of both (no transpose materialized)
            s = lax.dot_general(qh, kh, (((1,), (1,)), ((), ())),
                                preferred_element_type=jnp.float32)     # (R, R)
            s = s * _ATTN_SCALE + bias
            s = s - jnp.max(s, axis=-1, keepdims=True)
            p = jnp.exp(s)
            p = p * pl.reciprocal(jnp.sum(p, axis=-1, keepdims=True), approx=True)
            ctxs.append(jnp.dot(p.astype(jnp.bfloat16), vh,
                                preferred_element_type=jnp.float32))    # (R, dh)
        ctx = jnp.concatenate(ctxs, axis=-1)                            # (R, H) f32
        # single output-projection matmul (K = H)
        attn_out = jnp.dot(ctx.astype(jnp.bfloat16), wo_ref[l],
                           preferred_element_type=jnp.float32) + bo_ref[l]
        h = _layer_norm(attn_out + h, ln1_g_ref[l], ln1_b_ref[l])

        # ---- feed-forward (bf16 matmuls, f32 GELU / LN) --------------------
        ff = jnp.dot(h.astype(jnp.bfloat16), w1_ref[l],
                     preferred_element_type=jnp.float32) + b1_ref[l]
        ff = _gelu(ff)
        ff = jnp.dot(ff.astype(jnp.bfloat16), w2_ref[l],
                     preferred_element_type=jnp.float32) + b2_ref[l]
        h = _layer_norm(ff + h, ln2_g_ref[l], ln2_b_ref[l])

    # ---- pooler (tanh on CLS token of each sample) + classifier, fused ------
    cls = h.reshape(Bt, S, H)[:, 0, :]                                  # (Bt, H)
    pooled = jnp.tanh(jnp.dot(cls.astype(jnp.bfloat16), pool_w_ref[...],
                              preferred_element_type=jnp.float32)
                      + pool_b_ref[...])
    # Dropout(0.3) == identity at inference (model.eval()).
    # Classifier weight is zero-padded to 128 lanes -> unmasked lane-dense store.
    logits = jnp.dot(pooled.astype(jnp.bfloat16), cls_w_ref[...],
                     preferred_element_type=jnp.float32) + cls_b_ref[...]
    out_ref[...] = logits                                               # (Bt, 128)


def _const_spec(arr):
    """Full-array VMEM block whose block index is constant across the grid."""
    nd = arr.ndim
    return pl.BlockSpec(arr.shape, lambda b, _nd=nd: (0,) * _nd)


def _build_attn_bias(mask, Bt):
    """Block-diagonal additive attention bias per grid block: (nblk, Bt*S, Bt*S)."""
    B, S = mask.shape
    nblk = B // Bt
    R = Bt * S
    key_bias = ((1.0 - mask.astype(jnp.float32)) * _NEG_INF).reshape(nblk, 1, R)
    sample = jnp.arange(R, dtype=jnp.int32) // S
    blockdiag = jnp.where(sample[:, None] == sample[None, :], 0.0, _NEG_INF)
    return blockdiag.astype(jnp.float32)[None, :, :] + key_bias


def _fused_bert(emb, mask, weights):
    """emb: [B, S, H] f32, mask: [B, S] int, weights: list of arrays."""
    B, S, H = emb.shape
    Bt = min(BATCH_TILE, B)
    pad = (-B) % Bt
    if pad:  # pad batch to a multiple of Bt (padded samples are discarded)
        emb = jnp.pad(emb, ((0, pad), (0, 0), (0, 0)))
        mask = jnp.pad(mask, ((0, pad), (0, 0)))
    Bp = B + pad
    nblk = Bp // Bt
    R = Bt * S

    bias = _build_attn_bias(mask, Bt)                         # (nblk, R, R) f32

    in_specs = [
        pl.BlockSpec((Bt, S, H), lambda b: (b, 0, 0)),        # embeddings block
        pl.BlockSpec((1, R, R), lambda b: (b, 0, 0)),         # block-diag mask bias
    ] + [_const_spec(w) for w in weights]

    # Advisory cost estimate (per whole call).
    per_layer = (2 * R * HIDDEN * 3 * HIDDEN                  # QKV
                 + 4 * R * R * HIDDEN                         # scores + P@V
                 + 2 * R * HIDDEN * HIDDEN                    # Wo
                 + 4 * R * HIDDEN * INTERMEDIATE)             # FFN
    flops = nblk * (N_LAYERS * per_layer
                    + 2 * Bt * HIDDEN * (HIDDEN + PAD_LABELS))
    transcendentals = nblk * (N_LAYERS * (N_HEADS * R * R + R * INTERMEDIATE)
                              + Bt * HIDDEN)

    def _nbytes(x):
        return int(x.size) * x.dtype.itemsize

    bytes_accessed = (_nbytes(emb) + _nbytes(bias)
                      + sum(_nbytes(w) for w in weights)
                      + Bp * PAD_LABELS * 4)
    cost = pl.CostEstimate(flops=int(flops),
                           transcendentals=int(transcendentals),
                           bytes_accessed=int(bytes_accessed))

    out = pl.pallas_call(
        _bert_kernel,
        out_shape=jax.ShapeDtypeStruct((Bp, PAD_LABELS), jnp.float32),
        grid=(nblk,),
        in_specs=in_specs,
        out_specs=pl.BlockSpec((Bt, PAD_LABELS), lambda b: (b, 0)),
        compiler_params=pltpu.CompilerParams(dimension_semantics=("parallel",)),
        cost_estimate=cost,
    )(emb, bias, *weights)
    return out[:B, :NUM_LABELS]                               # [B, NUM_LABELS]


# ----------------------------- parameters ------------------------------------

def init_params(key):
    keys = iter(jax.random.split(key, 512))

    def nrm(shape):
        return (0.02 * jax.random.normal(next(keys), shape)).astype(jnp.float32)

    def ones(shape):
        return jnp.ones(shape, jnp.float32)

    def zeros(shape):
        return jnp.zeros(shape, jnp.float32)

    params = {
        "word_emb": nrm((VOCAB, HIDDEN)),
        "pos_emb": nrm((MAX_POS, HIDDEN)),
        "type_emb": nrm((TYPE_VOCAB, HIDDEN)),
        "emb_ln_g": ones((1, HIDDEN)),
        "emb_ln_b": zeros((1, HIDDEN)),
        "layers": [],
        "pool_w": nrm((HIDDEN, HIDDEN)),
        "pool_b": zeros((1, HIDDEN)),
        "cls_w": nrm((HIDDEN, NUM_LABELS)),      # torch.nn.Linear(768, 19)
        "cls_b": zeros((1, NUM_LABELS)),
    }
    for _ in range(N_LAYERS):
        params["layers"].append({
            "wq": nrm((HIDDEN, HIDDEN)), "bq": zeros((1, HIDDEN)),
            "wk": nrm((HIDDEN, HIDDEN)), "bk": zeros((1, HIDDEN)),
            "wv": nrm((HIDDEN, HIDDEN)), "bv": zeros((1, HIDDEN)),
            "wo": nrm((HIDDEN, HIDDEN)), "bo": zeros((1, HIDDEN)),
            "ln1_g": ones((1, HIDDEN)), "ln1_b": zeros((1, HIDDEN)),
            "w1": nrm((HIDDEN, INTERMEDIATE)), "b1": zeros((1, INTERMEDIATE)),
            "w2": nrm((INTERMEDIATE, HIDDEN)), "b2": zeros((1, HIDDEN)),
            "ln2_g": ones((1, HIDDEN)), "ln2_b": zeros((1, HIDDEN)),
        })
    return params


def _prep_weights(params):
    """Stack per-layer weights on a leading [L, ...] axis; matmul weights -> bf16."""
    layers = params["layers"]

    def stack(key):
        return jnp.stack([l[key] for l in layers], axis=0)

    wqkv = jnp.stack(
        [jnp.concatenate([l["wq"], l["wk"], l["wv"]], axis=1) for l in layers],
        axis=0).astype(jnp.bfloat16)                            # [L, H, 3H]
    bqkv = jnp.stack(
        [jnp.concatenate([l["bq"], l["bk"], l["bv"]], axis=1) for l in layers],
        axis=0)                                                 # [L, 1, 3H]

    # Zero-pad the classifier to 128 output lanes (lane-dense store + matmul N).
    cls_w_pad = jnp.zeros((HIDDEN, PAD_LABELS), jnp.bfloat16)
    cls_w_pad = cls_w_pad.at[:, :NUM_LABELS].set(params["cls_w"].astype(jnp.bfloat16))
    cls_b_pad = jnp.zeros((1, PAD_LABELS), jnp.float32)
    cls_b_pad = cls_b_pad.at[:, :NUM_LABELS].set(params["cls_b"])

    return [
        params["emb_ln_g"], params["emb_ln_b"],
        wqkv, bqkv,
        stack("wo").astype(jnp.bfloat16), stack("bo"),
        stack("ln1_g"), stack("ln1_b"),
        stack("w1").astype(jnp.bfloat16), stack("b1"),
        stack("w2").astype(jnp.bfloat16), stack("b2"),
        stack("ln2_g"), stack("ln2_b"),
        params["pool_w"].astype(jnp.bfloat16), params["pool_b"],
        cls_w_pad, cls_b_pad,
    ]


# ----------------------------- forward pass ----------------------------------

def _forward(params, ids, mask, token_type_ids):
    B, S = ids.shape

    # Embedding gathers are plain-JAX glue; everything after is one Pallas call.
    pos = jnp.arange(S)
    emb = (params["word_emb"][ids]
           + params["pos_emb"][pos][None, :, :]
           + params["type_emb"][token_type_ids])                # [B, S, H] f32

    weights = _prep_weights(params)
    return _fused_bert(emb, mask, weights)


forward = jax.jit(_forward)


if __name__ == "__main__":
    key = jax.random.PRNGKey(0)
    pkey, ikey = jax.random.split(key)
    params = init_params(pkey)

    B, S = 16, 8                               # 2 grid steps of Bt=8 samples
    ids = jax.random.randint(ikey, (B, S), 0, VOCAB, dtype=jnp.int32)
    mask = jnp.ones((B, S), jnp.int32)
    mask = mask.at[1, 6:].set(0).at[5, 4:].set(0)   # pad a couple of samples
    token_type_ids = jnp.zeros((B, S), jnp.int32)

    logits = forward(params, ids, mask, token_type_ids)
    jax.block_until_ready(logits)
    assert logits.shape == (B, NUM_LABELS)
    assert logits.dtype == jnp.float32
    print("KERNEL_OK")
</pallas_src>

<mosaic_0001>
module attributes {stable_mosaic.version = 11 : i64} {
  func.func @_bert_kernel(%arg0: i32, %arg1: memref<8x8x32xf32, #tpu.memory_space<vmem>>, %arg2: memref<1x64x64xf32, #tpu.memory_space<vmem>>, %arg3: memref<1x32xf32, #tpu.memory_space<vmem>>, %arg4: memref<1x32xf32, #tpu.memory_space<vmem>>, %arg5: memref<2x32x96xbf16, #tpu.memory_space<vmem>>, %arg6: memref<2x1x96xf32, #tpu.memory_space<vmem>>, %arg7: memref<2x32x32xbf16, #tpu.memory_space<vmem>>, %arg8: memref<2x1x32xf32, #tpu.memory_space<vmem>>, %arg9: memref<2x1x32xf32, #tpu.memory_space<vmem>>, %arg10: memref<2x1x32xf32, #tpu.memory_space<vmem>>, %arg11: memref<2x32x64xbf16, #tpu.memory_space<vmem>>, %arg12: memref<2x1x64xf32, #tpu.memory_space<vmem>>, %arg13: memref<2x64x32xbf16, #tpu.memory_space<vmem>>, %arg14: memref<2x1x32xf32, #tpu.memory_space<vmem>>, %arg15: memref<2x1x32xf32, #tpu.memory_space<vmem>>, %arg16: memref<2x1x32xf32, #tpu.memory_space<vmem>>, %arg17: memref<32x32xbf16, #tpu.memory_space<vmem>>, %arg18: memref<1x32xf32, #tpu.memory_space<vmem>>, %arg19: memref<32x128xbf16, #tpu.memory_space<vmem>>, %arg20: memref<1x128xf32, #tpu.memory_space<vmem>>, %arg21: memref<8x128xf32, #tpu.memory_space<vmem>>) attributes {dimension_semantics = [#tpu.dimension_semantics<parallel>], iteration_bounds = array<i64: 2>, scalar_prefetch = 0 : i64, scratch_operands = 0 : i64, tpu.core_type = #tpu.core_type<tc>, window_params = [{transform_indices = @transform_0, window_bounds = array<i64: 8, 8, 32>}, {transform_indices = @transform_1, window_bounds = array<i64: 1, 64, 64>}, {pipeline_mode = #tpu.pipeline_mode<synchronous>, transform_indices = @transform_2, window_bounds = array<i64: 1, 32>}, {pipeline_mode = #tpu.pipeline_mode<synchronous>, transform_indices = @transform_3, window_bounds = array<i64: 1, 32>}, {pipeline_mode = #tpu.pipeline_mode<synchronous>, transform_indices = @transform_4, window_bounds = array<i64: 2, 32, 96>}, {pipeline_mode = #tpu.pipeline_mode<synchronous>, transform_indices = @transform_5, window_bounds = array<i64: 2, 1, 96>}, {pipeline_mode = #tpu.pipeline_mode<synchronous>, transform_indices = @transform_6, window_bounds = array<i64: 2, 32, 32>}, {pipeline_mode = #tpu.pipeline_mode<synchronous>, transform_indices = @transform_7, window_bounds = array<i64: 2, 1, 32>}, {pipeline_mode = #tpu.pipeline_mode<synchronous>, transform_indices = @transform_8, window_bounds = array<i64: 2, 1, 32>}, {pipeline_mode = #tpu.pipeline_mode<synchronous>, transform_indices = @transform_9, window_bounds = array<i64: 2, 1, 32>}, {pipeline_mode = #tpu.pipeline_mode<synchronous>, transform_indices = @transform_10, window_bounds = array<i64: 2, 32, 64>}, {pipeline_mode = #tpu.pipeline_mode<synchronous>, transform_indices = @transform_11, window_bounds = array<i64: 2, 1, 64>}, {pipeline_mode = #tpu.pipeline_mode<synchronous>, transform_indices = @transform_12, window_bounds = array<i64: 2, 64, 32>}, {pipeline_mode = #tpu.pipeline_mode<synchronous>, transform_indices = @transform_13, window_bounds = array<i64: 2, 1, 32>}, {pipeline_mode = #tpu.pipeline_mode<synchronous>, transform_indices = @transform_14, window_bounds = array<i64: 2, 1, 32>}, {pipeline_mode = #tpu.pipeline_mode<synchronous>, transform_indices = @transform_15, window_bounds = array<i64: 2, 1, 32>}, {pipeline_mode = #tpu.pipeline_mode<synchronous>, transform_indices = @transform_16, window_bounds = array<i64: 32, 32>}, {pipeline_mode = #tpu.pipeline_mode<synchronous>, transform_indices = @transform_17, window_bounds = array<i64: 1, 32>}, {pipeline_mode = #tpu.pipeline_mode<synchronous>, transform_indices = @transform_18, window_bounds = array<i64: 32, 128>}, {pipeline_mode = #tpu.pipeline_mode<synchronous>, transform_indices = @transform_19, window_bounds = array<i64: 1, 128>}, {transform_indices = @transform_20, window_bounds = array<i64: 8, 128>}]} {
    %c0 = arith.constant 0 : index
    %c0_0 = arith.constant 0 : index
    %c0_1 = arith.constant 0 : index
    %0 = vector.load %arg1[%c0, %c0_0, %c0_1] : memref<8x8x32xf32, #tpu.memory_space<vmem>>, vector<8x8x32xf32>
    %1 = vector.shape_cast %0 : vector<8x8x32xf32> to vector<64x32xf32>
    %c0_2 = arith.constant 0 : index
    %c0_3 = arith.constant 0 : index
    %2 = vector.load %arg3[%c0_2, %c0_3] : memref<1x32xf32, #tpu.memory_space<vmem>>, vector<1x32xf32>
    %c0_4 = arith.constant 0 : index
    %c0_5 = arith.constant 0 : index
    %3 = vector.load %arg4[%c0_4, %c0_5] : memref<1x32xf32, #tpu.memory_space<vmem>>, vector<1x32xf32>
    %cst = arith.constant dense<0.000000e+00> : vector<64xf32>
    %4 = vector.multi_reduction <add>, %1, %cst [1] : vector<64x32xf32> to vector<64xf32>
    %5 = vector.shape_cast %4 : vector<64xf32> to vector<64x1xf32>
    %cst_6 = arith.constant 3.200000e+01 : f32
    %6 = vector.broadcast %cst_6 : f32 to vector<64x1xf32>
    %7 = arith.divf %5, %6 : vector<64x1xf32>
    %8 = vector.broadcast %7 : vector<64x1xf32> to vector<64x32xf32>
    %9 = arith.subf %1, %8 : vector<64x32xf32>
    %10 = arith.mulf %9, %9 : vector<64x32xf32>
    %cst_7 = arith.constant dense<0.000000e+00> : vector<64xf32>
    %11 = vector.multi_reduction <add>, %10, %cst_7 [1] : vector<64x32xf32> to vector<64xf32>
    %12 = vector.shape_cast %11 : vector<64xf32> to vector<64x1xf32>
    %cst_8 = arith.constant 3.200000e+01 : f32
    %13 = vector.broadcast %cst_8 : f32 to vector<64x1xf32>
    %14 = arith.divf %12, %13 : vector<64x1xf32>
    %15 = vector.broadcast %7 : vector<64x1xf32> to vector<64x32xf32>
    %16 = arith.subf %1, %15 : vector<64x32xf32>
    %cst_9 = arith.constant 9.99999996E-13 : f32
    %17 = vector.broadcast %cst_9 : f32 to vector<64x1xf32>
    %18 = arith.addf %14, %17 : vector<64x1xf32>
    %19 = math.rsqrt %18 : vector<64x1xf32>
    %20 = vector.broadcast %19 : vector<64x1xf32> to vector<64x32xf32>
    %21 = arith.mulf %16, %20 : vector<64x32xf32>
    %22 = vector.broadcast %2 : vector<1x32xf32> to vector<64x32xf32>
    %23 = arith.mulf %21, %22 : vector<64x32xf32>
    %24 = vector.broadcast %3 : vector<1x32xf32> to vector<64x32xf32>
    %25 = arith.addf %23, %24 : vector<64x32xf32>
    %c0_10 = arith.constant 0 : index
    %c0_11 = arith.constant 0 : index
    %c0_12 = arith.constant 0 : index
    %26 = vector.load %arg2[%c0_10, %c0_11, %c0_12] : memref<1x64x64xf32, #tpu.memory_space<vmem>>, vector<1x64x64xf32>
    %27 = vector.shape_cast %26 : vector<1x64x64xf32> to vector<64x64xf32>
    %28 = arith.truncf %25 : vector<64x32xf32> to vector<64x32xbf16>
    %c0_13 = arith.constant 0 : index
    %c0_14 = arith.constant 0 : index
    %c0_15 = arith.constant 0 : index
    %29 = vector.load %arg5[%c0_13, %c0_14, %c0_15] : memref<2x32x96xbf16, #tpu.memory_space<vmem>>, vector<1x32x96xbf16>
    %30 = vector.shape_cast %29 : vector<1x32x96xbf16> to vector<32x96xbf16>
    %cst_16 = arith.constant dense<0.000000e+00> : vector<64x96xf32>
    %31 = tpu.matmul %28, %30, %cst_16 {dimension_numbers = #tpu.dot_dimension_numbers<[1], [0], [0], [1], [0, 0, 1, 1], [], []>} : vector<64x32xbf16>, vector<32x96xbf16>, vector<64x96xf32> -> vector<64x96xf32>
    %c0_17 = arith.constant 0 : index
    %c0_18 = arith.constant 0 : index
    %c0_19 = arith.constant 0 : index
    %32 = vector.load %arg6[%c0_17, %c0_18, %c0_19] : memref<2x1x96xf32, #tpu.memory_space<vmem>>, vector<1x1x96xf32>
    %33 = vector.shape_cast %32 : vector<1x1x96xf32> to vector<1x96xf32>
    %34 = vector.broadcast %33 : vector<1x96xf32> to vector<64x96xf32>
    %35 = arith.addf %31, %34 : vector<64x96xf32>
    %36 = arith.truncf %35 : vector<64x96xf32> to vector<64x96xbf16>
    %37 = vector.extract_strided_slice %36 {offsets = [0, 0], sizes = [64, 16], strides = [1, 1]} : vector<64x96xbf16> to vector<64x16xbf16>
    %38 = vector.extract_strided_slice %36 {offsets = [0, 32], sizes = [64, 16], strides = [1, 1]} : vector<64x96xbf16> to vector<64x16xbf16>
    %39 = vector.extract_strided_slice %36 {offsets = [0, 64], sizes = [64, 16], strides = [1, 1]} : vector<64x96xbf16> to vector<64x16xbf16>
    %cst_20 = arith.constant dense<0.000000e+00> : vector<64x64xf32>
    %40 = tpu.matmul %37, %38, %cst_20 {dimension_numbers = #tpu.dot_dimension_numbers<[1], [1], [0], [0], [0, 0, 1, 0], [], []>} : vector<64x16xbf16>, vector<64x16xbf16>, vector<64x64xf32> -> vector<64x64xf32>
    %cst_21 = arith.constant 2.500000e-01 : f32
    %41 = vector.broadcast %cst_21 : f32 to vector<64x64xf32>
    %42 = arith.mulf %40, %41 : vector<64x64xf32>
    %43 = arith.addf %42, %27 : vector<64x64xf32>
    %cst_22 = arith.constant dense<0xFF800000> : vector<64xf32>
    %44 = vector.multi_reduction <maximumf>, %43, %cst_22 [1] : vector<64x64xf32> to vector<64xf32>
    %45 = vector.shape_cast %44 : vector<64xf32> to vector<64x1xf32>
    %46 = vector.broadcast %45 : vector<64x1xf32> to vector<64x64xf32>
    %47 = arith.subf %43, %46 : vector<64x64xf32>
    %48 = math.exp %47 : vector<64x64xf32>
    %cst_23 = arith.constant dense<0.000000e+00> : vector<64xf32>
    %49 = vector.multi_reduction <add>, %48, %cst_23 [1] : vector<64x64xf32> to vector<64xf32>
    %50 = vector.shape_cast %49 : vector<64xf32> to vector<64x1xf32>
    %51 = tpu.reciprocal %50 {approx = true} : vector<64x1xf32> -> vector<64x1xf32>
    %52 = vector.broadcast %51 : vector<64x1xf32> to vector<64x64xf32>
    %53 = arith.mulf %48, %52 : vector<64x64xf32>
    %54 = arith.truncf %53 : vector<64x64xf32> to vector<64x64xbf16>
    %cst_24 = arith.constant dense<0.000000e+00> : vector<64x16xf32>
    %55 = tpu.matmul %54, %39, %cst_24 {dimension_numbers = #tpu.dot_dimension_numbers<[1], [0], [0], [1], [0, 0, 1, 1], [], []>} : vector<64x64xbf16>, vector<64x16xbf16>, vector<64x16xf32> -> vector<64x16xf32>
    %56 = vector.extract_strided_slice %36 {offsets = [0, 16], sizes = [64, 16], strides = [1, 1]} : vector<64x96xbf16> to vector<64x16xbf16>
    %57 = vector.extract_strided_slice %36 {offsets = [0, 48], sizes = [64, 16], strides = [1, 1]} : vector<64x96xbf16> to vector<64x16xbf16>
    %58 = vector.extract_strided_slice %36 {offsets = [0, 80], sizes = [64, 16], strides = [1, 1]} : vector<64x96xbf16> to vector<64x16xbf16>
    %cst_25 = arith.constant dense<0.000000e+00> : vector<64x64xf32>
    %59 = tpu.matmul %56, %57, %cst_25 {dimension_numbers = #tpu.dot_dimension_numbers<[1], [1], [0], [0], [0, 0, 1, 0], [], []>} : vector<64x16xbf16>, vector<64x16xbf16>, vector<64x64xf32> -> vector<64x64xf32>
    %cst_26 = arith.constant 2.500000e-01 : f32
    %60 = vector.broadcast %cst_26 : f32 to vector<64x64xf32>
    %61 = arith.mulf %59, %60 : vector<64x64xf32>
    %62 = arith.addf %61, %27 : vector<64x64xf32>
    %cst_27 = arith.constant dense<0xFF800000> : vector<64xf32>
    %63 = vector.multi_reduction <maximumf>, %62, %cst_27 [1] : vector<64x64xf32> to vector<64xf32>
    %64 = vector.shape_cast %63 : vector<64xf32> to vector<64x1xf32>
    %65 = vector.broadcast %64 : vector<64x1xf32> to vector<64x64xf32>
    %66 = arith.subf %62, %65 : vector<64x64xf32>
    %67 = math.exp %66 : vector<64x64xf32>
    %cst_28 = arith.constant dense<0.000000e+00> : vector<64xf32>
    %68 = vector.multi_reduction <add>, %67, %cst_28 [1] : vector<64x64xf32> to vector<64xf32>
    %69 = vector.shape_cast %68 : vector<64xf32> to vector<64x1xf32>
    %70 = tpu.reciprocal %69 {approx = true} : vector<64x1xf32> -> vector<64x1xf32>
    %71 = vector.broadcast %70 : vector<64x1xf32> to vector<64x64xf32>
    %72 = arith.mulf %67, %71 : vector<64x64xf32>
    %73 = arith.truncf %72 : vector<64x64xf32> to vector<64x64xbf16>
    %cst_29 = arith.constant dense<0.000000e+00> : vector<64x16xf32>
    %74 = tpu.matmul %73, %58, %cst_29 {dimension_numbers = #tpu.dot_dimension_numbers<[1], [0], [0], [1], [0, 0, 1, 1], [], []>} : vector<64x64xbf16>, vector<64x16xbf16>, vector<64x16xf32> -> vector<64x16xf32>
    %75 = tpu.concatenate %55, %74 in 1 : vector<64x16xf32>, vector<64x16xf32> -> vector<64x32xf32>
    %76 = arith.truncf %75 : vector<64x32xf32> to vector<64x32xbf16>
    %c0_30 = arith.constant 0 : index
    %c0_31 = arith.constant 0 : index
    %c0_32 = arith.constant 0 : index
    %77 = vector.load %arg7[%c0_30, %c0_31, %c0_32] : memref<2x32x32xbf16, #tpu.memory_space<vmem>>, vector<1x32x32xbf16>
    %78 = vector.shape_cast %77 : vector<1x32x32xbf16> to vector<32x32xbf16>
    %cst_33 = arith.constant dense<0.000000e+00> : vector<64x32xf32>
    %79 = tpu.matmul %76, %78, %cst_33 {dimension_numbers = #tpu.dot_dimension_numbers<[1], [0], [0], [1], [0, 0, 1, 1], [], []>} : vector<64x32xbf16>, vector<32x32xbf16>, vector<64x32xf32> -> vector<64x32xf32>
    %c0_34 = arith.constant 0 : index
    %c0_35 = arith.constant 0 : index
    %c0_36 = arith.constant 0 : index
    %80 = vector.load %arg8[%c0_34, %c0_35, %c0_36] : memref<2x1x32xf32, #tpu.memory_space<vmem>>, vector<1x1x32xf32>
    %81 = vector.shape_cast %80 : vector<1x1x32xf32> to vector<1x32xf32>
    %82 = vector.broadcast %81 : vector<1x32xf32> to vector<64x32xf32>
    %83 = arith.addf %79, %82 : vector<64x32xf32>
    %84 = arith.addf %83, %25 : vector<64x32xf32>
    %c0_37 = arith.constant 0 : index
    %c0_38 = arith.constant 0 : index
    %c0_39 = arith.constant 0 : index
    %85 = vector.load %arg9[%c0_37, %c0_38, %c0_39] : memref<2x1x32xf32, #tpu.memory_space<vmem>>, vector<1x1x32xf32>
    %86 = vector.shape_cast %85 : vector<1x1x32xf32> to vector<1x32xf32>
    %c0_40 = arith.constant 0 : index
    %c0_41 = arith.constant 0 : index
    %c0_42 = arith.constant 0 : index
    %87 = vector.load %arg10[%c0_40, %c0_41, %c0_42] : memref<2x1x32xf32, #tpu.memory_space<vmem>>, vector<1x1x32xf32>
    %88 = vector.shape_cast %87 : vector<1x1x32xf32> to vector<1x32xf32>
    %cst_43 = arith.constant dense<0.000000e+00> : vector<64xf32>
    %89 = vector.multi_reduction <add>, %84, %cst_43 [1] : vector<64x32xf32> to vector<64xf32>
    %90 = vector.shape_cast %89 : vector<64xf32> to vector<64x1xf32>
    %cst_44 = arith.constant 3.200000e+01 : f32
    %91 = vector.broadcast %cst_44 : f32 to vector<64x1xf32>
    %92 = arith.divf %90, %91 : vector<64x1xf32>
    %93 = vector.broadcast %92 : vector<64x1xf32> to vector<64x32xf32>
    %94 = arith.subf %84, %93 : vector<64x32xf32>
    %95 = arith.mulf %94, %94 : vector<64x32xf32>
    %cst_45 = arith.constant dense<0.000000e+00> : vector<64xf32>
    %96 = vector.multi_reduction <add>, %95, %cst_45 [1] : vector<64x32xf32> to vector<64xf32>
    %97 = vector.shape_cast %96 : vector<64xf32> to vector<64x1xf32>
    %cst_46 = arith.constant 3.200000e+01 : f32
    %98 = vector.broadcast %cst_46 : f32 to vector<64x1xf32>
    %99 = arith.divf %97, %98 : vector<64x1xf32>
    %100 = vector.broadcast %92 : vector<64x1xf32> to vector<64x32xf32>
    %101 = arith.subf %84, %100 : vector<64x32xf32>
    %cst_47 = arith.constant 9.99999996E-13 : f32
    %102 = vector.broadcast %cst_47 : f32 to vector<64x1xf32>
    %103 = arith.addf %99, %102 : vector<64x1xf32>
    %104 = math.rsqrt %103 : vector<64x1xf32>
    %105 = vector.broadcast %104 : vector<64x1xf32> to vector<64x32xf32>
    %106 = arith.mulf %101, %105 : vector<64x32xf32>
    %107 = vector.broadcast %86 : vector<1x32xf32> to vector<64x32xf32>
    %108 = arith.mulf %106, %107 : vector<64x32xf32>
    %109 = vector.broadcast %88 : vector<1x32xf32> to vector<64x32xf32>
    %110 = arith.addf %108, %109 : vector<64x32xf32>
    %111 = arith.truncf %110 : vector<64x32xf32> to vector<64x32xbf16>
    %c0_48 = arith.constant 0 : index
    %c0_49 = arith.constant 0 : index
    %c0_50 = arith.constant 0 : index
    %112 = vector.load %arg11[%c0_48, %c0_49, %c0_50] : memref<2x32x64xbf16, #tpu.memory_space<vmem>>, vector<1x32x64xbf16>
    %113 = vector.shape_cast %112 : vector<1x32x64xbf16> to vector<32x64xbf16>
    %cst_51 = arith.constant dense<0.000000e+00> : vector<64x64xf32>
    %114 = tpu.matmul %111, %113, %cst_51 {dimension_numbers = #tpu.dot_dimension_numbers<[1], [0], [0], [1], [0, 0, 1, 1], [], []>} : vector<64x32xbf16>, vector<32x64xbf16>, vector<64x64xf32> -> vector<64x64xf32>
    %c0_52 = arith.constant 0 : index
    %c0_53 = arith.constant 0 : index
    %c0_54 = arith.constant 0 : index
    %115 = vector.load %arg12[%c0_52, %c0_53, %c0_54] : memref<2x1x64xf32, #tpu.memory_space<vmem>>, vector<1x1x64xf32>
    %116 = vector.shape_cast %115 : vector<1x1x64xf32> to vector<1x64xf32>
    %117 = vector.broadcast %116 : vector<1x64xf32> to vector<64x64xf32>
    %118 = arith.addf %114, %117 : vector<64x64xf32>
    %cst_55 = arith.constant 5.000000e-01 : f32
    %119 = vector.broadcast %cst_55 : f32 to vector<64x64xf32>
    %120 = arith.mulf %119, %118 : vector<64x64xf32>
    %cst_56 = arith.constant 0.707106769 : f32
    %121 = vector.broadcast %cst_56 : f32 to vector<64x64xf32>
    %122 = arith.mulf %118, %121 : vector<64x64xf32>
    %123 = math.erf %122 : vector<64x64xf32>
    %cst_57 = arith.constant 1.000000e+00 : f32
    %124 = vector.broadcast %cst_57 : f32 to vector<64x64xf32>
    %125 = arith.addf %124, %123 : vector<64x64xf32>
    %126 = arith.mulf %120, %125 : vector<64x64xf32>
    %127 = arith.truncf %126 : vector<64x64xf32> to vector<64x64xbf16>
    %c0_58 = arith.constant 0 : index
    %c0_59 = arith.constant 0 : index
    %c0_60 = arith.constant 0 : index
    %128 = vector.load %arg13[%c0_58, %c0_59, %c0_60] : memref<2x64x32xbf16, #tpu.memory_space<vmem>>, vector<1x64x32xbf16>
    %129 = vector.shape_cast %128 : vector<1x64x32xbf16> to vector<64x32xbf16>
    %cst_61 = arith.constant dense<0.000000e+00> : vector<64x32xf32>
    %130 = tpu.matmul %127, %129, %cst_61 {dimension_numbers = #tpu.dot_dimension_numbers<[1], [0], [0], [1], [0, 0, 1, 1], [], []>} : vector<64x64xbf16>, vector<64x32xbf16>, vector<64x32xf32> -> vector<64x32xf32>
    %c0_62 = arith.constant 0 : index
    %c0_63 = arith.constant 0 : index
    %c0_64 = arith.constant 0 : index
    %131 = vector.load %arg14[%c0_62, %c0_63, %c0_64] : memref<2x1x32xf32, #tpu.memory_space<vmem>>, vector<1x1x32xf32>
    %132 = vector.shape_cast %131 : vector<1x1x32xf32> to vector<1x32xf32>
    %133 = vector.broadcast %132 : vector<1x32xf32> to vector<64x32xf32>
    %134 = arith.addf %130, %133 : vector<64x32xf32>
    %135 = arith.addf %134, %110 : vector<64x32xf32>
    %c0_65 = arith.constant 0 : index
    %c0_66 = arith.constant 0 : index
    %c0_67 = arith.constant 0 : index
    %136 = vector.load %arg15[%c0_65, %c0_66, %c0_67] : memref<2x1x32xf32, #tpu.memory_space<vmem>>, vector<1x1x32xf32>
    %137 = vector.shape_cast %136 : vector<1x1x32xf32> to vector<1x32xf32>
    %c0_68 = arith.constant 0 : index
    %c0_69 = arith.constant 0 : index
    %c0_70 = arith.constant 0 : index
    %138 = vector.load %arg16[%c0_68, %c0_69, %c0_70] : memref<2x1x32xf32, #tpu.memory_space<vmem>>, vector<1x1x32xf32>
    %139 = vector.shape_cast %138 : vector<1x1x32xf32> to vector<1x32xf32>
    %cst_71 = arith.constant dense<0.000000e+00> : vector<64xf32>
    %140 = vector.multi_reduction <add>, %135, %cst_71 [1] : vector<64x32xf32> to vector<64xf32>
    %141 = vector.shape_cast %140 : vector<64xf32> to vector<64x1xf32>
    %cst_72 = arith.constant 3.200000e+01 : f32
    %142 = vector.broadcast %cst_72 : f32 to vector<64x1xf32>
    %143 = arith.divf %141, %142 : vector<64x1xf32>
    %144 = vector.broadcast %143 : vector<64x1xf32> to vector<64x32xf32>
    %145 = arith.subf %135, %144 : vector<64x32xf32>
    %146 = arith.mulf %145, %145 : vector<64x32xf32>
    %cst_73 = arith.constant dense<0.000000e+00> : vector<64xf32>
    %147 = vector.multi_reduction <add>, %146, %cst_73 [1] : vector<64x32xf32> to vector<64xf32>
    %148 = vector.shape_cast %147 : vector<64xf32> to vector<64x1xf32>
    %cst_74 = arith.constant 3.200000e+01 : f32
    %149 = vector.broadcast %cst_74 : f32 to vector<64x1xf32>
    %150 = arith.divf %148, %149 : vector<64x1xf32>
    %151 = vector.broadcast %143 : vector<64x1xf32> to vector<64x32xf32>
    %152 = arith.subf %135, %151 : vector<64x32xf32>
    %cst_75 = arith.constant 9.99999996E-13 : f32
    %153 = vector.broadcast %cst_75 : f32 to vector<64x1xf32>
    %154 = arith.addf %150, %153 : vector<64x1xf32>
    %155 = math.rsqrt %154 : vector<64x1xf32>
    %156 = vector.broadcast %155 : vector<64x1xf32> to vector<64x32xf32>
    %157 = arith.mulf %152, %156 : vector<64x32xf32>
    %158 = vector.broadcast %137 : vector<1x32xf32> to vector<64x32xf32>
    %159 = arith.mulf %157, %158 : vector<64x32xf32>
    %160 = vector.broadcast %139 : vector<1x32xf32> to vector<64x32xf32>
    %161 = arith.addf %159, %160 : vector<64x32xf32>
    %162 = arith.truncf %161 : vector<64x32xf32> to vector<64x32xbf16>
    %c1 = arith.constant 1 : index
    %c0_76 = arith.constant 0 : index
    %c0_77 = arith.constant 0 : index
    %163 = vector.load %arg5[%c1, %c0_76, %c0_77] : memref<2x32x96xbf16, #tpu.memory_space<vmem>>, vector<1x32x96xbf16>
    %164 = vector.shape_cast %163 : vector<1x32x96xbf16> to vector<32x96xbf16>
    %cst_78 = arith.constant dense<0.000000e+00> : vector<64x96xf32>
    %165 = tpu.matmul %162, %164, %cst_78 {dimension_numbers = #tpu.dot_dimension_numbers<[1], [0], [0], [1], [0, 0, 1, 1], [], []>} : vector<64x32xbf16>, vector<32x96xbf16>, vector<64x96xf32> -> vector<64x96xf32>
    %c1_79 = arith.constant 1 : index
    %c0_80 = arith.constant 0 : index
    %c0_81 = arith.constant 0 : index
    %166 = vector.load %arg6[%c1_79, %c0_80, %c0_81] : memref<2x1x96xf32, #tpu.memory_space<vmem>>, vector<1x1x96xf32>
    %167 = vector.shape_cast %166 : vector<1x1x96xf32> to vector<1x96xf32>
    %168 = vector.broadcast %167 : vector<1x96xf32> to vector<64x96xf32>
    %169 = arith.addf %165, %168 : vector<64x96xf32>
    %170 = arith.truncf %169 : vector<64x96xf32> to vector<64x96xbf16>
    %171 = vector.extract_strided_slice %170 {offsets = [0, 0], sizes = [64, 16], strides = [1, 1]} : vector<64x96xbf16> to vector<64x16xbf16>
    %172 = vector.extract_strided_slice %170 {offsets = [0, 32], sizes = [64, 16], strides = [1, 1]} : vector<64x96xbf16> to vector<64x16xbf16>
    %173 = vector.extract_strided_slice %170 {offsets = [0, 64], sizes = [64, 16], strides = [1, 1]} : vector<64x96xbf16> to vector<64x16xbf16>
    %cst_82 = arith.constant dense<0.000000e+00> : vector<64x64xf32>
    %174 = tpu.matmul %171, %172, %cst_82 {dimension_numbers = #tpu.dot_dimension_numbers<[1], [1], [0], [0], [0, 0, 1, 0], [], []>} : vector<64x16xbf16>, vector<64x16xbf16>, vector<64x64xf32> -> vector<64x64xf32>
    %cst_83 = arith.constant 2.500000e-01 : f32
    %175 = vector.broadcast %cst_83 : f32 to vector<64x64xf32>
    %176 = arith.mulf %174, %175 : vector<64x64xf32>
    %177 = arith.addf %176, %27 : vector<64x64xf32>
    %cst_84 = arith.constant dense<0xFF800000> : vector<64xf32>
    %178 = vector.multi_reduction <maximumf>, %177, %cst_84 [1] : vector<64x64xf32> to vector<64xf32>
    %179 = vector.shape_cast %178 : vector<64xf32> to vector<64x1xf32>
    %180 = vector.broadcast %179 : vector<64x1xf32> to vector<64x64xf32>
    %181 = arith.subf %177, %180 : vector<64x64xf32>
    %182 = math.exp %181 : vector<64x64xf32>
    %cst_85 = arith.constant dense<0.000000e+00> : vector<64xf32>
    %183 = vector.multi_reduction <add>, %182, %cst_85 [1] : vector<64x64xf32> to vector<64xf32>
    %184 = vector.shape_cast %183 : vector<64xf32> to vector<64x1xf32>
    %185 = tpu.reciprocal %184 {approx = true} : vector<64x1xf32> -> vector<64x1xf32>
    %186 = vector.broadcast %185 : vector<64x1xf32> to vector<64x64xf32>
    %187 = arith.mulf %182, %186 : vector<64x64xf32>
    %188 = arith.truncf %187 : vector<64x64xf32> to vector<64x64xbf16>
    %cst_86 = arith.constant dense<0.000000e+00> : vector<64x16xf32>
    %189 = tpu.matmul %188, %173, %cst_86 {dimension_numbers = #tpu.dot_dimension_numbers<[1], [0], [0], [1], [0, 0, 1, 1], [], []>} : vector<64x64xbf16>, vector<64x16xbf16>, vector<64x16xf32> -> vector<64x16xf32>
    %190 = vector.extract_strided_slice %170 {offsets = [0, 16], sizes = [64, 16], strides = [1, 1]} : vector<64x96xbf16> to vector<64x16xbf16>
    %191 = vector.extract_strided_slice %170 {offsets = [0, 48], sizes = [64, 16], strides = [1, 1]} : vector<64x96xbf16> to vector<64x16xbf16>
    %192 = vector.extract_strided_slice %170 {offsets = [0, 80], sizes = [64, 16], strides = [1, 1]} : vector<64x96xbf16> to vector<64x16xbf16>
    %cst_87 = arith.constant dense<0.000000e+00> : vector<64x64xf32>
    %193 = tpu.matmul %190, %191, %cst_87 {dimension_numbers = #tpu.dot_dimension_numbers<[1], [1], [0], [0], [0, 0, 1, 0], [], []>} : vector<64x16xbf16>, vector<64x16xbf16>, vector<64x64xf32> -> vector<64x64xf32>
    %cst_88 = arith.constant 2.500000e-01 : f32
    %194 = vector.broadcast %cst_88 : f32 to vector<64x64xf32>
    %195 = arith.mulf %193, %194 : vector<64x64xf32>
    %196 = arith.addf %195, %27 : vector<64x64xf32>
    %cst_89 = arith.constant dense<0xFF800000> : vector<64xf32>
    %197 = vector.multi_reduction <maximumf>, %196, %cst_89 [1] : vector<64x64xf32> to vector<64xf32>
    %198 = vector.shape_cast %197 : vector<64xf32> to vector<64x1xf32>
    %199 = vector.broadcast %198 : vector<64x1xf32> to vector<64x64xf32>
    %200 = arith.subf %196, %199 : vector<64x64xf32>
    %201 = math.exp %200 : vector<64x64xf32>
    %cst_90 = arith.constant dense<0.000000e+00> : vector<64xf32>
    %202 = vector.multi_reduction <add>, %201, %cst_90 [1] : vector<64x64xf32> to vector<64xf32>
    %203 = vector.shape_cast %202 : vector<64xf32> to vector<64x1xf32>
    %204 = tpu.reciprocal %203 {approx = true} : vector<64x1xf32> -> vector<64x1xf32>
    %205 = vector.broadcast %204 : vector<64x1xf32> to vector<64x64xf32>
    %206 = arith.mulf %201, %205 : vector<64x64xf32>
    %207 = arith.truncf %206 : vector<64x64xf32> to vector<64x64xbf16>
    %cst_91 = arith.constant dense<0.000000e+00> : vector<64x16xf32>
    %208 = tpu.matmul %207, %192, %cst_91 {dimension_numbers = #tpu.dot_dimension_numbers<[1], [0], [0], [1], [0, 0, 1, 1], [], []>} : vector<64x64xbf16>, vector<64x16xbf16>, vector<64x16xf32> -> vector<64x16xf32>
    %209 = tpu.concatenate %189, %208 in 1 : vector<64x16xf32>, vector<64x16xf32> -> vector<64x32xf32>
    %210 = arith.truncf %209 : vector<64x32xf32> to vector<64x32xbf16>
    %c1_92 = arith.constant 1 : index
    %c0_93 = arith.constant 0 : index
    %c0_94 = arith.constant 0 : index
    %211 = vector.load %arg7[%c1_92, %c0_93, %c0_94] : memref<2x32x32xbf16, #tpu.memory_space<vmem>>, vector<1x32x32xbf16>
    %212 = vector.shape_cast %211 : vector<1x32x32xbf16> to vector<32x32xbf16>
    %cst_95 = arith.constant dense<0.000000e+00> : vector<64x32xf32>
    %213 = tpu.matmul %210, %212, %cst_95 {dimension_numbers = #tpu.dot_dimension_numbers<[1], [0], [0], [1], [0, 0, 1, 1], [], []>} : vector<64x32xbf16>, vector<32x32xbf16>, vector<64x32xf32> -> vector<64x32xf32>
    %c1_96 = arith.constant 1 : index
    %c0_97 = arith.constant 0 : index
    %c0_98 = arith.constant 0 : index
    %214 = vector.load %arg8[%c1_96, %c0_97, %c0_98] : memref<2x1x32xf32, #tpu.memory_space<vmem>>, vector<1x1x32xf32>
    %215 = vector.shape_cast %214 : vector<1x1x32xf32> to vector<1x32xf32>
    %216 = vector.broadcast %215 : vector<1x32xf32> to vector<64x32xf32>
    %217 = arith.addf %213, %216 : vector<64x32xf32>
    %218 = arith.addf %217, %161 : vector<64x32xf32>
    %c1_99 = arith.constant 1 : index
    %c0_100 = arith.constant 0 : index
    %c0_101 = arith.constant 0 : index
    %219 = vector.load %arg9[%c1_99, %c0_100, %c0_101] : memref<2x1x32xf32, #tpu.memory_space<vmem>>, vector<1x1x32xf32>
    %220 = vector.shape_cast %219 : vector<1x1x32xf32> to vector<1x32xf32>
    %c1_102 = arith.constant 1 : index
    %c0_103 = arith.constant 0 : index
    %c0_104 = arith.constant 0 : index
    %221 = vector.load %arg10[%c1_102, %c0_103, %c0_104] : memref<2x1x32xf32, #tpu.memory_space<vmem>>, vector<1x1x32xf32>
    %222 = vector.shape_cast %221 : vector<1x1x32xf32> to vector<1x32xf32>
    %cst_105 = arith.constant dense<0.000000e+00> : vector<64xf32>
    %223 = vector.multi_reduction <add>, %218, %cst_105 [1] : vector<64x32xf32> to vector<64xf32>
    %224 = vector.shape_cast %223 : vector<64xf32> to vector<64x1xf32>
    %cst_106 = arith.constant 3.200000e+01 : f32
    %225 = vector.broadcast %cst_106 : f32 to vector<64x1xf32>
    %226 = arith.divf %224, %225 : vector<64x1xf32>
    %227 = vector.broadcast %226 : vector<64x1xf32> to vector<64x32xf32>
    %228 = arith.subf %218, %227 : vector<64x32xf32>
    %229 = arith.mulf %228, %228 : vector<64x32xf32>
    %cst_107 = arith.constant dense<0.000000e+00> : vector<64xf32>
    %230 = vector.multi_reduction <add>, %229, %cst_107 [1] : vector<64x32xf32> to vector<64xf32>
    %231 = vector.shape_cast %230 : vector<64xf32> to vector<64x1xf32>
    %cst_108 = arith.constant 3.200000e+01 : f32
    %232 = vector.broadcast %cst_108 : f32 to vector<64x1xf32>
    %233 = arith.divf %231, %232 : vector<64x1xf32>
    %234 = vector.broadcast %226 : vector<64x1xf32> to vector<64x32xf32>
    %235 = arith.subf %218, %234 : vector<64x32xf32>
    %cst_109 = arith.constant 9.99999996E-13 : f32
    %236 = vector.broadcast %cst_109 : f32 to vector<64x1xf32>
    %237 = arith.addf %233, %236 : vector<64x1xf32>
    %238 = math.rsqrt %237 : vector<64x1xf32>
    %239 = vector.broadcast %238 : vector<64x1xf32> to vector<64x32xf32>
    %240 = arith.mulf %235, %239 : vector<64x32xf32>
    %241 = vector.broadcast %220 : vector<1x32xf32> to vector<64x32xf32>
    %242 = arith.mulf %240, %241 : vector<64x32xf32>
    %243 = vector.broadcast %222 : vector<1x32xf32> to vector<64x32xf32>
    %244 = arith.addf %242, %243 : vector<64x32xf32>
    %245 = arith.truncf %244 : vector<64x32xf32> to vector<64x32xbf16>
    %c1_110 = arith.constant 1 : index
    %c0_111 = arith.constant 0 : index
    %c0_112 = arith.constant 0 : index
    %246 = vector.load %arg11[%c1_110, %c0_111, %c0_112] : memref<2x32x64xbf16, #tpu.memory_space<vmem>>, vector<1x32x64xbf16>
    %247 = vector.shape_cast %246 : vector<1x32x64xbf16> to vector<32x64xbf16>
    %cst_113 = arith.constant dense<0.000000e+00> : vector<64x64xf32>
    %248 = tpu.matmul %245, %247, %cst_113 {dimension_numbers = #tpu.dot_dimension_numbers<[1], [0], [0], [1], [0, 0, 1, 1], [], []>} : vector<64x32xbf16>, vector<32x64xbf16>, vector<64x64xf32> -> vector<64x64xf32>
    %c1_114 = arith.constant 1 : index
    %c0_115 = arith.constant 0 : index
    %c0_116 = arith.constant 0 : index
    %249 = vector.load %arg12[%c1_114, %c0_115, %c0_116] : memref<2x1x64xf32, #tpu.memory_space<vmem>>, vector<1x1x64xf32>
    %250 = vector.shape_cast %249 : vector<1x1x64xf32> to vector<1x64xf32>
    %251 = vector.broadcast %250 : vector<1x64xf32> to vector<64x64xf32>
    %252 = arith.addf %248, %251 : vector<64x64xf32>
    %cst_117 = arith.constant 5.000000e-01 : f32
    %253 = vector.broadcast %cst_117 : f32 to vector<64x64xf32>
    %254 = arith.mulf %253, %252 : vector<64x64xf32>
    %cst_118 = arith.constant 0.707106769 : f32
    %255 = vector.broadcast %cst_118 : f32 to vector<64x64xf32>
    %256 = arith.mulf %252, %255 : vector<64x64xf32>
    %257 = math.erf %256 : vector<64x64xf32>
    %cst_119 = arith.constant 1.000000e+00 : f32
    %258 = vector.broadcast %cst_119 : f32 to vector<64x64xf32>
    %259 = arith.addf %258, %257 : vector<64x64xf32>
    %260 = arith.mulf %254, %259 : vector<64x64xf32>
    %261 = arith.truncf %260 : vector<64x64xf32> to vector<64x64xbf16>
    %c1_120 = arith.constant 1 : index
    %c0_121 = arith.constant 0 : index
    %c0_122 = arith.constant 0 : index
    %262 = vector.load %arg13[%c1_120, %c0_121, %c0_122] : memref<2x64x32xbf16, #tpu.memory_space<vmem>>, vector<1x64x32xbf16>
    %263 = vector.shape_cast %262 : vector<1x64x32xbf16> to vector<64x32xbf16>
    %cst_123 = arith.constant dense<0.000000e+00> : vector<64x32xf32>
    %264 = tpu.matmul %261, %263, %cst_123 {dimension_numbers = #tpu.dot_dimension_numbers<[1], [0], [0], [1], [0, 0, 1, 1], [], []>} : vector<64x64xbf16>, vector<64x32xbf16>, vector<64x32xf32> -> vector<64x32xf32>
    %c1_124 = arith.constant 1 : index
    %c0_125 = arith.constant 0 : index
    %c0_126 = arith.constant 0 : index
    %265 = vector.load %arg14[%c1_124, %c0_125, %c0_126] : memref<2x1x32xf32, #tpu.memory_space<vmem>>, vector<1x1x32xf32>
    %266 = vector.shape_cast %265 : vector<1x1x32xf32> to vector<1x32xf32>
    %267 = vector.broadcast %266 : vector<1x32xf32> to vector<64x32xf32>
    %268 = arith.addf %264, %267 : vector<64x32xf32>
    %269 = arith.addf %268, %244 : vector<64x32xf32>
    %c1_127 = arith.constant 1 : index
    %c0_128 = arith.constant 0 : index
    %c0_129 = arith.constant 0 : index
    %270 = vector.load %arg15[%c1_127, %c0_128, %c0_129] : memref<2x1x32xf32, #tpu.memory_space<vmem>>, vector<1x1x32xf32>
    %271 = vector.shape_cast %270 : vector<1x1x32xf32> to vector<1x32xf32>
    %c1_130 = arith.constant 1 : index
    %c0_131 = arith.constant 0 : index
    %c0_132 = arith.constant 0 : index
    %272 = vector.load %arg16[%c1_130, %c0_131, %c0_132] : memref<2x1x32xf32, #tpu.memory_space<vmem>>, vector<1x1x32xf32>
    %273 = vector.shape_cast %272 : vector<1x1x32xf32> to vector<1x32xf32>
    %cst_133 = arith.constant dense<0.000000e+00> : vector<64xf32>
    %274 = vector.multi_reduction <add>, %269, %cst_133 [1] : vector<64x32xf32> to vector<64xf32>
    %275 = vector.shape_cast %274 : vector<64xf32> to vector<64x1xf32>
    %cst_134 = arith.constant 3.200000e+01 : f32
    %276 = vector.broadcast %cst_134 : f32 to vector<64x1xf32>
    %277 = arith.divf %275, %276 : vector<64x1xf32>
    %278 = vector.broadcast %277 : vector<64x1xf32> to vector<64x32xf32>
    %279 = arith.subf %269, %278 : vector<64x32xf32>
    %280 = arith.mulf %279, %279 : vector<64x32xf32>
    %cst_135 = arith.constant dense<0.000000e+00> : vector<64xf32>
    %281 = vector.multi_reduction <add>, %280, %cst_135 [1] : vector<64x32xf32> to vector<64xf32>
    %282 = vector.shape_cast %281 : vector<64xf32> to vector<64x1xf32>
    %cst_136 = arith.constant 3.200000e+01 : f32
    %283 = vector.broadcast %cst_136 : f32 to vector<64x1xf32>
    %284 = arith.divf %282, %283 : vector<64x1xf32>
    %285 = vector.broadcast %277 : vector<64x1xf32> to vector<64x32xf32>
    %286 = arith.subf %269, %285 : vector<64x32xf32>
    %cst_137 = arith.constant 9.99999996E-13 : f32
    %287 = vector.broadcast %cst_137 : f32 to vector<64x1xf32>
    %288 = arith.addf %284, %287 : vector<64x1xf32>
    %289 = math.rsqrt %288 : vector<64x1xf32>
    %290 = vector.broadcast %289 : vector<64x1xf32> to vector<64x32xf32>
    %291 = arith.mulf %286, %290 : vector<64x32xf32>
    %292 = vector.broadcast %271 : vector<1x32xf32> to vector<64x32xf32>
    %293 = arith.mulf %291, %292 : vector<64x32xf32>
    %294 = vector.broadcast %273 : vector<1x32xf32> to vector<64x32xf32>
    %295 = arith.addf %293, %294 : vector<64x32xf32>
    %296 = vector.shape_cast %295 : vector<64x32xf32> to vector<8x8x32xf32>
    %297 = vector.extract_strided_slice %296 {offsets = [0, 0, 0], sizes = [8, 1, 32], strides = [1, 1, 1]} : vector<8x8x32xf32> to vector<8x1x32xf32>
    %298 = vector.shape_cast %297 : vector<8x1x32xf32> to vector<8x32xf32>
    %299 = arith.truncf %298 : vector<8x32xf32> to vector<8x32xbf16>
    %c0_138 = arith.constant 0 : index
    %c0_139 = arith.constant 0 : index
    %300 = vector.load %arg17[%c0_138, %c0_139] : memref<32x32xbf16, #tpu.memory_space<vmem>>, vector<32x32xbf16>
    %cst_140 = arith.constant dense<0.000000e+00> : vector<8x32xf32>
    %301 = tpu.matmul %299, %300, %cst_140 {dimension_numbers = #tpu.dot_dimension_numbers<[1], [0], [0], [1], [0, 0, 1, 1], [], []>} : vector<8x32xbf16>, vector<32x32xbf16>, vector<8x32xf32> -> vector<8x32xf32>
    %c0_141 = arith.constant 0 : index
    %c0_142 = arith.constant 0 : index
    %302 = vector.load %arg18[%c0_141, %c0_142] : memref<1x32xf32, #tpu.memory_space<vmem>>, vector<1x32xf32>
    %303 = vector.broadcast %302 : vector<1x32xf32> to vector<8x32xf32>
    %304 = arith.addf %301, %303 : vector<8x32xf32>
    %305 = math.tanh %304 : vector<8x32xf32>
    %306 = arith.truncf %305 : vector<8x32xf32> to vector<8x32xbf16>
    %c0_143 = arith.constant 0 : index
    %c0_144 = arith.constant 0 : index
    %307 = vector.load %arg19[%c0_143, %c0_144] : memref<32x128xbf16, #tpu.memory_space<vmem>>, vector<32x128xbf16>
    %cst_145 = arith.constant dense<0.000000e+00> : vector<8x128xf32>
    %308 = tpu.matmul %306, %307, %cst_145 {dimension_numbers = #tpu.dot_dimension_numbers<[1], [0], [0], [1], [0, 0, 1, 1], [], []>} : vector<8x32xbf16>, vector<32x128xbf16>, vector<8x128xf32> -> vector<8x128xf32>
    %c0_146 = arith.constant 0 : index
    %c0_147 = arith.constant 0 : index
    %309 = vector.load %arg20[%c0_146, %c0_147] : memref<1x128xf32, #tpu.memory_space<vmem>>, vector<1x128xf32>
    %310 = vector.broadcast %309 : vector<1x128xf32> to vector<8x128xf32>
    %311 = arith.addf %308, %310 : vector<8x128xf32>
    %c0_148 = arith.constant 0 : index
    %c0_149 = arith.constant 0 : index
    %312 = vector.load %arg21[%c0_148, %c0_149] : memref<8x128xf32, #tpu.memory_space<vmem>>, vector<8x128xf32>
    tpu.vector_store %arg21[%c0_148, %c0_149], %311 {strides = array<i32>} : memref<8x128xf32, #tpu.memory_space<vmem>>, vector<8x128xf32>,
    return
  }
  func.func @transform_0(%arg0: i32) -> (i32, i32, i32) {
    %c0_i32 = arith.constant 0 : i32
    %c0_i32_0 = arith.constant 0 : i32
    %c0_i32_1 = arith.constant 0 : i32
    return %arg0, %c0_i32, %c0_i32_0 : i32, i32, i32
  }
  func.func @transform_1(%arg0: i32) -> (i32, i32, i32) {
    %c0_i32 = arith.constant 0 : i32
    %c0_i32_0 = arith.constant 0 : i32
    %c0_i32_1 = arith.constant 0 : i32
    return %arg0, %c0_i32, %c0_i32_0 : i32, i32, i32
  }
  func.func @transform_2(%arg0: i32) -> (i32, i32) {
    %c0_i32 = arith.constant 0 : i32
    %c0_i32_0 = arith.constant 0 : i32
    %c0_i32_1 = arith.constant 0 : i32
    return %c0_i32, %c0_i32_0 : i32, i32
  }
  func.func @transform_3(%arg0: i32) -> (i32, i32) {
    %c0_i32 = arith.constant 0 : i32
    %c0_i32_0 = arith.constant 0 : i32
    %c0_i32_1 = arith.constant 0 : i32
    return %c0_i32, %c0_i32_0 : i32, i32
  }
  func.func @transform_4(%arg0: i32) -> (i32, i32, i32) {
    %c0_i32 = arith.constant 0 : i32
    %c0_i32_0 = arith.constant 0 : i32
    %c0_i32_1 = arith.constant 0 : i32
    %c0_i32_2 = arith.constant 0 : i32
    return %c0_i32, %c0_i32_0, %c0_i32_1 : i32, i32, i32
  }
  func.func @transform_5(%arg0: i32) -> (i32, i32, i32) {
    %c0_i32 = arith.constant 0 : i32
    %c0_i32_0 = arith.constant 0 : i32
    %c0_i32_1 = arith.constant 0 : i32
    %c0_i32_2 = arith.constant 0 : i32
    return %c0_i32, %c0_i32_0, %c0_i32_1 : i32, i32, i32
  }
  func.func @transform_6(%arg0: i32) -> (i32, i32, i32) {
    %c0_i32 = arith.constant 0 : i32
    %c0_i32_0 = arith.constant 0 : i32
    %c0_i32_1 = arith.constant 0 : i32
    %c0_i32_2 = arith.constant 0 : i32
    return %c0_i32, %c0_i32_0, %c0_i32_1 : i32, i32, i32
  }
  func.func @transform_7(%arg0: i32) -> (i32, i32, i32) {
    %c0_i32 = arith.constant 0 : i32
    %c0_i32_0 = arith.constant 0 : i32
    %c0_i32_1 = arith.constant 0 : i32
    %c0_i32_2 = arith.constant 0 : i32
    return %c0_i32, %c0_i32_0, %c0_i32_1 : i32, i32, i32
  }
  func.func @transform_8(%arg0: i32) -> (i32, i32, i32) {
    %c0_i32 = arith.constant 0 : i32
    %c0_i32_0 = arith.constant 0 : i32
    %c0_i32_1 = arith.constant 0 : i32
    %c0_i32_2 = arith.constant 0 : i32
    return %c0_i32, %c0_i32_0, %c0_i32_1 : i32, i32, i32
  }
  func.func @transform_9(%arg0: i32) -> (i32, i32, i32) {
    %c0_i32 = arith.constant 0 : i32
    %c0_i32_0 = arith.constant 0 : i32
    %c0_i32_1 = arith.constant 0 : i32
    %c0_i32_2 = arith.constant 0 : i32
    return %c0_i32, %c0_i32_0, %c0_i32_1 : i32, i32, i32
  }
  func.func @transform_10(%arg0: i32) -> (i32, i32, i32) {
    %c0_i32 = arith.constant 0 : i32
    %c0_i32_0 = arith.constant 0 : i32
    %c0_i32_1 = arith.constant 0 : i32
    %c0_i32_2 = arith.constant 0 : i32
    return %c0_i32, %c0_i32_0, %c0_i32_1 : i32, i32, i32
  }
  func.func @transform_11(%arg0: i32) -> (i32, i32, i32) {
    %c0_i32 = arith.constant 0 : i32
    %c0_i32_0 = arith.constant 0 : i32
    %c0_i32_1 = arith.constant 0 : i32
    %c0_i32_2 = arith.constant 0 : i32
    return %c0_i32, %c0_i32_0, %c0_i32_1 : i32, i32, i32
  }
  func.func @transform_12(%arg0: i32) -> (i32, i32, i32) {
    %c0_i32 = arith.constant 0 : i32
    %c0_i32_0 = arith.constant 0 : i32
    %c0_i32_1 = arith.constant 0 : i32
    %c0_i32_2 = arith.constant 0 : i32
    return %c0_i32, %c0_i32_0, %c0_i32_1 : i32, i32, i32
  }
  func.func @transform_13(%arg0: i32) -> (i32, i32, i32) {
    %c0_i32 = arith.constant 0 : i32
    %c0_i32_0 = arith.constant 0 : i32
    %c0_i32_1 = arith.constant 0 : i32
    %c0_i32_2 = arith.constant 0 : i32
    return %c0_i32, %c0_i32_0, %c0_i32_1 : i32, i32, i32
  }
  func.func @transform_14(%arg0: i32) -> (i32, i32, i32) {
    %c0_i32 = arith.constant 0 : i32
    %c0_i32_0 = arith.constant 0 : i32
    %c0_i32_1 = arith.constant 0 : i32
    %c0_i32_2 = arith.constant 0 : i32
    return %c0_i32, %c0_i32_0, %c0_i32_1 : i32, i32, i32
  }
  func.func @transform_15(%arg0: i32) -> (i32, i32, i32) {
    %c0_i32 = arith.constant 0 : i32
    %c0_i32_0 = arith.constant 0 : i32
    %c0_i32_1 = arith.constant 0 : i32
    %c0_i32_2 = arith.constant 0 : i32
    return %c0_i32, %c0_i32_0, %c0_i32_1 : i32, i32, i32
  }
  func.func @transform_16(%arg0: i32) -> (i32, i32) {
    %c0_i32 = arith.constant 0 : i32
    %c0_i32_0 = arith.constant 0 : i32
    %c0_i32_1 = arith.constant 0 : i32
    return %c0_i32, %c0_i32_0 : i32, i32
  }
  func.func @transform_17(%arg0: i32) -> (i32, i32) {
    %c0_i32 = arith.constant 0 : i32
    %c0_i32_0 = arith.constant 0 : i32
    %c0_i32_1 = arith.constant 0 : i32
    return %c0_i32, %c0_i32_0 : i32, i32
  }
  func.func @transform_18(%arg0: i32) -> (i32, i32) {
    %c0_i32 = arith.constant 0 : i32
    %c0_i32_0 = arith.constant 0 : i32
    %c0_i32_1 = arith.constant 0 : i32
    return %c0_i32, %c0_i32_0 : i32, i32
  }
  func.func @transform_19(%arg0: i32) -> (i32, i32) {
    %c0_i32 = arith.constant 0 : i32
    %c0_i32_0 = arith.constant 0 : i32
    %c0_i32_1 = arith.constant 0 : i32
    return %c0_i32, %c0_i32_0 : i32, i32
  }
  func.func @transform_20(%arg0: i32) -> (i32, i32) {
    %c0_i32 = arith.constant 0 : i32
    %c0_i32_0 = arith.constant 0 : i32
    return %arg0, %c0_i32 : i32, i32
  }
}

</mosaic_0001>

<bundles_post_ra>
// kernel: _forward.1
= control target key start
LH: loop header
LB: loop body
LE: loop exit
PB: predicated region body
PF: predicated region fallthrough
CT: control target
= control target key end

     0   :  { %s6708_s0 = inlined_call_operand.vmem [shape: f32[16,8,32], index: 0, kind: input, shape index: {}]   ;;  %s6709_s1 = inlined_call_operand.vmem [shape: f32[2,64,64], index: 1, kind: input, shape index: {}]   ;;  %s6710_s2 = inlined_call_operand.vmem [shape: f32[1,32], index: 2, kind: input, shape index: {}]   ;;  %s6711_s3 = inlined_call_operand.vmem [shape: f32[1,32], index: 3, kind: input, shape index: {}]   ;;  %s6712_s4 = inlined_call_operand.vmem [shape: bf16[2,32,96], index: 4, kind: input, shape index: {}]   ;;  %s6713_s5 = inlined_call_operand.vmem [shape: f32[2,1,96], index: 5, kind: input, shape index: {}]   ;;  %s6714_s6 = inlined_call_operand.vmem [shape: bf16[2,32,32], index: 6, kind: input, shape index: {}]   ;;  %s6715_s7 = inlined_call_operand.vmem [shape: f32[2,1,32], index: 7, kind: input, shape index: {}]   ;;  %s6716_s8 = inlined_call_operand.vmem [shape: f32[2,1,32], index: 8, kind: input, shape index: {}]   ;;  %s6717_s9 = inlined_call_operand.vmem [shape: f32[2,1,32], index: 9, kind: input, shape index: {}]   ;;  %s6718_s10 = inlined_call_operand.vmem [shape: bf16[2,32,64], index: 10, kind: input, shape index: {}]   ;;  %s6719_s11 = inlined_call_operand.vmem [shape: f32[2,1,64], index: 11, kind: input, shape index: {}]   ;;  %s6720_s12 = inlined_call_operand.vmem [shape: bf16[2,64,32], index: 12, kind: input, shape index: {}]   ;;  %s6721_s13 = inlined_call_operand.vmem [shape: f32[2,1,32], index: 13, kind: input, shape index: {}]   ;;  %s6722_s14 = inlined_call_operand.vmem [shape: f32[2,1,32], index: 14, kind: input, shape index: {}]   ;;  %s6723_s15 = inlined_call_operand.vmem [shape: f32[2,1,32], index: 15, kind: input, shape index: {}]   ;;  %s6724_s16 = inlined_call_operand.vmem [shape: bf16[32,32], index: 16, kind: input, shape index: {}]   ;;  %s6725_s17 = inlined_call_operand.vmem [shape: f32[1,32], index: 17, kind: input, shape index: {}]   ;;  %s6726_s18 = inlined_call_operand.vmem [shape: bf16[32,128], index: 18, kind: input, shape index: {}]   ;;  %s6727_s19 = inlined_call_operand.vmem [shape: f32[1,128], index: 19, kind: input, shape index: {}]   ;;  %s6728_s20 = inlined_call_operand.hbm [shape: f32[16,128], index: 20, kind: output, shape index: {}]  }
   0x1   :  { %6739 = sst [smem:[#allocation7_spill]] %s6708_s0 }
   0x2   :  { %6740 = sst [smem:[#allocation8_spill]] %s6709_s1 }
   0x3   :  { %6741 = sst [smem:[#allocation9_spill]] %s6710_s2 }
   0x4   :  { %6742 = sst [smem:[#allocation10_spill]] %s6711_s3 }
   0x5   :  { %6743 = sst [smem:[#allocation11_spill]] %s6712_s4 }
   0x6   :  { %6744 = sst [smem:[#allocation12_spill]] %s6713_s5 }
   0x7   :  { %6745 = sst [smem:[#allocation13_spill]] %s6714_s6 }
   0x8   :  { %6746 = sst [smem:[#allocation14_spill]] %s6715_s7 }
   0x9   :  { %6747 = sst [smem:[#allocation15_spill]] %s6716_s8 }
   0xa   :  { %6748 = sst [smem:[#allocation16_spill]] %s6717_s9 }
   0xb   :  { %6749 = sst [smem:[#allocation17_spill]] %s6718_s10 }
   0xc   :  { %25 = vsyncpa [#allocation3], 0 }
   0xd   :  { %27 = vsyncpa [#allocation3 + $0x1], 0  ;;  %s5003_s1 = smov 0   ;;  %s5005_s22 = smov 0  }
   0xe   :  { %s5007_s23 = smov 0   ;;  %s5009_s24 = smov 0  }
   0xf LB: > { %6750 = sst [smem:[#allocation5_spill]] %s4885_s23  ;;  %s5024_s2 = sadd.s32 4294967295, %s4889_s24   ;;  %s4889_s24 = sphi %s5009_s24, %s6783_s24   ;;  %s4885_s23 = sphi %s5007_s23, %s6780_s23   ;;  %s4881_s22 = sphi %s5005_s22, %s6782_s22   ;;  %s4877_s1 = sphi %s5003_s1, %s6781_s1  }
  0x10   : > { %s4225_s25 = sadd.s32 4294967294, %s4889_s24   ;;  %s5028_s3 = sadd.s32 1, %s4889_s24  }
  0x11   : > { %s470_s26 = sadd.s32 1, %s4885_s23  ;;  %s467_s27 = ssub.s32 %s4889_s24, %s5028_s3 }
  0x12   : > { %p480_p0 = scmp.ne.s32.totalorder %s4885_s23, %s4881_s22  ;;  %p468_p1 = scmp.eq.s32.totalorder %s467_s27, 0 }
  0x13   : > { %p481_p2 = scmp.eq.s32.totalorder %s5024_s2, 1  ;;  %p486_p3 = scmp.ne.s32.totalorder %s4881_s22, %s4877_s1 }
  0x14   : > { %p487_p4 = scmp.eq.s32.totalorder %s4225_s25, 1  ;;  %p4228_p7 = scmp.ge.s32.totalorder %s4889_s24, 1 }
  0x15   : > { %s5039_s28 = scalar_select %p468_p1, %s4885_s23, %s470_s26  }
  0x16   : > { %p5041_p5 = por %p481_p2, %p480_p0  ;;  %p5045_p6 = por %p487_p4, %p486_p3 }
  0x17   : > { %6751 = sst [smem:[#allocation6_spill]] %s5039_s28  ;;  %p576_p8 = scmp.lt.s32.totalorder %s4889_s24, 3 }
  0x19   : > { %p577_p9 = pnand %p4228_p7, %p576_p8 }
  0x1a   : > { %s5052_s30 = sshll.u32 (!%p577_p9), %s5024_s2, 3  ;;  %s6754_s27 = sld [smem:[#allocation7_spill]] (!%p577_p9) }
  0x1b   : > { %580 = sbr.rel (%p577_p9) target bundleno = 4848 (0x12f0), region = 100  ;;  %p640_p10 = scmp.lt.s32.totalorder (!%p577_p9), %s5052_s30, 15 }
  0x1c   : > { %s6759_s23 = sld [smem:[#allocation10_spill]] (!%p577_p9)  ;;  %s6733_s25 = smov (!%p577_p9), 48  }
  0x1d   : > { %s6760_s5 = sld [smem:[#allocation12_spill]] (!%p577_p9)  ;;  %s4895_s26 = smov (!%p577_p9), 64  }
  0x1e   : > { %p645_p11 = scmp.lt.s32.totalorder (!%p577_p9), %s5024_s2, 1  ;;  %s6762_s6 = sld [smem:[#allocation13_spill]] (!%p577_p9) }
  0x1f   : > { %s6763_s7 = sld [smem:[#allocation14_spill]] (!%p577_p9) }
  0x20   : > { %s641_s0 = scalar_select %p640_p10, %s5052_s30, 15  ;;  %vm661_vm0 = vcmask 261120   ;;  %v4891_v14 = vmov 32.0  }
  0x21   : > { %4575 = vrcp.f32 %v4891_v14  ;;  %s6785_s2 = smov (!%p645_p11, %s5024_s2), 1  ;;  %s6764_s10 = sld [smem:[#allocation17_spill]] }
  0x22   : > { %s4231_s21 = sshll.u32 %s641_s0, 3  ;;  %s6758_s0 = sld [smem:[#allocation9_spill]] }
  0x23   : > { %s5059_s28 = scalar_lea.vmem %s6754_s27, %s4231_s21  ;;  %s6755_s21 = sld [smem:[#allocation11_spill]] }
  0x24   : > { %v655_v0 = vld [vmem:[%s5059_s28 + $0x20] sm:$0xff]  ;;  %v653_v1 = vld [vmem:[%s5059_s28 + $0x10] sm:$0xff]  ;;  %v656_v6 = vld [vmem:[%s5059_s28 + $0x28] sm:$0xff]  ;;  %s4444_s27 = sshll.u32 %s6785_s2, 6  ;;  %s4897_s2 = smov 16  }
  0x25   : > { %v651_v2 = vld [vmem:[%s5059_s28] sm:$0xff]  ;;  %v674_v3 = vsel %vm661_vm0, %v655_v0, 0.0  ;;  %v668_v4 = vsel %vm661_vm0, %v653_v1, 0.0  ;;  %v654_v7 = vld [vmem:[%s5059_s28 + $0x18] sm:$0xff]  ;;  %v652_v8 = vld [vmem:[%s5059_s28 + $0x8] sm:$0xff]  ;;  %v677_v9 = vsel %vm661_vm0, %v656_v6, 0.0 }
  0x26   : > { %v662_v5 = vsel %vm661_vm0, %v651_v2, 0.0  ;;  %675 = vadd.xlane.f32.xlu2 %v674_v3  ;;  %669 = vadd.xlane.f32.xlu1 %v668_v4  ;;  %v671_v10 = vsel %vm661_vm0, %v654_v7, 0.0  ;;  %v665_v11 = vsel %vm661_vm0, %v652_v8, 0.0  ;;  %v657_v12 = vld [vmem:[%s5059_s28 + $0x30] sm:$0xff]  ;;  %v658_v36 = vld [vmem:[%s5059_s28 + $0x38] sm:$0xff]  ;;  %s6737_s28 = smov 80  }
  0x27   : > { %663 = vadd.xlane.f32.xlu0 %v662_v5  ;;  %v680_v13 = vsel %vm661_vm0, %v657_v12, 0.0  ;;  %v4576_v15 = vpop.eup %4575  ;;  %v683_v41 = vsel %vm661_vm0, %v658_v36, 0.0  ;;  %s6765_s8 = sld [smem:[#allocation15_spill]] }
  0x28   : > { %v687_v16 = vmul.f32 32.0, %v4576_v15  ;;  %vm691_vm1 = vweird.f32 %v4576_v15  ;;  %s6766_s9 = sld [smem:[#allocation16_spill]] }
  0x29   : > { %v4446_v58 = vld [vmem:[%s6755_s21 + $0x8] sm:$0xff]  ;;  %v4445_v62 = vld [vmem:[%s6755_s21] sm:$0xff] }
  0x2a   : > { %v688_v17 = vsub.f32 1.0, %v687_v16  ;;  %917 = vmatpush.bf16.msra.mxu0 %v4446_v58 }
  0x2c   : > { %v689_v18 = vmul.f32 %v4576_v15, %v688_v17 }
  0x2e   : > { %678 = vadd.xlane.f32.xlu2 %v677_v9  ;;  %672 = vadd.xlane.f32.xlu1 %v671_v10  ;;  %v690_v19 = vadd.f32 %v4576_v15, %v689_v18 }
  0x2f   : > { %666 = vadd.xlane.f32.xlu0 %v665_v11  ;;  %918 = vmatpush.bf16.msra.mxu0 %v4445_v62 }
  0x30   : > { %v5075_v20 = vsel %vm691_vm1, %v4576_v15, %v690_v19 }
  0x36   : > { %681 = vadd.xlane.f32.xlu2 %v680_v13 }
  0x99   : > { %v676_v21 = vpop.xlane.xlu2 %675  ;;  %v670_v22 = vpop.xlane.xlu1 %669 }
  0x9a   : > { %v664_v23 = vpop.xlane.xlu0 %663  ;;  %v697_v32 = vmul.f32 %v5075_v20, %v676_v21  ;;  %v695_v33 = vmul.f32 %v5075_v20, %v670_v22 }
  0x9b   : > { %v693_v24 = vmul.f32 %v5075_v20, %v664_v23 }
  0x9c   : > { %v5094_v39 = vsub.f32 %v655_v0, %v697_v32  ;;  %v5096_v40 = vsub.f32 %v653_v1, %v695_v33 }
  0x9d   : > { %v5078_v25 = vsub.f32 %v651_v2, %v693_v24 }
  0x9e   : > { %v713_v48 = vmul.f32 %v5094_v39, %v5094_v39  ;;  %v711_v49 = vmul.f32 %v5096_v40, %v5096_v40 }
  0x9f   : > { %v709_v26 = vmul.f32 %v5078_v25, %v5078_v25 }
  0xa0   : > { %v729_v53 = vsel %vm661_vm0, %v713_v48, 0.0  ;;  %v723_v54 = vsel %vm661_vm0, %v711_v49, 0.0 }
  0xa1   : > { %v679_v27 = vpop.xlane.xlu2 %678  ;;  %v673_v28 = vpop.xlane.xlu1 %672  ;;  %v717_v29 = vsel %vm661_vm0, %v709_v26, 0.0 }
  0xa2   : > { %v696_v30 = vmul.f32 %v5075_v20, %v673_v28  ;;  %718 = vadd.xlane.f32.xlu0 %v717_v29  ;;  %v667_v31 = vpop.xlane.xlu0 %666  ;;  %v698_v47 = vmul.f32 %v5075_v20, %v679_v27 }
  0xa3   : > { %v694_v34 = vmul.f32 %v5075_v20, %v667_v31 }
  0xa4   : > { %v5087_v35 = vsub.f32 %v654_v7, %v696_v30  ;;  %v5113_v52 = vsub.f32 %v656_v6, %v698_v47 }
  0xa5   : > { %v5090_v37 = vsub.f32 %v652_v8, %v694_v34 }
  0xa6   : > { %v712_v38 = vmul.f32 %v5087_v35, %v5087_v35  ;;  %v714_v56 = vmul.f32 %v5113_v52, %v5113_v52 }
  0xa7   : > { %v710_v42 = vmul.f32 %v5090_v37, %v5090_v37 }
  0xa8   : > { %v726_v43 = vsel %vm661_vm0, %v712_v38, 0.0  ;;  %v732_v57 = vsel %vm661_vm0, %v714_v56, 0.0 }
  0xa9   : > { %v682_v44 = vpop.xlane.xlu2 %681  ;;  %727 = vadd.xlane.f32.xlu2 %v726_v43  ;;  %v720_v45 = vsel %vm661_vm0, %v710_v42, 0.0 }
  0xaa   : > { %v699_v46 = vmul.f32 %v5075_v20, %v682_v44  ;;  %684 = vadd.xlane.f32.xlu0 %v683_v41  ;;  %721 = vadd.xlane.f32.xlu1 %v720_v45  ;;  %v5157_v45 = vld [vmem:[%s6758_s0] ss:$0 sm:$0xff]  ;;  %s6731_s0 = smov 96  }
  0xac   : > { %v5109_v50 = vsub.f32 %v657_v12, %v699_v46 }
  0xae   : > { %v715_v51 = vmul.f32 %v5109_v50, %v5109_v50 }
  0xb0   : > { %v735_v55 = vsel %vm661_vm0, %v715_v51, 0.0 }
  0xb1   : > { %736 = vadd.xlane.f32.xlu2 %v735_v55 }
  0xb2   : > { %730 = vadd.xlane.f32.xlu0 %v729_v53  ;;  %724 = vadd.xlane.f32.xlu1 %v723_v54  ;;  %v5164_v54 = vld [vmem:[%s6759_s23] ss:$0 sm:$0xff]  ;;  %s6735_s23 = smov 112  }
  0xba   : > { %733 = vadd.xlane.f32.xlu1 %v732_v57 }
 0x115   : > { %v719_v59 = vpop.xlane.xlu0 %718 }
 0x116   : > { %v741_v60 = vmul.f32 %v719_v59, %v5075_v20 }
 0x118   : > { %v749_v61 = vadd.f32 1e-12, %v741_v60 }
 0x11a   : > { %4577 = vrsqrt.f32 %v749_v61  ;;  %vm763_vm3 = vweird.f32 %v749_v61 }
 0x11c   : > { %v728_v63 = vpop.xlane.xlu2 %727 }
 0x11d   : > { %v744_v0 = vmul.f32 %v728_v63, %v5075_v20  ;;  %v722_v1 = vpop.xlane.xlu1 %721  ;;  %v685_v2 = vpop.xlane.xlu0 %684 }
 0x11e   : > { %v742_v3 = vmul.f32 %v722_v1, %v5075_v20  ;;  %v700_v4 = vmul.f32 %v5075_v20, %v685_v2 }
 0x11f   : > { %v5131_v5 = vadd.f32 1e-12, %v744_v0 }
 0x120   : > { %v4578_v6 = vpop.eup %4577  ;;  %v750_v7 = vadd.f32 1e-12, %v742_v3  ;;  %v5133_v8 = vsub.f32 %v658_v36, %v700_v4 }
 0x121   : > { %v758_v9 = vmul.f32 %v4578_v6, %v749_v61  ;;  %4579 = vrsqrt.f32 %v5131_v5  ;;  %vm764_vm2 = vweird.f32 %v4578_v6  ;;  %vm793_vm10 = vweird.f32 %v5131_v5 }
 0x122   : > { %4581 = vrsqrt.f32 %v750_v7  ;;  %v716_v10 = vmul.f32 %v5133_v8, %v5133_v8  ;;  %vm5145_vm4 = vmor %vm763_vm3, %vm764_vm2  ;;  %vm773_vm5 = vweird.f32 %v750_v7 }
 0x123   : > { %v759_v11 = vmul.f32 %v4578_v6, %v758_v9 }
 0x124   : > { %v738_v12 = vsel %vm661_vm0, %v716_v10, 0.0  ;;  %v737_v28 = vpop.xlane.xlu2 %736 }
 0x125   : > { %v760_v13 = vmul.f32 0.5, %v759_v11  ;;  %v725_v14 = vpop.xlane.xlu1 %724  ;;  %739 = vadd.xlane.f32.xlu0 %v738_v12  ;;  %v731_v16 = vpop.xlane.xlu0 %730 }
 0x126   : > { %v743_v15 = vmul.f32 %v725_v14, %v5075_v20  ;;  %v745_v23 = vmul.f32 %v731_v16, %v5075_v20 }
 0x127   : > { %v5140_v17 = vpop.eup %4579  ;;  %v761_v18 = vsub.f32 1.5, %v760_v13 }
 0x128   : > { %v4582_v19 = vpop.eup %4581  ;;  %v751_v21 = vadd.f32 1e-12, %v743_v15  ;;  %v788_v26 = vmul.f32 %v5140_v17, %v5131_v5  ;;  %v753_v30 = vadd.f32 1e-12, %v745_v23  ;;  %vm794_vm11 = vweird.f32 %v5140_v17 }
 0x129   : > { %v768_v22 = vmul.f32 %v4582_v19, %v750_v7  ;;  %v762_v24 = vmul.f32 %v4578_v6, %v761_v18  ;;  %vm774_vm6 = vweird.f32 %v4582_v19  ;;  %vm795_vm13 = vmor %vm793_vm10, %vm794_vm11  ;;  %vm976_vm11 = vcmask 130048  }
 0x12a   : > { %4583 = vrsqrt.f32 %v751_v21  ;;  %v789_v33 = vmul.f32 %v5140_v17, %v788_v26  ;;  %vm775_vm7 = vmor %vm773_vm5, %vm774_vm6  ;;  %vm783_vm8 = vweird.f32 %v751_v21  ;;  %vm803_vm1 = vweird.f32 %v753_v30 }
 0x12b   : > { %v769_v27 = vmul.f32 %v4582_v19, %v768_v22  ;;  %v766_v32 = vsel %vm5145_vm4, %v4578_v6, %v762_v24  ;;  %4585 = vrsqrt.f32 %v753_v30 }
 0x12c   : > { %v837_v44 = vmul.f32 %v766_v32, %v5078_v25  ;;  %v790_v46 = vmul.f32 0.5, %v789_v33 }
 0x12d   : > { %v770_v29 = vmul.f32 0.5, %v769_v27  ;;  %v734_v31 = vpop.xlane.xlu1 %733 }
 0x12e   : > { %v746_v34 = vmul.f32 %v734_v31, %v5075_v20  ;;  %v848_v53 = vmul.f32 %v5157_v45, %v837_v44  ;;  %v791_v25 = vsub.f32 1.5, %v790_v46 }
 0x12f   : > { %v771_v36 = vsub.f32 1.5, %v770_v29 }
 0x130   : > { %v4584_v38 = vpop.eup %4583  ;;  %v754_v41 = vadd.f32 1e-12, %v746_v34  ;;  %v5173_v60 = vadd.f32 %v5164_v54, %v848_v53  ;;  %v792_v61 = vmul.f32 %v5140_v17, %v791_v25 }
 0x131   : > { %v772_v42 = vmul.f32 %v4582_v19, %v771_v36  ;;  %v778_v43 = vmul.f32 %v4584_v38, %v751_v21  ;;  %vm784_vm9 = vweird.f32 %v4584_v38  ;;  %v4586_v56 = vpop.eup %4585 }
 0x132   : > { %4587 = vrsqrt.f32 %v754_v41  ;;  %vm785_vm12 = vmor %vm783_vm8, %vm784_vm9  ;;  %v798_v62 = vmul.f32 %v4586_v56, %v753_v30  ;;  %v796_v3 = vsel %vm795_vm13, %v5140_v17, %v792_v61  ;;  %vm813_vm14 = vweird.f32 %v754_v41 }
 0x133   : > { %v776_v47 = vsel %vm775_vm7, %v4582_v19, %v772_v42  ;;  %v779_v48 = vmul.f32 %v4584_v38, %v778_v43  ;;  %v840_v7 = vmul.f32 %v796_v3, %v5087_v35  ;;  %vm804_vm2 = vweird.f32 %v4586_v56 }
 0x134   : > { %v838_v49 = vmul.f32 %v776_v47, %v5090_v37  ;;  %v799_v4 = vmul.f32 %v4586_v56, %v798_v62  ;;  %vm805_vm4 = vmor %vm803_vm1, %vm804_vm2 }
 0x135   : > { %v780_v51 = vmul.f32 0.5, %v779_v48  ;;  %v851_v12 = vmul.f32 %v5157_v45, %v840_v7 }
 0x136   : > { %v849_v55 = vmul.f32 %v5157_v45, %v838_v49  ;;  %v800_v9 = vmul.f32 0.5, %v799_v4 }
 0x137   : > { %v781_v57 = vsub.f32 1.5, %v780_v51 }
 0x138   : > { %v5170_v37 = vadd.f32 %v5164_v54, %v849_v55  ;;  %v4588_v58 = vpop.eup %4587  ;;  %v801_v13 = vsub.f32 1.5, %v800_v9 }
 0x139   : > { %v782_v59 = vmul.f32 %v4584_v38, %v781_v57  ;;  %v808_v63 = vmul.f32 %v4588_v58, %v754_v41  ;;  %vm814_vm15 = vweird.f32 %v4588_v58 }
 0x13a   : > { %v875_v0 = vpack.c.bf16 %v5170_v37, %v5173_v60  ;;  %vm815_vm3 = vmor %vm813_vm14, %vm814_vm15  ;;  %v802_v35 = vmul.f32 %v4586_v56, %v801_v13 }
 0x13b   : > { %v786_v1 = vsel %vm785_vm12, %v4584_v38, %v782_v59  ;;  %v809_v2 = vmul.f32 %v4588_v58, %v808_v63  ;;  %vm1046_vm12 = vcmask 523264  }
 0x13c   : > { %4242 = vmatmul.msk.bf16.vlgmr.msra.gmra.mxu0 %vm661_vm0, %v875_v0  ;;  %v839_v5 = vmul.f32 %v786_v1, %v5096_v40  ;;  %v5188_v40 = vadd.f32 %v5164_v54, %v851_v12  ;;  %v806_v18 = vsel %vm805_vm4, %v4586_v56, %v802_v35 }
 0x13d   : > { %v810_v6 = vmul.f32 0.5, %v809_v2  ;;  %v841_v21 = vmul.f32 %v806_v18, %v5094_v39 }
 0x13e   : > { %v850_v10 = vmul.f32 %v5157_v45, %v839_v5 }
 0x13f   : > { %v811_v11 = vsub.f32 1.5, %v810_v6  ;;  %v852_v23 = vmul.f32 %v5157_v45, %v841_v21 }
 0x140   : > { %v5185_v14 = vadd.f32 %v5164_v54, %v850_v10 }
 0x141   : > { %v812_v15 = vmul.f32 %v4588_v58, %v811_v11  ;;  %v5201_v26 = vadd.f32 %v5164_v54, %v852_v23 }
 0x142   : > { %v876_v16 = vpack.c.bf16 %v5188_v40, %v5185_v14 }
 0x143   : > { %v816_v17 = vsel %vm815_vm3, %v4588_v58, %v812_v15 }
 0x144   : > { %v842_v19 = vmul.f32 %v816_v17, %v5113_v52  ;;  %v747_v52 = vmul.f32 %v737_v28, %v5075_v20 }
 0x146   : > { %v853_v22 = vmul.f32 %v5157_v45, %v842_v19  ;;  %v755_v29 = vadd.f32 1e-12, %v747_v52 }
 0x148   : > { %v5198_v24 = vadd.f32 %v5164_v54, %v853_v22  ;;  %4589 = vrsqrt.f32 %v755_v29  ;;  %vm823_vm5 = vweird.f32 %v755_v29 }
 0x14a   : > { %v877_v27 = vpack.c.bf16 %v5198_v24, %v5201_v26 }
 0x14c   : > { %4243 = vmatmul.msk.bf16.gmra.mxu0 %vm661_vm0, %v876_v16 }
 0x14e   : > { %v4590_v39 = vpop.eup %4589 }
 0x14f   : > { %v818_v30 = vmul.f32 %v4590_v39, %v755_v29  ;;  %vm824_vm6 = vweird.f32 %v4590_v39 }
 0x150   : > { %vm825_vm7 = vmor %vm823_vm5, %vm824_vm6 }
 0x151   : > { %v819_v31 = vmul.f32 %v4590_v39, %v818_v30 }
 0x153   : > { %v820_v36 = vmul.f32 0.5, %v819_v31 }
 0x155   : > { %v821_v38 = vsub.f32 1.5, %v820_v36 }
 0x157   : > { %v822_v42 = vmul.f32 %v4590_v39, %v821_v38 }
 0x159   : > { %v826_v46 = vsel %vm825_vm7, %v4590_v39, %v822_v42 }
 0x15a   : > { %v843_v49 = vmul.f32 %v826_v46, %v5109_v50 }
 0x15c   : > { %4244 = vmatmul.msk.bf16.gmra.mxu0 %vm661_vm0, %v877_v27  ;;  %v854_v55 = vmul.f32 %v5157_v45, %v843_v49 }
 0x15e   : > { %v5213_v57 = vadd.f32 %v5164_v54, %v854_v55 }
 0x198   : > { %v740_v32 = vpop.xlane.xlu0 %739 }
 0x199   : > { %v748_v33 = vmul.f32 %v740_v32, %v5075_v20 }
 0x19b   : > { %v756_v34 = vadd.f32 1e-12, %v748_v33 }
 0x19d   : > { %4591 = vrsqrt.f32 %v756_v34  ;;  %vm833_vm9 = vweird.f32 %v756_v34 }
 0x1a3   : > { %v4592_v41 = vpop.eup %4591 }
 0x1a4   : > { %v828_v43 = vmul.f32 %v4592_v41, %v756_v34  ;;  %vm834_vm8 = vweird.f32 %v4592_v41 }
 0x1a5   : > { %vm835_vm10 = vmor %vm833_vm9, %vm834_vm8 }
 0x1a6   : > { %v829_v44 = vmul.f32 %v4592_v41, %v828_v43 }
 0x1a8   : > { %v830_v47 = vmul.f32 0.5, %v829_v44 }
 0x1aa   : > { %v831_v48 = vsub.f32 1.5, %v830_v47 }
 0x1ac   : > { %v832_v51 = vmul.f32 %v4592_v41, %v831_v48 }
 0x1ae   : > { %v836_v53 = vsel %vm835_vm10, %v4592_v41, %v832_v51 }
 0x1af   : > { %v844_v25 = vmul.f32 %v836_v53, %v5133_v8  ;;  %v4557_v8 = vld [vmem:[%s6760_s5] ss:$0 sm:$0xff] }
 0x1b1   : > { %v855_v56 = vmul.f32 %v5157_v45, %v844_v25 }
 0x1b3   : > { %v5216_v58 = vadd.f32 %v5164_v54, %v855_v56 }
 0x1b5   : > { %v878_v59 = vpack.c.bf16 %v5216_v58, %v5213_v57 }
 0x1b7   : > { %4245 = vmatmul.msk.bf16.gmra.mxu0 %vm661_vm0, %v878_v59 }
 0x1b9   : > { %v920_v50 = vpop.f32.mrf.mxu0 }
 0x1ba   : > { %v921_v13 = vadd.f32 %v4557_v8, %v920_v50 }
 0x1bc   : > { %v940_v18 = vpack.c.bf16 %v921_v13, %v921_v13 }
 0x1be   : > { %v956_v21 = vunpack.c.l.b16 %v940_v18 }
 0x1c1   : > { %v922_v61 = vpop.f32.mrf.mxu0 }
 0x1c2   : > { %v923_v11 = vadd.f32 %v4557_v8, %v922_v61 }
 0x1c4   : > { %v941_v16 = vpack.c.bf16 %v923_v11, %v923_v11 }
 0x1c6   : > { %v957_v19 = vunpack.c.l.b16 %v941_v16 }
 0x1c8   : > { %v5232_v22 = vpack.c.b16 %v957_v19, %v956_v21 }
 0x1c9   : > { %v925_v62 = vpop.f32.mrf.mxu0 }
 0x1ca   : > { %v926_v63 = vadd.f32 %v4557_v8, %v925_v62 }
 0x1cc   : > { %v942_v0 = vpack.c.bf16 %v926_v63, %v926_v63 }
 0x1ce   : > { %v958_v3 = vunpack.c.l.b16 %v942_v0 }
 0x1d1   : > { %v927_v45 = vpop.f32.mrf.mxu0 }
 0x1d2   : > { %v928_v1 = vadd.f32 %v4557_v8, %v927_v45 }
 0x1d4   : > { %v943_v2 = vpack.c.bf16 %v928_v1, %v928_v1 }
 0x1d6   : > { %v959_v54 = vunpack.c.l.b16 %v943_v2 }
 0x1d8   : > { %v5224_v4 = vpack.c.b16 %v959_v54, %v958_v3 }
 0x1d9   : > { %v930_v5 = vpop.f32.mrf.mxu0 }
 0x1da   : > { %1202 = vrot.lane.b32.xlu0 %v5224_v4, %s6737_s28  ;;  %v931_v6 = vadd.f32 %v4557_v8, %v930_v5 }
 0x1dc   : > { %v944_v9 = vpack.c.bf16 %v931_v6, %v931_v6 }
 0x1de   : > { %v960_v15 = vunpack.c.l.b16 %v944_v9 }
 0x1e1   : > { %v932_v7 = vpop.f32.mrf.mxu0 }
 0x1e2   : > { %v933_v10 = vadd.f32 %v4557_v8, %v932_v7 }
 0x1e4   : > { %v945_v12 = vpack.c.bf16 %v933_v10, %v933_v10 }
 0x1e6   : > { %v961_v35 = vunpack.c.l.b16 %v945_v12 }
 0x1e8   : > { %v5228_v17 = vpack.c.b16 %v961_v35, %v960_v15 }
 0x1ea   : > { %1204 = vrot.lane.b32.xlu2 %v5228_v17, %s6737_s28 }
 0x1f2   : > { %1200 = vrot.lane.b32.xlu2 %v5232_v22, %s6737_s28 }
 0x1fa   : > { %972 = vrot.lane.b32.xlu2 %v5228_v17, %s6731_s0 }
 0x202   : > { %968 = vrot.lane.b32.xlu2 %v5232_v22, %s6731_s0 }
 0x20a   : > { %1369 = vrot.lane.b32.xlu2 %v5232_v22, %s6733_s25 }
 0x234   : > { %v935_v23 = vpop.f32.mrf.mxu0 }
 0x235   : > { %v936_v27 = vadd.f32 %v4557_v8, %v935_v23 }
 0x237   : > { %v946_v52 = vpack.c.bf16 %v936_v27, %v936_v27 }
 0x239   : > { %v962_v30 = vunpack.c.l.b16 %v946_v52 }
 0x23c   : > { %v937_v28 = vpop.f32.mrf.mxu0 }
 0x23d   : > { %v938_v29 = vadd.f32 %v4557_v8, %v937_v28 }
 0x23f   : > { %v947_v39 = vpack.c.bf16 %v938_v29, %v938_v29 }
 0x241   : > { %v963_v31 = vunpack.c.l.b16 %v947_v39 }
 0x243   : > { %v967_v32 = vpack.c.b16 %v963_v31, %v962_v30 }
 0x244   : > { %v1205_v33 = vpop.permute.xlu2 %1204 }
 0x245   : > { %1375 = vrot.lane.b32.xlu2 %v967_v32, %s6733_s25  ;;  %974 = vrot.lane.b32.xlu0 %v967_v32, %s6731_s0  ;;  %v1227_v25 = vsel %vm976_vm11, %v1205_v33, 0 }
 0x246   : > { %1206 = vrot.lane.b32.xlu1 %v967_v32, %s6737_s28 }
 0x24c   : > { %v1201_v34 = vpop.permute.xlu2 %1200  ;;  %v1203_v44 = vpop.permute.xlu0 %1202 }
 0x24d   : > { %1145 = vrot.lane.b32.xlu2 %v967_v32, %s4895_s26  ;;  %970 = vrot.lane.b32.xlu0 %v5224_v4, %s6731_s0  ;;  %v1224_v50 = vsel %vm976_vm11, %v1203_v44, 0  ;;  %v1221_v8 = vsel %vm976_vm11, %v1201_v34, 0  ;;  %s6767_s0 = smov 80  }
 0x24e   : > { %1192 = vrot.lane.b32.xlu1 %v5232_v22, %s6735_s23 }
 0x254   : > { %v973_v36 = vpop.permute.xlu2 %972 }
 0x255   : > { %1198 = vrot.lane.b32.xlu0 %v967_v32, %s6735_s23  ;;  %v996_v53 = vsel %vm976_vm11, %v973_v36, 0 }
 0x256   : > { %1194 = vrot.lane.b32.xlu1 %v5224_v4, %s6735_s23 }
 0x25c   : > { %v969_v38 = vpop.permute.xlu2 %968 }
 0x25d   : > { %1371 = vrot.lane.b32.xlu0 %v5224_v4, %s6733_s25  ;;  %v990_v62 = vsel %vm976_vm11, %v969_v38, 0 }
 0x25e   : > { %1196 = vrot.lane.b32.xlu1 %v5228_v17, %s6735_s23  ;;  %s6761_s23 = sld [smem:[#allocation8_spill]] }
 0x264   : > { %v1370_v41 = vpop.permute.xlu2 %1369  ;;  %s5283_s28 = scalar_lea.vmem %s6761_s23, %s4444_s27  ;;  %s6769_s23 = smov 48  }
 0x265   : > { %v867_v2 = vld [vmem:[%s5283_s28] sm:$0xff]  ;;  %v868_v10 = vld [vmem:[%s5283_s28 + $0x8] sm:$0xff]  ;;  %v869_v28 = vld [vmem:[%s5283_s28 + $0x10] sm:$0xff]  ;;  %s6770_s27 = smov 96  }
 0x266   : > { %1373 = vrot.lane.b32.xlu1 %v5228_v17, %s6733_s25  ;;  %v870_v36 = vld [vmem:[%s5283_s28 + $0x18] sm:$0xff]  ;;  %s6768_s25 = smov 112  }
 0x29f   : > { %v1376_v42 = vpop.permute.xlu2 %1375 }
 0x2a0   : > { %1397 = vmatpush.bf16.msrb.mxu0 %v1376_v42 }
 0x2a7   : > { %v1146_v43 = vpop.permute.xlu2 %1145 }
 0x2a8   : > { %1167 = vmatpush.bf16.msra.mxu2 %v1146_v43 }
 0x2b7   : > { %v975_v46 = vpop.permute.xlu0 %974 }
 0x2b8   : > { %v1207_v47 = vpop.permute.xlu1 %1206  ;;  %v999_v48 = vsel %vm976_vm11, %v975_v46, 0 }
 0x2b9   : > { %1005 = vmatpush.bf16.xpose.msra.mxu1 %v999_v48  ;;  %v1230_v49 = vsel %vm976_vm11, %v1207_v47, 0 }
 0x2ba   : > { %1236 = vmatpush.bf16.xpose.msra.mxu3 %v1230_v49  ;;  %v871_v49 = vld [vmem:[%s5283_s28 + $0x20] sm:$0xff] }
 0x2bf   : > { %v971_v55 = vpop.permute.xlu0 %970 }
 0x2c0   : > { %v1193_v51 = vpop.permute.xlu1 %1192  ;;  %v993_v59 = vsel %vm976_vm11, %v971_v55, 0 }
 0x2c1   : > { %1006 = vmatpush.bf16.xpose.msra.mxu1 %v996_v53 }
 0x2c2   : > { %1237 = vmatpush.bf16.xpose.msra.mxu3 %v1227_v25 }
 0x2c7   : > { %v1199_v63 = vpop.permute.xlu0 %1198 }
 0x2c8   : > { %v1195_v56 = vpop.permute.xlu1 %1194 }
 0x2c9   : > { %1007 = vmatpush.bf16.xpose.msra.mxu1 %v993_v59 }
 0x2ca   : > { %1238 = vmatpush.bf16.xpose.msra.mxu3 %v1224_v50 }
 0x2cf   : > { %v1372_v0 = vpop.permute.xlu0 %1371 }
 0x2d0   : > { %v1197_v61 = vpop.permute.xlu1 %1196 }
 0x2d1   : > { %1008 = vmatpush.bf16.xpose.msra.mxu1 %v990_v62 }
 0x2d2   : > { %1239 = vmatpush.bf16.xpose.msra.mxu3 %v1221_v8 }
 0x2d8   : > { %v1374_v45 = vpop.permute.xlu1 %1373  ;;  %4246 = vmatmul.msk.bf16.vlgmr.msra.gmra.mxu1 %vm976_vm11, %v5232_v22 }
 0x2d9   : > { %4254 = vmatmul.msk.bf16.vlgmr.msra.gmra.mxu3 %vm976_vm11, %v1193_v51  ;;  %1398 = vmatpush.bf16.msrb.mxu0 %v1374_v45 }
 0x2dd   : > { %1399 = vmatpush.bf16.msrb.mxu0 %v1372_v0 }
 0x2e1   : > { %1400 = vmatpush.bf16.msrb.mxu0 %v1370_v41 }
 0x2e8   : > { %4247 = vmatmul.msk.bf16.gmra.mxu1 %vm976_vm11, %v5224_v4 }
 0x2e9   : > { %4255 = vmatmul.msk.bf16.gmra.mxu3 %vm976_vm11, %v1195_v56  ;;  %v872_v56 = vld [vmem:[%s5283_s28 + $0x28] sm:$0xff] }
 0x2f8   : > { %4248 = vmatmul.msk.bf16.gmra.mxu1 %vm976_vm11, %v5228_v17 }
 0x2f9   : > { %4256 = vmatmul.msk.bf16.gmra.mxu3 %vm976_vm11, %v1197_v61 }
 0x308   : > { %4249 = vmatmul.msk.bf16.gmra.mxu1 %vm976_vm11, %v967_v32 }
 0x309   : > { %4257 = vmatmul.msk.bf16.gmra.mxu3 %vm976_vm11, %v1199_v63 }
 0x355   : > { %v1010_v1 = vpop.f32.mrf.mxu1 }
 0x356   : > { %v1030_v3 = vmul.f32 0.25, %v1010_v1 }
 0x358   : > { %v5286_v54 = vadd.f32 %v1030_v3, %v867_v2 }
 0x35a   : > { %v1047_v5 = vsel %vm1046_vm12, %v5286_v54, -inf }
 0x35b   : > { %1048 = vmax.xlane.f32.xlu2 %v1047_v5 }
 0x35c   : > { %v1241_v6 = vpop.f32.mrf.mxu3 }
 0x35d   : > { %v1261_v7 = vmul.f32 0.25, %v1241_v6  ;;  %v1012_v9 = vpop.f32.mrf.mxu1  ;;  %v873_v6 = vld [vmem:[%s5283_s28 + $0x30] sm:$0xff] }
 0x35e   : > { %v1031_v11 = vmul.f32 0.25, %v1012_v9 }
 0x35f   : > { %v5291_v12 = vadd.f32 %v1261_v7, %v867_v2 }
 0x360   : > { %v5293_v13 = vadd.f32 %v1031_v11, %v868_v10 }
 0x361   : > { %v1277_v15 = vsel %vm1046_vm12, %v5291_v12, -inf }
 0x362   : > { %v1050_v35 = vsel %vm1046_vm12, %v5293_v13, -inf }
 0x363   : > { %1278 = vmax.xlane.f32.xlu2 %v1277_v15  ;;  %1051 = vmax.xlane.f32.xlu1 %v1050_v35 }
 0x364   : > { %v1243_v16 = vpop.f32.mrf.mxu3 }
 0x365   : > { %v1262_v18 = vmul.f32 0.25, %v1243_v16  ;;  %v1015_v19 = vpop.f32.mrf.mxu1 }
 0x366   : > { %v1032_v23 = vmul.f32 0.25, %v1015_v19 }
 0x367   : > { %v5299_v21 = vadd.f32 %v1262_v18, %v868_v10  ;;  %v874_v10 = vld [vmem:[%s5283_s28 + $0x38] sm:$0xff] }
 0x368   : > { %v5304_v30 = vadd.f32 %v1032_v23, %v869_v28 }
 0x369   : > { %v1280_v27 = vsel %vm1046_vm12, %v5299_v21, -inf }
 0x36a   : > { %v1053_v34 = vsel %vm1046_vm12, %v5304_v30, -inf }
 0x36b   : > { %1281 = vmax.xlane.f32.xlu1 %v1280_v27 }
 0x36c   : > { %v1246_v52 = vpop.f32.mrf.mxu3 }
 0x36d   : > { %v1263_v29 = vmul.f32 0.25, %v1246_v52  ;;  %v1017_v39 = vpop.f32.mrf.mxu1 }
 0x36e   : > { %v1033_v32 = vmul.f32 0.25, %v1017_v39 }
 0x36f   : > { %v5306_v31 = vadd.f32 %v1263_v29, %v869_v28 }
 0x370   : > { %v5313_v43 = vadd.f32 %v1033_v32, %v870_v36 }
 0x371   : > { %v1283_v33 = vsel %vm1046_vm12, %v5306_v31, -inf }
 0x372   : > { %1284 = vmax.xlane.f32.xlu0 %v1283_v33  ;;  %v1056_v48 = vsel %vm1046_vm12, %v5313_v43, -inf }
 0x373   : > { %1054 = vmax.xlane.f32.xlu1 %v1053_v34 }
 0x374   : > { %v1248_v38 = vpop.f32.mrf.mxu3 }
 0x375   : > { %v1264_v41 = vmul.f32 0.25, %v1248_v38  ;;  %v1020_v42 = vpop.f32.mrf.mxu1 }
 0x376   : > { %v1034_v46 = vmul.f32 0.25, %v1020_v42 }
 0x377   : > { %v5315_v44 = vadd.f32 %v1264_v41, %v870_v36 }
 0x378   : > { %v5322_v55 = vadd.f32 %v1034_v46, %v871_v49 }
 0x379   : > { %v1286_v47 = vsel %vm1046_vm12, %v5315_v44, -inf }
 0x37a   : > { %1287 = vmax.xlane.f32.xlu2 %v1286_v47  ;;  %1057 = vmax.xlane.f32.xlu0 %v1056_v48  ;;  %v1059_v8 = vsel %vm1046_vm12, %v5322_v55, -inf }
 0x37c   : > { %v1251_v51 = vpop.f32.mrf.mxu3 }
 0x37d   : > { %v1265_v53 = vmul.f32 0.25, %v1251_v51  ;;  %v1022_v25 = vpop.f32.mrf.mxu1 }
 0x37e   : > { %v1035_v59 = vmul.f32 0.25, %v1022_v25 }
 0x37f   : > { %v5325_v50 = vadd.f32 %v1265_v53, %v871_v49 }
 0x380   : > { %v5327_v61 = vadd.f32 %v1035_v59, %v872_v56 }
 0x381   : > { %v1289_v62 = vsel %vm1046_vm12, %v5325_v50, -inf }
 0x382   : > { %1290 = vmax.xlane.f32.xlu1 %v1289_v62  ;;  %1060 = vmax.xlane.f32.xlu2 %v1059_v8  ;;  %v1062_v63 = vsel %vm1046_vm12, %v5327_v61, -inf }
 0x383   : > { %1063 = vmax.xlane.f32.xlu0 %v1062_v63 }
 0x384   : > { %v1253_v45 = vpop.f32.mrf.mxu3 }
 0x385   : > { %v1266_v0 = vmul.f32 0.25, %v1253_v45  ;;  %v1025_v1 = vpop.f32.mrf.mxu1 }
 0x386   : > { %v1036_v3 = vmul.f32 0.25, %v1025_v1 }
 0x387   : > { %v5335_v2 = vadd.f32 %v1266_v0, %v872_v56 }
 0x388   : > { %v5341_v15 = vadd.f32 %v1036_v3, %v873_v6 }
 0x389   : > { %v1292_v5 = vsel %vm1046_vm12, %v5335_v2, -inf }
 0x38a   : > { %v1065_v18 = vsel %vm1046_vm12, %v5341_v15, -inf }
 0x38b   : > { %1293 = vmax.xlane.f32.xlu0 %v1292_v5 }
 0x38c   : > { %v1256_v7 = vpop.f32.mrf.mxu3 }
 0x38d   : > { %v1027_v9 = vpop.f32.mrf.mxu1  ;;  %v1267_v16 = vmul.f32 0.25, %v1256_v7 }
 0x38e   : > { %v1037_v11 = vmul.f32 0.25, %v1027_v9 }
 0x38f   : > { %v5349_v28 = vadd.f32 %v1267_v16, %v873_v6 }
 0x390   : > { %v5343_v35 = vadd.f32 %v1037_v11, %v874_v10 }
 0x391   : > { %v1295_v39 = vsel %vm1046_vm12, %v5349_v28, -inf }
 0x392   : > { %v1068_v19 = vsel %vm1046_vm12, %v5343_v35, -inf }
 0x393   : > { %1066 = vmax.xlane.f32.xlu0 %v1065_v18  ;;  %1069 = vmax.xlane.f32.xlu1 %v1068_v19 }
 0x394   : > { %v1258_v23 = vpop.f32.mrf.mxu3 }
 0x395   : > { %v1268_v27 = vmul.f32 0.25, %v1258_v23 }
 0x397   : > { %v5351_v52 = vadd.f32 %v1268_v27, %v874_v10 }
 0x399   : > { %v1298_v29 = vsel %vm1046_vm12, %v5351_v52, -inf }
 0x39a   : > { %1299 = vmax.xlane.f32.xlu2 %v1298_v29 }
 0x39b   : > { %1296 = vmax.xlane.f32.xlu0 %v1295_v39 }
 0x3ce   : > { %v1049_v32 = vpop.xlane.xlu2 %1048 }
 0x3cf   : > { %v1071_v33 = vsub.f32 %v5286_v54, %v1049_v32 }
 0x3d1   : > { %v1079_v34 = vmul.f32 1.442695, %v1071_v33 }
 0x3d3   : > { %4593 = vpow2.f32 %v1079_v34 }
 0x3d6   : > { %v1279_v36 = vpop.xlane.xlu2 %1278  ;;  %v1052_v38 = vpop.xlane.xlu1 %1051 }
 0x3d7   : > { %v1301_v41 = vsub.f32 %v5291_v12, %v1279_v36  ;;  %v1072_v47 = vsub.f32 %v5293_v13, %v1052_v38 }
 0x3d9   : > { %v5359_v42 = vpop.eup %4593  ;;  %v1309_v46 = vmul.f32 1.442695, %v1301_v41  ;;  %v1081_v49 = vmul.f32 1.442695, %v1072_v47 }
 0x3da   : > { %v1095_v48 = vsel %vm1046_vm12, %v5359_v42, 0.0 }
 0x3db   : > { %4595 = vpow2.f32 %v1309_v46  ;;  %1096 = vadd.xlane.f32.xlu0 %v1095_v48 }
 0x3dc   : > { %4597 = vpow2.f32 %v1081_v49 }
 0x3de   : > { %v1282_v51 = vpop.xlane.xlu1 %1281 }
 0x3df   : > { %v1302_v54 = vsub.f32 %v5299_v21, %v1282_v51 }
 0x3e1   : > { %v5365_v53 = vpop.eup %4595  ;;  %v1311_v25 = vmul.f32 1.442695, %v1302_v54 }
 0x3e2   : > { %v1325_v12 = vsel %vm1046_vm12, %v5365_v53, 0.0  ;;  %v5370_v59 = vpop.eup %4597 }
 0x3e3   : > { %4599 = vpow2.f32 %v1311_v25  ;;  %1326 = vadd.xlane.f32.xlu1 %v1325_v12  ;;  %v1098_v21 = vsel %vm1046_vm12, %v5370_v59, 0.0 }
 0x3e5   : > { %v1285_v56 = vpop.xlane.xlu0 %1284 }
 0x3e6   : > { %v1303_v13 = vsub.f32 %v5306_v31, %v1285_v56  ;;  %v1055_v45 = vpop.xlane.xlu1 %1054 }
 0x3e8   : > { %v1313_v62 = vmul.f32 1.442695, %v1303_v13 }
 0x3e9   : > { %v5372_v8 = vpop.eup %4599 }
 0x3ea   : > { %4601 = vpow2.f32 %v1313_v62  ;;  %v1328_v63 = vsel %vm1046_vm12, %v5372_v8, 0.0 }
 0x3eb   : > { %1099 = vadd.xlane.f32.xlu1 %v1098_v21  ;;  %1329 = vadd.xlane.f32.xlu0 %v1328_v63 }
 0x3ed   : > { %v1288_v0 = vpop.xlane.xlu2 %1287  ;;  %v1058_v3 = vpop.xlane.xlu0 %1057 }
 0x3ee   : > { %v1304_v1 = vsub.f32 %v5315_v44, %v1288_v0  ;;  %v1074_v46 = vsub.f32 %v5313_v43, %v1058_v3  ;;  %v1073_v43 = vsub.f32 %v5304_v30, %v1055_v45 }
 0x3f0   : > { %v5379_v31 = vpop.eup %4601  ;;  %v1315_v5 = vmul.f32 1.442695, %v1304_v1 }
 0x3f1   : > { %v1331_v6 = vsel %vm1046_vm12, %v5379_v31, 0.0 }
 0x3f2   : > { %4603 = vpow2.f32 %v1315_v5 }
 0x3f3   : > { %1332 = vadd.xlane.f32.xlu1 %v1331_v6 }
 0x3f5   : > { %v1291_v7 = vpop.xlane.xlu1 %1290  ;;  %v1061_v32 = vpop.xlane.xlu2 %1060 }
 0x3f6   : > { %v1305_v9 = vsub.f32 %v5325_v50, %v1291_v7  ;;  %v1064_v10 = vpop.xlane.xlu0 %1063  ;;  %v1075_v48 = vsub.f32 %v5322_v55, %v1061_v32 }
 0x3f8   : > { %v5384_v11 = vpop.eup %4603  ;;  %v1317_v16 = vmul.f32 1.442695, %v1305_v9  ;;  %v1087_v49 = vmul.f32 1.442695, %v1075_v48 }
 0x3f9   : > { %v1334_v18 = vsel %vm1046_vm12, %v5384_v11, 0.0 }
 0x3fa   : > { %4605 = vpow2.f32 %v1317_v16  ;;  %1335 = vadd.xlane.f32.xlu2 %v1334_v18 }
 0x3fe   : > { %v1294_v44 = vpop.xlane.xlu0 %1293 }
 0x3ff   : > { %v1306_v19 = vsub.f32 %v5335_v2, %v1294_v44 }
 0x400   : > { %v5389_v23 = vpop.eup %4605 }
 0x401   : > { %v1319_v27 = vmul.f32 1.442695, %v1306_v19  ;;  %v1337_v29 = vsel %vm1046_vm12, %v5389_v23, 0.0 }
 0x402   : > { %1338 = vadd.xlane.f32.xlu0 %v1337_v29 }
 0x403   : > { %4607 = vpow2.f32 %v1319_v27 }
 0x406   : > { %v1067_v2 = vpop.xlane.xlu0 %1066  ;;  %v1070_v51 = vpop.xlane.xlu1 %1069 }
 0x407   : > { %v1078_v55 = vsub.f32 %v5343_v35, %v1070_v51  ;;  %v1077_v30 = vsub.f32 %v5341_v15, %v1067_v2 }
 0x409   : > { %v5393_v50 = vpop.eup %4607  ;;  %v1093_v56 = vmul.f32 1.442695, %v1078_v55  ;;  %v1091_v63 = vmul.f32 1.442695, %v1077_v30 }
 0x40a   : > { %v1340_v39 = vsel %vm1046_vm12, %v5393_v50, 0.0 }
 0x40b   : > { %1341 = vadd.xlane.f32.xlu1 %v1340_v39 }
 0x40d   : > { %v1300_v36 = vpop.xlane.xlu2 %1299 }
 0x40e   : > { %v1297_v33 = vpop.xlane.xlu0 %1296  ;;  %v1308_v41 = vsub.f32 %v5351_v52, %v1300_v36 }
 0x40f   : > { %v1307_v34 = vsub.f32 %v5349_v28, %v1297_v33 }
 0x410   : > { %v1323_v47 = vmul.f32 1.442695, %v1308_v41 }
 0x411   : > { %v1321_v38 = vmul.f32 1.442695, %v1307_v34 }
 0x412   : > { %1139 = vrot.lane.b32.xlu2 %v5232_v22, %s4895_s26  ;;  %v1085_v22 = vmul.f32 1.442695, %v1074_v46 }
 0x413   : > { %4609 = vpow2.f32 %v1321_v38 }
 0x414   : > { %4611 = vpow2.f32 %v1323_v47 }
 0x415   : > { %4613 = vpow2.f32 %v1085_v22 }
 0x416   : > { %1143 = vrot.lane.b32.xlu0 %v5228_v17, %s4895_s26  ;;  %4615 = vpow2.f32 %v1087_v49 }
 0x419   : > { %v5407_v17 = vpop.eup %4609 }
 0x41a   : > { %v1343_v28 = vsel %vm1046_vm12, %v5407_v17, 0.0  ;;  %v5412_v52 = vpop.eup %4611 }
 0x41b   : > { %v5416_v25 = vpop.eup %4613  ;;  %v1346_v12 = vsel %vm1046_vm12, %v5412_v52, 0.0 }
 0x41c   : > { %v1104_v13 = vsel %vm1046_vm12, %v5416_v25, 0.0  ;;  %v5422_v62 = vpop.eup %4615 }
 0x41d   : > { %v1107_v21 = vsel %vm1046_vm12, %v5422_v62, 0.0 }
 0x424   : > { %1141 = vrot.lane.b32.xlu1 %v5224_v4, %s4895_s26  ;;  %v1076_v4 = vsub.f32 %v5327_v61, %v1064_v10  ;;  %v1083_v61 = vmul.f32 1.442695, %v1073_v43 }
 0x426   : > { %v1089_v54 = vmul.f32 1.442695, %v1076_v4 }
 0x428   : > { %4617 = vpow2.f32 %v1089_v54 }
 0x429   : > { %4619 = vpow2.f32 %v1083_v61 }
 0x42a   : > { %4621 = vpow2.f32 %v1093_v56 }
 0x42b   : > { %4623 = vpow2.f32 %v1091_v63 }
 0x42e   : > { %v5425_v35 = vpop.eup %4617 }
 0x42f   : > { %v5429_v45 = vpop.eup %4619  ;;  %v1110_v0 = vsel %vm1046_vm12, %v5425_v35, 0.0 }
 0x430   : > { %v5433_v1 = vpop.eup %4621  ;;  %v1101_v15 = vsel %vm1046_vm12, %v5429_v45, 0.0 }
 0x431   : > { %v1116_v3 = vsel %vm1046_vm12, %v5433_v1, 0.0  ;;  %v5439_v5 = vpop.eup %4623 }
 0x432   : > { %v1113_v6 = vsel %vm1046_vm12, %v5439_v5, 0.0 }
 0x43b   : > { %1344 = vadd.xlane.f32.xlu2 %v1343_v28 }
 0x440   : > { %1347 = vadd.xlane.f32.xlu0 %v1346_v12 }
 0x443   : > { %1105 = vadd.xlane.f32.xlu2 %v1104_v13 }
 0x448   : > { %1108 = vadd.xlane.f32.xlu0 %v1107_v21 }
 0x44b   : > { %1111 = vadd.xlane.f32.xlu2 %v1110_v0 }
 0x44e   : > { %1102 = vadd.xlane.f32.xlu1 %v1101_v15  ;;  %v1097_v7 = vpop.xlane.xlu0 %1096 }
 0x450   : > { %1117 = vadd.xlane.f32.xlu0 %v1116_v3 }
 0x456   : > { %v1327_v9 = vpop.xlane.xlu1 %1326  ;;  %1114 = vadd.xlane.f32.xlu1 %v1113_v6 }
 0x457   : > { %4625 = vrcp.f32 %v1327_v9 }
 0x45d   : > { %v4626_v18 = vpop.eup %4625 }
 0x45e   : > { %v1330_v10 = vpop.xlane.xlu0 %1329  ;;  %v1100_v16 = vpop.xlane.xlu1 %1099  ;;  %v1357_v19 = vmul.f32 %v4626_v18, %v5365_v53 }
 0x45f   : > { %4627 = vrcp.f32 %v1330_v10 }
 0x465   : > { %v4628_v44 = vpop.eup %4627 }
 0x466   : > { %v1358_v27 = vmul.f32 %v4628_v44, %v5372_v8  ;;  %v1333_v39 = vpop.xlane.xlu1 %1332 }
 0x467   : > { %4629 = vrcp.f32 %v1333_v39 }
 0x468   : > { %v1365_v29 = vpack.c.bf16 %v1358_v27, %v1357_v19 }
 0x46a   : > { %4258 = vmatmul.msk.bf16.vlgmr.msrb.gmra.mxu0 %vm1046_vm12, %v1365_v29 }
 0x46d   : > { %v1336_v2 = vpop.xlane.xlu2 %1335  ;;  %v4630_v32 = vpop.eup %4629 }
 0x46e   : > { %4631 = vrcp.f32 %v1336_v2  ;;  %v1359_v36 = vmul.f32 %v4630_v32, %v5379_v31 }
 0x474   : > { %v4632_v33 = vpop.eup %4631 }
 0x475   : > { %v1360_v34 = vmul.f32 %v4632_v33, %v5384_v11  ;;  %v1339_v41 = vpop.xlane.xlu0 %1338  ;;  %v1140_v51 = vpop.permute.xlu2 %1139 }
 0x476   : > { %4633 = vrcp.f32 %v1339_v41 }
 0x477   : > { %v1366_v38 = vpack.c.bf16 %v1360_v34, %v1359_v36  ;;  %v4447_v36 = vld [vmem:[%s6762_s6] sm:$0xff] }
 0x47a   : > { %4259 = vmatmul.msk.bf16.gmra.mxu0 %vm1046_vm12, %v1366_v38 }
 0x47c   : > { %v4634_v8 = vpop.eup %4633 }
 0x47d   : > { %v1361_v47 = vmul.f32 %v4634_v8, %v5389_v23 }
 0x47e   : > { %v1342_v53 = vpop.xlane.xlu1 %1341 }
 0x47f   : > { %4635 = vrcp.f32 %v1342_v53 }
 0x480   : > { %4637 = vrcp.f32 %v1100_v16 }
 0x481   : > { %4639 = vrcp.f32 %v1097_v7 }
 0x485   : > { %v4636_v46 = vpop.eup %4635 }
 0x486   : > { %v1362_v22 = vmul.f32 %v4636_v46, %v5393_v50  ;;  %v4638_v31 = vpop.eup %4637 }
 0x487   : > { %v4640_v49 = vpop.eup %4639  ;;  %v1128_v28 = vmul.f32 %v4638_v31, %v5370_v59 }
 0x488   : > { %v1144_v48 = vpop.permute.xlu0 %1143  ;;  %v1367_v4 = vpack.c.bf16 %v1362_v22, %v1361_v47  ;;  %v1127_v43 = vmul.f32 %v4640_v49, %v5359_v42 }
 0x489   : > { %1168 = vmatpush.bf16.msra.mxu2 %v1144_v48 }
 0x48a   : > { %4260 = vmatmul.msk.bf16.gmra.mxu0 %vm1046_vm12, %v1367_v4  ;;  %v1135_v23 = vpack.c.bf16 %v1128_v28, %v1127_v43 }
 0x496   : > { %v1142_v11 = vpop.permute.xlu1 %1141 }
 0x497   : > { %1169 = vmatpush.bf16.msra.mxu2 %v1142_v11 }
 0x49b   : > { %1170 = vmatpush.bf16.msra.mxu2 %v1140_v51 }
 0x49e   : > { %4250 = vmatmul.msk.bf16.vlgmr.msra.gmra.mxu2 %vm1046_vm12, %v1135_v23 }
 0x4ae   : > { %v1345_v50 = vpop.xlane.xlu2 %1344 }
 0x4af   : > { %4641 = vrcp.f32 %v1345_v50 }
 0x4b3   : > { %v1348_v54 = vpop.xlane.xlu0 %1347 }
 0x4b4   : > { %4643 = vrcp.f32 %v1348_v54 }
 0x4b5   : > { %v4642_v55 = vpop.eup %4641 }
 0x4b6   : > { %v1363_v61 = vmul.f32 %v4642_v55, %v5407_v17  ;;  %v1106_v13 = vpop.xlane.xlu2 %1105 }
 0x4b7   : > { %4645 = vrcp.f32 %v1106_v13 }
 0x4ba   : > { %v4644_v12 = vpop.eup %4643 }
 0x4bb   : > { %v1364_v56 = vmul.f32 %v4644_v12, %v5412_v52  ;;  %v1109_v6 = vpop.xlane.xlu0 %1108 }
 0x4bd   : > { %v1368_v30 = vpack.c.bf16 %v1364_v56, %v1363_v61  ;;  %v4646_v59 = vpop.eup %4645 }
 0x4be   : > { %v1130_v0 = vmul.f32 %v4646_v59, %v5416_v25  ;;  %v1112_v15 = vpop.xlane.xlu2 %1111 }
 0x4bf   : > { %4261 = vmatmul.msk.bf16.gmra.mxu0 %vm1046_vm12, %v1368_v30 }
 0x4c1   : > { %v1103_v42 = vpop.xlane.xlu1 %1102 }
 0x4c2   : > { %4647 = vrcp.f32 %v1103_v42 }
 0x4c3   : > { %4649 = vrcp.f32 %v1112_v15  ;;  %v1118_v18 = vpop.xlane.xlu0 %1117 }
 0x4c4   : > { %4651 = vrcp.f32 %v1109_v6 }
 0x4c8   : > { %v4648_v21 = vpop.eup %4647 }
 0x4c9   : > { %v1129_v63 = vmul.f32 %v4648_v21, %v5429_v45  ;;  %v4650_v17 = vpop.eup %4649  ;;  %v1115_v10 = vpop.xlane.xlu1 %1114 }
 0x4ca   : > { %v4652_v52 = vpop.eup %4651  ;;  %v1132_v7 = vmul.f32 %v4650_v17, %v5425_v35  ;;  %4653 = vrcp.f32 %v1115_v10 }
 0x4cb   : > { %v1136_v3 = vpack.c.bf16 %v1130_v0, %v1129_v63  ;;  %v1131_v9 = vmul.f32 %v4652_v52, %v5422_v62  ;;  %4655 = vrcp.f32 %v1118_v18 }
 0x4cd   : > { %4251 = vmatmul.msk.bf16.gmra.mxu2 %vm1046_vm12, %v1136_v3  ;;  %v1137_v16 = vpack.c.bf16 %v1132_v7, %v1131_v9  ;;  %v4558_v9 = vld [vmem:[%s6763_s7] ss:$0 sm:$0xff] }
 0x4d0   : > { %v4654_v25 = vpop.eup %4653 }
 0x4d1   : > { %v4656_v45 = vpop.eup %4655  ;;  %v1133_v44 = vmul.f32 %v4654_v25, %v5439_v5  ;;  %v4448_v5 = vld [vmem:[%s6762_s6 + $0x8] sm:$0xff] }
 0x4d2   : > { %v1134_v27 = vmul.f32 %v4656_v45, %v5433_v1  ;;  %1504 = vmatpush.bf16.msrb.mxu2 %v4448_v5 }
 0x4d4   : > { %v1138_v29 = vpack.c.bf16 %v1134_v27, %v1133_v44 }
 0x4d6   : > { %1505 = vmatpush.bf16.msrb.mxu2 %v4447_v36 }
 0x4dd   : > { %4252 = vmatmul.msk.bf16.gmra.mxu2 %vm1046_vm12, %v1137_v16 }
 0x4e7   : > { %v1402_v19 = vpop.f32.mrf.mxu0 }
 0x4ed   : > { %4253 = vmatmul.msk.bf16.gmra.mxu2 %vm1046_vm12, %v1138_v29 }
 0x4ef   : > { %v1404_v35 = vpop.f32.mrf.mxu0 }
 0x4f0   : > { %v4515_v39 = vpack.i.bf16 %v1404_v35, %v1402_v19 }
 0x4f2   : > { %4516 = vrot.lane.b32.xlu2 %v4515_v39, %s4897_s2 }
 0x4f7   : > { %v1407_v62 = vpop.f32.mrf.mxu0 }
 0x4ff   : > { %v1409_v2 = vpop.f32.mrf.mxu0 }
 0x500   : > { %v4520_v32 = vpack.i.bf16 %v1409_v2, %v1407_v62 }
 0x502   : > { %4521 = vrot.lane.b32.xlu1 %v4520_v32, %s4897_s2 }
 0x507   : > { %v1412_v33 = vpop.f32.mrf.mxu0 }
 0x50f   : > { %v1414_v1 = vpop.f32.mrf.mxu0 }
 0x510   : > { %v4525_v34 = vpack.i.bf16 %v1414_v1, %v1412_v33 }
 0x512   : > { %4526 = vrot.lane.b32.xlu0 %v4525_v34, %s4897_s2 }
 0x521   : > { %v1172_v53 = vpop.f32.mrf.mxu2 }
 0x529   : > { %v1174_v48 = vpop.f32.mrf.mxu2 }
 0x53c   : > { %v1417_v38 = vpop.f32.mrf.mxu0 }
 0x544   : > { %v1419_v41 = vpop.f32.mrf.mxu0 }
 0x545   : > { %v4530_v8 = vpack.i.bf16 %v1419_v41, %v1417_v38 }
 0x547   : > { %4531 = vrot.lane.b32.xlu2 %v4530_v8, %s4897_s2 }
 0x54c   : > { %v4517_v46 = vpop.permute.xlu2 %4516 }
 0x54d   : > { %v4519_v47 = vunpack.i.h.bf16 %v4517_v46  ;;  %v4518_v22 = vunpack.i.l.bf16 %v4517_v46 }
 0x54f   : > { %v1454_v4 = vsel %vm976_vm11, %v1172_v53, %v4518_v22  ;;  %v1455_v31 = vsel %vm976_vm11, %v1174_v48, %v4519_v47 }
 0x550   : > { %v1462_v11 = vpack.c.bf16 %v1455_v31, %v1454_v4  ;;  %v1177_v49 = vpop.f32.mrf.mxu2 }
 0x552   : > { %4270 = vmatmul.msk.bf16.vlgmr.msrb.gmra.mxu2 %vm661_vm0, %v1462_v11 }
 0x558   : > { %v1179_v28 = vpop.f32.mrf.mxu2 }
 0x560   : > { %v1182_v12 = vpop.f32.mrf.mxu2 }
 0x568   : > { %v1184_v30 = vpop.f32.mrf.mxu2 }
 0x570   : > { %v1187_v63 = vpop.f32.mrf.mxu2 }
 0x574   : > { %v4522_v51 = vpop.permute.xlu1 %4521 }
 0x575   : > { %v4524_v43 = vunpack.i.h.bf16 %v4522_v51  ;;  %v4523_v23 = vunpack.i.l.bf16 %v4522_v51 }
 0x577   : > { %v1456_v50 = vsel %vm976_vm11, %v1177_v49, %v4523_v23  ;;  %v1457_v54 = vsel %vm976_vm11, %v1179_v28, %v4524_v43 }
 0x578   : > { %v1463_v55 = vpack.c.bf16 %v1457_v54, %v1456_v50  ;;  %v1189_v6 = vpop.f32.mrf.mxu2 }
 0x57a   : > { %4271 = vmatmul.msk.bf16.gmra.mxu2 %vm661_vm0, %v1463_v55 }
 0x584   : > { %v4527_v61 = vpop.permute.xlu0 %4526 }
 0x585   : > { %v4529_v56 = vunpack.i.h.bf16 %v4527_v61  ;;  %v4528_v13 = vunpack.i.l.bf16 %v4527_v61 }
 0x587   : > { %v1458_v42 = vsel %vm976_vm11, %v1182_v12, %v4528_v13  ;;  %v1459_v59 = vsel %vm976_vm11, %v1184_v30, %v4529_v56 }
 0x588   : > { %v1464_v21 = vpack.c.bf16 %v1459_v59, %v1458_v42 }
 0x58a   : > { %4272 = vmatmul.msk.bf16.gmra.mxu2 %vm661_vm0, %v1464_v21 }
 0x5a1   : > { %v4532_v0 = vpop.permute.xlu2 %4531 }
 0x5a2   : > { %v4534_v15 = vunpack.i.h.bf16 %v4532_v0  ;;  %v4533_v3 = vunpack.i.l.bf16 %v4532_v0 }
 0x5a4   : > { %v1460_v17 = vsel %vm976_vm11, %v1187_v63, %v4533_v3  ;;  %v1461_v52 = vsel %vm976_vm11, %v1189_v6, %v4534_v15 }
 0x5a5   : > { %v1465_v7 = vpack.c.bf16 %v1461_v52, %v1460_v17 }
 0x5a7   : > { %4273 = vmatmul.msk.bf16.gmra.mxu2 %vm661_vm0, %v1465_v7 }
 0x5d5   : > { %v1507_v10 = vpop.f32.mrf.mxu2 }
 0x5d6   : > { %v1508_v16 = vadd.f32 %v4558_v9, %v1507_v10 }
 0x5d8   : > { %v1527_v18 = vadd.f32 %v1508_v16, %v5173_v60 }
 0x5da   : > { %v1537_v25 = vsel %vm661_vm0, %v1527_v18, 0.0 }
 0x5db   : > { %1538 = vadd.xlane.f32.xlu0 %v1537_v25 }
 0x5dd   : > { %v1509_v45 = vpop.f32.mrf.mxu2 }
 0x5de   : > { %v1510_v44 = vadd.f32 %v4558_v9, %v1509_v45  ;;  %v4450_v45 = vld [vmem:[%s6764_s10 + $0x8] sm:$0xff] }
 0x5df   : > { %1777 = vmatpush.bf16.msrb.mxu1 %v4450_v45 }
 0x5e0   : > { %v1528_v19 = vadd.f32 %v1510_v44, %v5170_v37  ;;  %v4449_v44 = vld [vmem:[%s6764_s10] sm:$0xff] }
 0x5e2   : > { %v1540_v27 = vsel %vm661_vm0, %v1528_v19, 0.0 }
 0x5e3   : > { %1541 = vadd.xlane.f32.xlu1 %v1540_v27  ;;  %1778 = vmatpush.bf16.msrb.mxu1 %v4449_v44 }
 0x5fd   : > { %v1512_v29 = vpop.f32.mrf.mxu2 }
 0x5fe   : > { %v1513_v35 = vadd.f32 %v4558_v9, %v1512_v29 }
 0x600   : > { %v1529_v39 = vadd.f32 %v1513_v35, %v5185_v14 }
 0x602   : > { %v1543_v62 = vsel %vm661_vm0, %v1529_v39, 0.0 }
 0x603   : > { %1544 = vadd.xlane.f32.xlu2 %v1543_v62 }
 0x605   : > { %v1514_v2 = vpop.f32.mrf.mxu2 }
 0x606   : > { %v1515_v32 = vadd.f32 %v4558_v9, %v1514_v2 }
 0x608   : > { %v1530_v60 = vadd.f32 %v1515_v32, %v5188_v40 }
 0x60a   : > { %v1546_v33 = vsel %vm661_vm0, %v1530_v60, 0.0 }
 0x60b   : > { %1547 = vadd.xlane.f32.xlu0 %v1546_v33 }
 0x60d   : > { %v1517_v5 = vpop.f32.mrf.mxu2 }
 0x60e   : > { %v1518_v1 = vadd.f32 %v4558_v9, %v1517_v5 }
 0x610   : > { %v1531_v37 = vadd.f32 %v1518_v1, %v5201_v26 }
 0x612   : > { %v1549_v34 = vsel %vm661_vm0, %v1531_v37, 0.0 }
 0x613   : > { %1550 = vadd.xlane.f32.xlu1 %v1549_v34 }
 0x615   : > { %v1519_v36 = vpop.f32.mrf.mxu2 }
 0x616   : > { %v1520_v38 = vadd.f32 %v4558_v9, %v1519_v36 }
 0x618   : > { %v1532_v14 = vadd.f32 %v1520_v38, %v5198_v24 }
 0x61a   : > { %v1552_v41 = vsel %vm661_vm0, %v1532_v14, 0.0 }
 0x61b   : > { %1553 = vadd.xlane.f32.xlu2 %v1552_v41 }
 0x62a   : > { %v1522_v53 = vpop.f32.mrf.mxu2 }
 0x62b   : > { %v1523_v8 = vadd.f32 %v4558_v9, %v1522_v53 }
 0x62d   : > { %v1533_v40 = vadd.f32 %v1523_v8, %v5213_v57 }
 0x62f   : > { %v1555_v46 = vsel %vm661_vm0, %v1533_v40, 0.0 }
 0x630   : > { %1556 = vadd.xlane.f32.xlu2 %v1555_v46 }
 0x632   : > { %v1524_v48 = vpop.f32.mrf.mxu2 }
 0x633   : > { %v1525_v24 = vadd.f32 %v4558_v9, %v1524_v48  ;;  %v5568_v48 = vld [vmem:[%s6765_s8] ss:$0 sm:$0xff] }
 0x635   : > { %v1534_v28 = vadd.f32 %v1525_v24, %v5216_v58 }
 0x637   : > { %v1558_v43 = vsel %vm661_vm0, %v1534_v28, 0.0 }
 0x64e   : > { %v1539_v47 = vpop.xlane.xlu0 %1538 }
 0x64f   : > { %v1561_v26 = vmul.f32 %v1539_v47, %v5075_v20 }
 0x651   : > { %v5507_v22 = vsub.f32 %v1527_v18, %v1561_v26 }
 0x653   : > { %v1577_v4 = vmul.f32 %v5507_v22, %v5507_v22 }
 0x655   : > { %v1585_v31 = vsel %vm661_vm0, %v1577_v4, 0.0 }
 0x656   : > { %v1542_v11 = vpop.xlane.xlu1 %1541  ;;  %1586 = vadd.xlane.f32.xlu0 %v1585_v31 }
 0x657   : > { %v1562_v49 = vmul.f32 %v1542_v11, %v5075_v20 }
 0x659   : > { %v5513_v57 = vsub.f32 %v1528_v19, %v1562_v49  ;;  %v5575_v49 = vld [vmem:[%s6766_s9] ss:$0 sm:$0xff] }
 0x65b   : > { %v1578_v51 = vmul.f32 %v5513_v57, %v5513_v57 }
 0x65d   : > { %v1588_v23 = vsel %vm661_vm0, %v1578_v51, 0.0 }
 0x65e   : > { %1559 = vadd.xlane.f32.xlu0 %v1558_v43  ;;  %1589 = vadd.xlane.f32.xlu1 %v1588_v23 }
 0x676   : > { %v1545_v50 = vpop.xlane.xlu2 %1544 }
 0x677   : > { %v1563_v54 = vmul.f32 %v1545_v50, %v5075_v20 }
 0x679   : > { %v5521_v55 = vsub.f32 %v1529_v39, %v1563_v54 }
 0x67b   : > { %v1579_v12 = vmul.f32 %v5521_v55, %v5521_v55 }
 0x67d   : > { %v1591_v61 = vsel %vm661_vm0, %v1579_v12, 0.0 }
 0x67e   : > { %v1548_v58 = vpop.xlane.xlu0 %1547  ;;  %1592 = vadd.xlane.f32.xlu1 %v1591_v61 }
 0x67f   : > { %v1564_v56 = vmul.f32 %v1548_v58, %v5075_v20 }
 0x681   : > { %v5527_v13 = vsub.f32 %v1530_v60, %v1564_v56 }
 0x683   : > { %v1580_v30 = vmul.f32 %v5527_v13, %v5527_v13 }
 0x685   : > { %v1594_v42 = vsel %vm661_vm0, %v1580_v30, 0.0 }
 0x686   : > { %1595 = vadd.xlane.f32.xlu2 %v1594_v42  ;;  %v1551_v59 = vpop.xlane.xlu1 %1550 }
 0x687   : > { %v1565_v21 = vmul.f32 %v1551_v59, %v5075_v20 }
 0x689   : > { %v5533_v63 = vsub.f32 %v1531_v37, %v1565_v21 }
 0x68b   : > { %v1581_v0 = vmul.f32 %v5533_v63, %v5533_v63 }
 0x68d   : > { %v1597_v15 = vsel %vm661_vm0, %v1581_v0, 0.0 }
 0x68e   : > { %v1554_v3 = vpop.xlane.xlu2 %1553  ;;  %1598 = vadd.xlane.f32.xlu0 %v1597_v15 }
 0x68f   : > { %v1566_v6 = vmul.f32 %v1554_v3, %v5075_v20 }
 0x691   : > { %v5539_v17 = vsub.f32 %v1532_v14, %v1566_v6 }
 0x693   : > { %v1582_v52 = vmul.f32 %v5539_v17, %v5539_v17 }
 0x695   : > { %v1600_v7 = vsel %vm661_vm0, %v1582_v52, 0.0 }
 0x696   : > { %1601 = vadd.xlane.f32.xlu1 %v1600_v7 }
 0x6a3   : > { %v1557_v9 = vpop.xlane.xlu2 %1556 }
 0x6a4   : > { %v1567_v10 = vmul.f32 %v1557_v9, %v5075_v20 }
 0x6a6   : > { %v5545_v16 = vsub.f32 %v1533_v40, %v1567_v10 }
 0x6a8   : > { %v1583_v18 = vmul.f32 %v5545_v16, %v5545_v16 }
 0x6aa   : > { %v1603_v25 = vsel %vm661_vm0, %v1583_v18, 0.0 }
 0x6ab   : > { %1604 = vadd.xlane.f32.xlu2 %v1603_v25 }
 0x6c9   : > { %v1587_v19 = vpop.xlane.xlu0 %1586 }
 0x6ca   : > { %v1609_v27 = vmul.f32 %v1587_v19, %v5075_v20 }
 0x6cc   : > { %v1617_v29 = vadd.f32 1e-12, %v1609_v27 }
 0x6ce   : > { %4657 = vrsqrt.f32 %v1617_v29  ;;  %vm1631_vm14 = vweird.f32 %v1617_v29 }
 0x6d1   : > { %v1560_v35 = vpop.xlane.xlu0 %1559  ;;  %v1590_v39 = vpop.xlane.xlu1 %1589 }
 0x6d2   : > { %v1568_v62 = vmul.f32 %v1560_v35, %v5075_v20  ;;  %v1610_v2 = vmul.f32 %v1590_v39, %v5075_v20 }
 0x6d4   : > { %v4658_v32 = vpop.eup %4657  ;;  %v5559_v60 = vsub.f32 %v1534_v28, %v1568_v62  ;;  %v1618_v33 = vadd.f32 1e-12, %v1610_v2 }
 0x6d5   : > { %v1626_v5 = vmul.f32 %v4658_v32, %v1617_v29  ;;  %vm1632_vm13 = vweird.f32 %v4658_v32 }
 0x6d6   : > { %4659 = vrsqrt.f32 %v1618_v33  ;;  %v1584_v1 = vmul.f32 %v5559_v60, %v5559_v60  ;;  %vm1633_vm15 = vmor %vm1631_vm14, %vm1632_vm13  ;;  %vm1641_vm2 = vweird.f32 %v1618_v33 }
 0x6d7   : > { %v1627_v37 = vmul.f32 %v4658_v32, %v1626_v5 }
 0x6d8   : > { %v1606_v34 = vsel %vm661_vm0, %v1584_v1, 0.0 }
 0x6d9   : > { %v1628_v36 = vmul.f32 0.5, %v1627_v37  ;;  %1607 = vadd.xlane.f32.xlu0 %v1606_v34 }
 0x6db   : > { %v1629_v38 = vsub.f32 1.5, %v1628_v36 }
 0x6dc   : > { %v4660_v14 = vpop.eup %4659 }
 0x6dd   : > { %v1630_v41 = vmul.f32 %v4658_v32, %v1629_v38  ;;  %v1636_v53 = vmul.f32 %v4660_v14, %v1618_v33  ;;  %vm1642_vm1 = vweird.f32 %v4660_v14 }
 0x6de   : > { %vm1643_vm3 = vmor %vm1641_vm2, %vm1642_vm1 }
 0x6df   : > { %v1637_v8 = vmul.f32 %v4660_v14, %v1636_v53  ;;  %v1634_v40 = vsel %vm1633_vm15, %v4658_v32, %v1630_v41 }
 0x6e0   : > { %v1705_v26 = vmul.f32 %v1634_v40, %v5507_v22 }
 0x6e1   : > { %v1638_v46 = vmul.f32 0.5, %v1637_v8 }
 0x6e2   : > { %v1716_v11 = vmul.f32 %v5568_v48, %v1705_v26 }
 0x6e3   : > { %v1639_v47 = vsub.f32 1.5, %v1638_v46 }
 0x6e4   : > { %v5579_v28 = vadd.f32 %v5575_v49, %v1716_v11 }
 0x6e5   : > { %v1640_v4 = vmul.f32 %v4660_v14, %v1639_v47 }
 0x6e7   : > { %v1644_v24 = vsel %vm1643_vm3, %v4660_v14, %v1640_v4 }
 0x6e8   : > { %v1706_v31 = vmul.f32 %v1644_v24, %v5513_v57 }
 0x6ea   : > { %v1717_v22 = vmul.f32 %v5568_v48, %v1706_v31 }
 0x6ec   : > { %v5582_v51 = vadd.f32 %v5575_v49, %v1717_v22 }
 0x6ee   : > { %v1735_v43 = vpack.c.bf16 %v5582_v51, %v5579_v28 }
 0x6f0   : > { %4282 = vmatmul.msk.bf16.vlgmr.msrb.gmra.mxu1 %vm661_vm0, %v1735_v43 }
 0x6f1   : > { %v1593_v57 = vpop.xlane.xlu1 %1592 }
 0x6f2   : > { %v1611_v23 = vmul.f32 %v1593_v57, %v5075_v20 }
 0x6f4   : > { %v1619_v50 = vadd.f32 1e-12, %v1611_v23 }
 0x6f6   : > { %4661 = vrsqrt.f32 %v1619_v50  ;;  %vm1651_vm5 = vweird.f32 %v1619_v50 }
 0x6f9   : > { %v1596_v54 = vpop.xlane.xlu2 %1595 }
 0x6fa   : > { %v1612_v12 = vmul.f32 %v1596_v54, %v5075_v20 }
 0x6fc   : > { %v4662_v61 = vpop.eup %4661  ;;  %v1620_v58 = vadd.f32 1e-12, %v1612_v12 }
 0x6fd   : > { %v1646_v56 = vmul.f32 %v4662_v61, %v1619_v50  ;;  %vm1652_vm4 = vweird.f32 %v4662_v61 }
 0x6fe   : > { %4663 = vrsqrt.f32 %v1620_v58  ;;  %vm1653_vm6 = vmor %vm1651_vm5, %vm1652_vm4  ;;  %vm1661_vm8 = vweird.f32 %v1620_v58 }
 0x6ff   : > { %v1647_v30 = vmul.f32 %v4662_v61, %v1646_v56 }
 0x701   : > { %v1648_v42 = vmul.f32 0.5, %v1647_v30  ;;  %v1599_v59 = vpop.xlane.xlu0 %1598 }
 0x702   : > { %v1613_v21 = vmul.f32 %v1599_v59, %v5075_v20 }
 0x703   : > { %v1649_v0 = vsub.f32 1.5, %v1648_v42 }
 0x704   : > { %v4664_v15 = vpop.eup %4663  ;;  %v1621_v3 = vadd.f32 1e-12, %v1613_v21 }
 0x705   : > { %v1650_v6 = vmul.f32 %v4662_v61, %v1649_v0  ;;  %v1656_v52 = vmul.f32 %v4664_v15, %v1620_v58  ;;  %vm1662_vm7 = vweird.f32 %v4664_v15 }
 0x706   : > { %4665 = vrsqrt.f32 %v1621_v3  ;;  %vm1663_vm9 = vmor %vm1661_vm8, %vm1662_vm7  ;;  %vm1671_vm13 = vweird.f32 %v1621_v3 }
 0x707   : > { %v1657_v7 = vmul.f32 %v4664_v15, %v1656_v52  ;;  %v1654_v9 = vsel %vm1653_vm6, %v4662_v61, %v1650_v6 }
 0x708   : > { %v1707_v19 = vmul.f32 %v1654_v9, %v5521_v55 }
 0x709   : > { %v1658_v10 = vmul.f32 0.5, %v1657_v7  ;;  %v1602_v18 = vpop.xlane.xlu1 %1601 }
 0x70a   : > { %v1614_v25 = vmul.f32 %v1602_v18, %v5075_v20  ;;  %v1718_v32 = vmul.f32 %v5568_v48, %v1707_v19 }
 0x70b   : > { %v1659_v45 = vsub.f32 1.5, %v1658_v10 }
 0x70c   : > { %v4666_v44 = vpop.eup %4665  ;;  %v1622_v27 = vadd.f32 1e-12, %v1614_v25  ;;  %v5596_v34 = vadd.f32 %v5575_v49, %v1718_v32 }
 0x70d   : > { %v1660_v29 = vmul.f32 %v4664_v15, %v1659_v45  ;;  %v1666_v35 = vmul.f32 %v4666_v44, %v1621_v3  ;;  %vm1672_vm10 = vweird.f32 %v4666_v44 }
 0x70e   : > { %4667 = vrsqrt.f32 %v1622_v27  ;;  %vm1673_vm14 = vmor %vm1671_vm13, %vm1672_vm10  ;;  %vm1681_vm1 = vweird.f32 %v1622_v27 }
 0x70f   : > { %v1664_v39 = vsel %vm1663_vm9, %v4664_v15, %v1660_v29  ;;  %v1667_v62 = vmul.f32 %v4666_v44, %v1666_v35 }
 0x710   : > { %v1708_v2 = vmul.f32 %v1664_v39, %v5527_v13 }
 0x711   : > { %v1668_v33 = vmul.f32 0.5, %v1667_v62 }
 0x712   : > { %v1719_v5 = vmul.f32 %v5568_v48, %v1708_v2 }
 0x713   : > { %v1669_v1 = vsub.f32 1.5, %v1668_v33 }
 0x714   : > { %v4668_v37 = vpop.eup %4667  ;;  %v5599_v55 = vadd.f32 %v5575_v49, %v1719_v5 }
 0x715   : > { %v1670_v36 = vmul.f32 %v4666_v44, %v1669_v1  ;;  %v1676_v38 = vmul.f32 %v4668_v37, %v1622_v27  ;;  %vm1682_vm15 = vweird.f32 %v4668_v37 }
 0x716   : > { %v1736_v14 = vpack.c.bf16 %v5599_v55, %v5596_v34  ;;  %vm1683_vm2 = vmor %vm1681_vm1, %vm1682_vm15 }
 0x717   : > { %v1677_v13 = vmul.f32 %v4668_v37, %v1676_v38  ;;  %v1674_v41 = vsel %vm1673_vm14, %v4666_v44, %v1670_v36 }
 0x718   : > { %4283 = vmatmul.msk.bf16.gmra.mxu1 %vm661_vm0, %v1736_v14  ;;  %v1709_v40 = vmul.f32 %v1674_v41, %v5533_v63 }
 0x719   : > { %v1678_v53 = vmul.f32 0.5, %v1677_v13  ;;  %v4454_v13 = vld [vmem:[%s6720_s12 + $0x18] sm:$0xff] }
 0x71a   : > { %v1720_v4 = vmul.f32 %v5568_v48, %v1709_v40  ;;  %2208 = vmatpush.bf16.msrb.mxu3 %v4454_v13 }
 0x71b   : > { %v1679_v8 = vsub.f32 1.5, %v1678_v53 }
 0x71c   : > { %v5609_v31 = vadd.f32 %v5575_v49, %v1720_v4  ;;  %v4453_v4 = vld [vmem:[%s6720_s12 + $0x10] sm:$0xff] }
 0x71d   : > { %v1680_v46 = vmul.f32 %v4668_v37, %v1679_v8 }
 0x71e   : > { %v1605_v63 = vpop.xlane.xlu2 %1604  ;;  %2209 = vmatpush.bf16.msrb.mxu3 %v4453_v4 }
 0x71f   : > { %v1684_v47 = vsel %vm1683_vm2, %v4668_v37, %v1680_v46  ;;  %v1615_v43 = vmul.f32 %v1605_v63, %v5075_v20 }
 0x720   : > { %v1710_v26 = vmul.f32 %v1684_v47, %v5539_v17 }
 0x721   : > { %v1623_v57 = vadd.f32 1e-12, %v1615_v43 }
 0x722   : > { %v1721_v24 = vmul.f32 %v5568_v48, %v1710_v26 }
 0x723   : > { %4669 = vrsqrt.f32 %v1623_v57  ;;  %vm1691_vm4 = vweird.f32 %v1623_v57 }
 0x724   : > { %v5612_v11 = vadd.f32 %v5575_v49, %v1721_v24 }
 0x726   : > { %v1737_v22 = vpack.c.bf16 %v5612_v11, %v5609_v31 }
 0x728   : > { %4284 = vmatmul.msk.bf16.gmra.mxu1 %vm661_vm0, %v1737_v22 }
 0x729   : > { %v4670_v17 = vpop.eup %4669 }
 0x72a   : > { %v1686_v23 = vmul.f32 %v4670_v17, %v1623_v57  ;;  %vm1692_vm3 = vweird.f32 %v4670_v17 }
 0x72b   : > { %vm1693_vm5 = vmor %vm1691_vm4, %vm1692_vm3 }
 0x72c   : > { %v1687_v50 = vmul.f32 %v4670_v17, %v1686_v23 }
 0x72e   : > { %v1688_v58 = vmul.f32 0.5, %v1687_v50 }
 0x730   : > { %v1689_v56 = vsub.f32 1.5, %v1688_v58 }
 0x732   : > { %v1690_v42 = vmul.f32 %v4670_v17, %v1689_v56  ;;  %v4452_v56 = vld [vmem:[%s6720_s12 + $0x8] sm:$0xff] }
 0x733   : > { %2210 = vmatpush.bf16.msrb.mxu3 %v4452_v56 }
 0x734   : > { %v1694_v0 = vsel %vm1693_vm5, %v4670_v17, %v1690_v42 }
 0x735   : > { %v1711_v6 = vmul.f32 %v1694_v0, %v5545_v16  ;;  %v5634_v16 = vld [vmem:[%s6719_s11] ss:$0 sm:$0xff] }
 0x736   : > { %v4451_v0 = vld [vmem:[%s6720_s12] sm:$0xff] }
 0x737   : > { %v1722_v10 = vmul.f32 %v5568_v48, %v1711_v6  ;;  %2211 = vmatpush.bf16.msrb.mxu3 %v4451_v0 }
 0x739   : > { %v5624_v25 = vadd.f32 %v5575_v49, %v1722_v10 }
 0x74c   : > { %v1608_v54 = vpop.xlane.xlu0 %1607 }
 0x74d   : > { %v1616_v12 = vmul.f32 %v1608_v54, %v5075_v20 }
 0x74f   : > { %v1624_v61 = vadd.f32 1e-12, %v1616_v12 }
 0x751   : > { %4671 = vrsqrt.f32 %v1624_v61  ;;  %vm1701_vm7 = vweird.f32 %v1624_v61 }
 0x757   : > { %v4672_v30 = vpop.eup %4671 }
 0x758   : > { %v1696_v59 = vmul.f32 %v4672_v30, %v1624_v61  ;;  %vm1702_vm6 = vweird.f32 %v4672_v30 }
 0x759   : > { %vm1703_vm8 = vmor %vm1701_vm7, %vm1702_vm6 }
 0x75a   : > { %v1697_v21 = vmul.f32 %v4672_v30, %v1696_v59 }
 0x75c   : > { %v1698_v15 = vmul.f32 0.5, %v1697_v21 }
 0x75e   : > { %v1699_v3 = vsub.f32 1.5, %v1698_v15 }
 0x760   : > { %v1700_v52 = vmul.f32 %v4672_v30, %v1699_v3 }
 0x762   : > { %v1704_v7 = vsel %vm1703_vm8, %v4672_v30, %v1700_v52 }
 0x763   : > { %v1712_v9 = vmul.f32 %v1704_v7, %v5559_v60 }
 0x765   : > { %v1723_v18 = vmul.f32 %v5568_v48, %v1712_v9 }
 0x767   : > { %v5627_v45 = vadd.f32 %v5575_v49, %v1723_v18 }
 0x769   : > { %v1738_v44 = vpack.c.bf16 %v5627_v45, %v5624_v25 }
 0x76b   : > { %4285 = vmatmul.msk.bf16.gmra.mxu1 %vm661_vm0, %v1738_v44 }
 0x76d   : > { %v1780_v60 = vpop.f32.mrf.mxu1 }
 0x76e   : > { %v5638_v19 = vadd.f32 %v5634_v16, %v1780_v60 }
 0x770   : > { %v5641_v48 = vmul.f32 0.70710677, %v5638_v19 }
 0x772   : > { %v1816_v49 = vmul.f32 %v5641_v48, %v5641_v48 }
 0x774   : > { %v1817_v27 = vmin.f32 %v1816_v49, 16.0 }
 0x775   : > { %v1782_v29 = vpop.f32.mrf.mxu1 }
 0x776   : > { %v1818_v35 = vmul.f32 2.1237322e-06, %v1817_v27  ;;  %v1829_v39 = vmul.f32 3.8918573e-05, %v1817_v27  ;;  %v5646_v62 = vadd.f32 %v5634_v16, %v1782_v29 }
 0x778   : > { %v1819_v2 = vadd.f32 0.00028619796, %v1818_v35  ;;  %v1830_v32 = vadd.f32 0.001143296, %v1829_v39  ;;  %v5649_v33 = vmul.f32 0.70710677, %v5646_v62 }
 0x77a   : > { %v1831_v5 = vmul.f32 %v1830_v32, %v1817_v27  ;;  %v1820_v1 = vmul.f32 %v1819_v2, %v1817_v27  ;;  %v1856_v37 = vmul.f32 %v5649_v33, %v5649_v33 }
 0x77c   : > { %v1832_v36 = vadd.f32 0.014752088, %v1831_v5  ;;  %v1857_v38 = vmin.f32 %v1856_v37, 16.0  ;;  %v1821_v41 = vadd.f32 0.0036580483, %v1820_v1 }
 0x77e   : > { %v1833_v14 = vmul.f32 %v1832_v36, %v1817_v27  ;;  %v1858_v53 = vmul.f32 2.1237322e-06, %v1857_v38  ;;  %v1869_v8 = vmul.f32 3.8918573e-05, %v1857_v38  ;;  %v1822_v24 = vmul.f32 %v1821_v41, %v1817_v27 }
 0x780   : > { %v1834_v40 = vadd.f32 0.112945676, %v1833_v14  ;;  %v1859_v46 = vadd.f32 0.00028619796, %v1858_v53  ;;  %v1870_v47 = vadd.f32 0.001143296, %v1869_v8 }
 0x781   : > { %v1823_v50 = vadd.f32 0.05243302, %v1822_v24 }
 0x782   : > { %v1835_v26 = vmul.f32 %v1834_v40, %v1817_v27  ;;  %v1860_v22 = vmul.f32 %v1859_v46, %v1857_v38  ;;  %v1871_v63 = vmul.f32 %v1870_v47, %v1857_v38 }
 0x783   : > { %v1824_v30 = vmul.f32 %v1823_v50, %v1817_v27 }
 0x784   : > { %v1836_v43 = vadd.f32 0.4994258, %v1835_v26  ;;  %v1861_v57 = vadd.f32 0.0036580483, %v1860_v22  ;;  %v1872_v17 = vadd.f32 0.014752088, %v1871_v63 }
 0x785   : > { %v1825_v15 = vadd.f32 0.18741608, %v1824_v30 }
 0x786   : > { %v1837_v23 = vmul.f32 %v1836_v43, %v1817_v27  ;;  %v1873_v54 = vmul.f32 %v1872_v17, %v1857_v38  ;;  %v1862_v61 = vmul.f32 %v1861_v57, %v1857_v38 }
 0x787   : > { %v1826_v10 = vmul.f32 %v1825_v15, %v1817_v27 }
 0x788   : > { %v1838_v12 = vadd.f32 1.0, %v1837_v23  ;;  %v1874_v58 = vadd.f32 0.112945676, %v1873_v54  ;;  %v1863_v59 = vadd.f32 0.05243302, %v1862_v61 }
 0x789   : > { %v1827_v2 = vadd.f32 1.1283791, %v1826_v10 }
 0x78a   : > { %4673 = vrcp.f32 %v1838_v12  ;;  %v1875_v42 = vmul.f32 %v1874_v58, %v1857_v38  ;;  %v1864_v52 = vmul.f32 %v1863_v59, %v1857_v38  ;;  %v1850_v44 = vand.u32 2147483648, %v1838_v12 }
 0x78b   : > { %v1848_v29 = vand.u32 2147483647, %v1838_v12  ;;  %vm1844_vm10 = vweird.f32 %v1838_v12  ;;  %v1828_v53 = vmul.f32 %v1827_v2, %v5641_v48 }
 0x78c   : > { %v1876_v21 = vadd.f32 0.4994258, %v1875_v42  ;;  %v1865_v60 = vadd.f32 0.18741608, %v1864_v52  ;;  %v1851_v5 = vor.u32 1.1754944e-38, %v1850_v44  ;;  %v1801_v44 = vmul.f32 0.5, %v5646_v62 }
 0x78d   : > { %vm1849_vm14 = vcmp.eq.f32.partialorder %v1848_v29, 8.507059e+37 }
 0x78e   : > { %v1877_v3 = vmul.f32 %v1876_v21, %v1857_v38  ;;  %v1866_v1 = vmul.f32 %v1865_v60, %v1857_v38 }
 0x790   : > { %v4674_v6 = vpop.eup %4673  ;;  %v1878_v9 = vadd.f32 1.0, %v1877_v3  ;;  %v1867_v8 = vadd.f32 1.1283791, %v1866_v1 }
 0x791   : > { %v1840_v7 = vmul.f32 %v4674_v6, %v1838_v12  ;;  %vm1845_vm9 = vweird.f32 %v4674_v6 }
 0x792   : > { %4675 = vrcp.f32 %v1878_v9  ;;  %vm1846_vm13 = vmor %vm1844_vm10, %vm1845_vm9  ;;  %v1888_v38 = vand.u32 2147483647, %v1878_v9  ;;  %v1890_v26 = vand.u32 2147483648, %v1878_v9  ;;  %vm1884_vm1 = vweird.f32 %v1878_v9 }
 0x793   : > { %v1841_v18 = vsub.f32 1.0, %v1840_v7  ;;  %v1868_v23 = vmul.f32 %v1867_v8, %v5649_v33 }
 0x794   : > { %v1891_v50 = vor.u32 1.1754944e-38, %v1890_v26  ;;  %vm1889_vm3 = vcmp.eq.f32.partialorder %v1888_v38, 8.507059e+37 }
 0x795   : > { %v1842_v49 = vmul.f32 %v4674_v6, %v1841_v18  ;;  %v1785_v35 = vpop.f32.mrf.mxu1  ;;  %v1800_v18 = vmul.f32 0.5, %v5638_v19 }
 0x796   : > { %v5666_v39 = vadd.f32 %v5634_v16, %v1785_v35 }
 0x797   : > { %v1843_v32 = vadd.f32 %v4674_v6, %v1842_v49 }
 0x798   : > { %v5669_v37 = vmul.f32 0.70710677, %v5666_v39  ;;  %v4676_v27 = vpop.eup %4675 }
 0x799   : > { %v1847_v36 = vsel %vm1846_vm13, %v4674_v6, %v1843_v32  ;;  %v1880_v13 = vmul.f32 %v4676_v27, %v1878_v9  ;;  %vm1885_vm15 = vweird.f32 %v4676_v27 }
 0x79a   : > { %v1852_v14 = vsel %vm1849_vm14, %v1851_v5, %v1847_v36  ;;  %v1896_v41 = vmul.f32 %v5669_v37, %v5669_v37  ;;  %vm1886_vm2 = vmor %vm1884_vm1, %vm1885_vm15 }
 0x79b   : > { %v1881_v40 = vsub.f32 1.0, %v1880_v13  ;;  %v1853_v47 = vmul.f32 %v1852_v14, %v1828_v53 }
 0x79c   : > { %v5674_v46 = vmin.f32 %v1896_v41, 16.0 }
 0x79d   : > { %v1787_v4 = vpop.f32.mrf.mxu1  ;;  %v1882_v24 = vmul.f32 %v4676_v27, %v1881_v40  ;;  %v4286_v12 = vclamps-f32 %v1853_v47, 1.0 }
 0x79e   : > { %v1898_v22 = vmul.f32 2.1237322e-06, %v5674_v46  ;;  %v1909_v63 = vmul.f32 3.8918573e-05, %v5674_v46  ;;  %v5679_v43 = vadd.f32 %v5634_v16, %v1787_v4 }
 0x79f   : > { %v1883_v57 = vadd.f32 %v4676_v27, %v1882_v24  ;;  %v2136_v15 = vadd.f32 1.0, %v4286_v12 }
 0x7a0   : > { %v1899_v48 = vadd.f32 0.00028619796, %v1898_v22  ;;  %v1910_v17 = vadd.f32 0.001143296, %v1909_v63  ;;  %v5683_v54 = vmul.f32 0.70710677, %v5679_v43 }
 0x7a1   : > { %v1887_v61 = vsel %vm1886_vm2, %v4676_v27, %v1883_v57  ;;  %v2144_v32 = vmul.f32 %v2136_v15, %v1800_v18 }
 0x7a2   : > { %v1911_v58 = vmul.f32 %v1910_v17, %v5674_v46  ;;  %v1892_v56 = vsel %vm1889_vm3, %v1891_v50, %v1887_v61  ;;  %v1900_v30 = vmul.f32 %v1899_v48, %v5674_v46  ;;  %v1936_v42 = vmul.f32 %v5683_v54, %v5683_v54 }
 0x7a3   : > { %v1893_v59 = vmul.f32 %v1892_v56, %v1868_v23 }
 0x7a4   : > { %v1912_v21 = vadd.f32 0.014752088, %v1911_v58  ;;  %v5689_v0 = vmin.f32 %v1936_v42, 16.0  ;;  %v1901_v7 = vadd.f32 0.0036580483, %v1900_v30 }
 0x7a5   : > { %v1790_v33 = vpop.f32.mrf.mxu1  ;;  %v4287_v3 = vclamps-f32 %v1893_v59, 1.0 }
 0x7a6   : > { %v1913_v6 = vmul.f32 %v1912_v21, %v5674_v46  ;;  %v5693_v52 = vadd.f32 %v5634_v16, %v1790_v33  ;;  %v1938_v9 = vmul.f32 2.1237322e-06, %v5689_v0  ;;  %v1949_v10 = vmul.f32 3.8918573e-05, %v5689_v0 }
 0x7a7   : > { %v2137_v60 = vadd.f32 1.0, %v4287_v3  ;;  %v1902_v27 = vmul.f32 %v1901_v7, %v5674_v46 }
 0x7a8   : > { %v1914_v49 = vadd.f32 0.112945676, %v1913_v6  ;;  %v1939_v29 = vadd.f32 0.00028619796, %v1938_v9  ;;  %v1950_v35 = vadd.f32 0.001143296, %v1949_v10 }
 0x7a9   : > { %v5700_v2 = vmul.f32 0.70710677, %v5693_v52  ;;  %v2145_v5 = vmul.f32 %v2137_v60, %v1801_v44  ;;  %v1903_v26 = vadd.f32 0.05243302, %v1902_v27 }
 0x7aa   : > { %v1915_v1 = vmul.f32 %v1914_v49, %v5674_v46  ;;  %v1940_v36 = vmul.f32 %v1939_v29, %v5689_v0  ;;  %v1951_v14 = vmul.f32 %v1950_v35, %v5689_v0 }
 0x7ab   : > { %v1976_v19 = vmul.f32 %v5700_v2, %v5700_v2  ;;  %v2152_v62 = vpack.c.bf16 %v2145_v5, %v2144_v32  ;;  %v1904_v23 = vmul.f32 %v1903_v26, %v5674_v46 }
 0x7ac   : > { %v1916_v13 = vadd.f32 0.4994258, %v1915_v1  ;;  %v1941_v41 = vadd.f32 0.0036580483, %v1940_v36  ;;  %v1952_v53 = vadd.f32 0.014752088, %v1951_v14 }
 0x7ad   : > { %v5708_v8 = vmin.f32 %v1976_v19, 16.0  ;;  %v1792_v40 = vpop.f32.mrf.mxu1  ;;  %4310 = vmatmul.msk.bf16.vlgmr.msrb.gmra.mxu3 %vm1046_vm12, %v2152_v62  ;;  %v1905_v21 = vadd.f32 0.18741608, %v1904_v23 }
 0x7ae   : > { %v1917_v47 = vmul.f32 %v1916_v13, %v5674_v46  ;;  %v5712_v38 = vadd.f32 %v5634_v16, %v1792_v40  ;;  %v1942_v4 = vmul.f32 %v1941_v41, %v5689_v0  ;;  %v1953_v24 = vmul.f32 %v1952_v53, %v5689_v0 }
 0x7af   : > { %v1978_v22 = vmul.f32 2.1237322e-06, %v5708_v8  ;;  %v1989_v57 = vmul.f32 3.8918573e-05, %v5708_v8  ;;  %v1906_v5 = vmul.f32 %v1905_v21, %v5674_v46 }
 0x7b0   : > { %v1918_v63 = vadd.f32 1.0, %v1917_v47  ;;  %v5720_v48 = vmul.f32 0.70710677, %v5712_v38  ;;  %v1954_v17 = vadd.f32 0.112945676, %v1953_v24 }
 0x7b1   : > { %v1943_v50 = vadd.f32 0.05243302, %v1942_v4  ;;  %v1979_v61 = vadd.f32 0.00028619796, %v1978_v22  ;;  %v1990_v58 = vadd.f32 0.001143296, %v1989_v57 }
 0x7b2   : > { %4677 = vrcp.f32 %v1918_v63  ;;  %v1955_v12 = vmul.f32 %v1954_v17, %v5689_v0  ;;  %v2016_v56 = vmul.f32 %v5720_v48, %v5720_v48  ;;  %v1930_v32 = vand.u32 2147483648, %v1918_v63 }
 0x7b3   : > { %v1991_v42 = vmul.f32 %v1990_v58, %v5708_v8  ;;  %v1944_v33 = vmul.f32 %v1943_v50, %v5689_v0  ;;  %v1980_v6 = vmul.f32 %v1979_v61, %v5708_v8  ;;  %v1928_v13 = vand.u32 2147483647, %v1918_v63 }
 0x7b4   : > { %v1956_v30 = vadd.f32 0.4994258, %v1955_v12  ;;  %v5727_v59 = vmin.f32 %v2016_v56, 16.0  ;;  %vm1924_vm5 = vweird.f32 %v1918_v63  ;;  %v1907_v47 = vadd.f32 1.1283791, %v1906_v5 }
 0x7b5   : > { %v1992_v7 = vadd.f32 0.014752088, %v1991_v42  ;;  %v1945_v1 = vadd.f32 0.18741608, %v1944_v33  ;;  %v1981_v27 = vadd.f32 0.0036580483, %v1980_v6 }
 0x7b6   : > { %v1957_v15 = vmul.f32 %v1956_v30, %v5689_v0  ;;  %v2018_v9 = vmul.f32 2.1237322e-06, %v5727_v59  ;;  %v2029_v10 = vmul.f32 3.8918573e-05, %v5727_v59  ;;  %v1931_v57 = vor.u32 1.1754944e-38, %v1930_v32 }
 0x7b7   : > { %v1993_v60 = vmul.f32 %v1992_v7, %v5708_v8  ;;  %v1946_v26 = vmul.f32 %v1945_v1, %v5689_v0  ;;  %v1982_v46 = vmul.f32 %v1981_v27, %v5708_v8  ;;  %vm1929_vm7 = vcmp.eq.f32.partialorder %v1928_v13, 8.507059e+37 }
 0x7b8   : > { %v4678_v3 = vpop.eup %4677  ;;  %v1958_v44 = vadd.f32 1.0, %v1957_v15  ;;  %v2019_v49 = vadd.f32 0.00028619796, %v2018_v9  ;;  %v2030_v29 = vadd.f32 0.001143296, %v2029_v10  ;;  %v1908_v58 = vmul.f32 %v1907_v47, %v5669_v37 }
 0x7b9   : > { %v1920_v18 = vmul.f32 %v4678_v3, %v1918_v63  ;;  %v1994_v36 = vadd.f32 0.112945676, %v1993_v60  ;;  %vm1925_vm4 = vweird.f32 %v4678_v3  ;;  %v1947_v56 = vadd.f32 1.1283791, %v1946_v26 }
 0x7ba   : > { %4679 = vrcp.f32 %v1958_v44  ;;  %v2020_v19 = vmul.f32 %v2019_v49, %v5727_v59  ;;  %v2031_v62 = vmul.f32 %v2030_v29, %v5727_v59  ;;  %vm1926_vm6 = vmor %vm1924_vm5, %vm1925_vm4  ;;  %v1983_v0 = vadd.f32 0.05243302, %v1982_v46 }
 0x7bb   : > { %v1921_v35 = vsub.f32 1.0, %v1920_v18  ;;  %v1995_v41 = vmul.f32 %v1994_v36, %v5708_v8  ;;  %v1970_v42 = vand.u32 2147483648, %v1958_v44  ;;  %v1968_v7 = vand.u32 2147483647, %v1958_v44 }
 0x7bc   : > { %v2032_v40 = vadd.f32 0.014752088, %v2031_v62  ;;  %v2021_v17 = vadd.f32 0.0036580483, %v2020_v19  ;;  %vm1964_vm9 = vweird.f32 %v1958_v44  ;;  %v1984_v10 = vmul.f32 %v1983_v0, %v5708_v8 }
 0x7bd   : > { %v1922_v14 = vmul.f32 %v4678_v3, %v1921_v35  ;;  %v1996_v4 = vadd.f32 0.4994258, %v1995_v41  ;;  %v1948_v37 = vmul.f32 %v1947_v56, %v5683_v54  ;;  %v1971_v60 = vor.u32 1.1754944e-38, %v1970_v42 }
 0x7be   : > { %v2033_v23 = vmul.f32 %v2032_v40, %v5727_v59  ;;  %v2022_v33 = vmul.f32 %v2021_v17, %v5727_v59  ;;  %vm1969_vm13 = vcmp.eq.f32.partialorder %v1968_v7, 8.507059e+37  ;;  %v1985_v27 = vadd.f32 0.18741608, %v1984_v10 }
 0x7bf   : > { %v1923_v53 = vadd.f32 %v4678_v3, %v1922_v14  ;;  %v1997_v61 = vmul.f32 %v1996_v4, %v5708_v8  ;;  %v1802_v54 = vmul.f32 0.5, %v5666_v39  ;;  %v1803_v41 = vmul.f32 0.5, %v5679_v43 }
 0x7c0   : > { %v4680_v24 = vpop.eup %4679  ;;  %v2034_v63 = vadd.f32 0.112945676, %v2033_v23  ;;  %v2023_v49 = vadd.f32 0.05243302, %v2022_v33  ;;  %v1986_v40 = vmul.f32 %v1985_v27, %v5708_v8 }
 0x7c1   : > { %v1927_v22 = vsel %vm1926_vm6, %v4678_v3, %v1923_v53  ;;  %v1960_v50 = vmul.f32 %v4680_v24, %v1958_v44  ;;  %v1998_v21 = vadd.f32 1.0, %v1997_v61  ;;  %vm1965_vm8 = vweird.f32 %v4680_v24 }
 0x7c2   : > { %v1932_v12 = vsel %vm1929_vm7, %v1931_v57, %v1927_v22  ;;  %v2035_v15 = vmul.f32 %v2034_v63, %v5727_v59  ;;  %vm1966_vm10 = vmor %vm1964_vm9, %vm1965_vm8  ;;  %v2024_v44 = vmul.f32 %v2023_v49, %v5727_v59  ;;  %v1987_v17 = vadd.f32 1.1283791, %v1986_v40 }
 0x7c3   : > { %v1961_v30 = vsub.f32 1.0, %v1960_v50  ;;  %v1933_v3 = vmul.f32 %v1932_v12, %v1908_v58  ;;  %4681 = vrcp.f32 %v1998_v21  ;;  %v2008_v26 = vand.u32 2147483647, %v1998_v21 }
 0x7c4   : > { %v2036_v18 = vadd.f32 0.4994258, %v2035_v15  ;;  %v2010_v46 = vand.u32 2147483648, %v1998_v21  ;;  %v2025_v4 = vadd.f32 0.18741608, %v2024_v44  ;;  %vm2004_vm15 = vweird.f32 %v1998_v21 }
 0x7c5   : > { %v1962_v6 = vmul.f32 %v4680_v24, %v1961_v30  ;;  %v4288_v29 = vclamps-f32 %v1933_v3, 1.0  ;;  %vm2009_vm2 = vcmp.eq.f32.partialorder %v2008_v26, 8.507059e+37  ;;  %v1988_v58 = vmul.f32 %v1987_v17, %v5700_v2 }
 0x7c6   : > { %v2037_v32 = vmul.f32 %v2036_v18, %v5727_v59  ;;  %v2011_v39 = vor.u32 1.1754944e-38, %v2010_v46  ;;  %v2026_v43 = vmul.f32 %v2025_v4, %v5727_v59 }
 0x7c7   : > { %v1963_v9 = vadd.f32 %v4680_v24, %v1962_v6  ;;  %v2138_v19 = vadd.f32 1.0, %v4288_v29 }
 0x7c8   : > { %v2038_v36 = vadd.f32 1.0, %v2037_v32  ;;  %v2027_v30 = vadd.f32 1.1283791, %v2026_v43 }
 0x7c9   : > { %v1967_v35 = vsel %vm1966_vm10, %v4680_v24, %v1963_v9  ;;  %v4682_v14 = vpop.eup %4681  ;;  %v2146_v24 = vmul.f32 %v2138_v19, %v1802_v54 }
 0x7ca   : > { %v1972_v5 = vsel %vm1969_vm13, %v1971_v60, %v1967_v35  ;;  %v2000_v13 = vmul.f32 %v4682_v14, %v1998_v21  ;;  %4683 = vrcp.f32 %v2038_v36  ;;  %vm2005_vm14 = vweird.f32 %v4682_v14 }
 0x7cb   : > { %v1973_v1 = vmul.f32 %v1972_v5, %v1948_v37  ;;  %vm2006_vm1 = vmor %vm2004_vm15, %vm2005_vm14  ;;  %v2050_v0 = vand.u32 2147483648, %v2038_v36  ;;  %v2048_v21 = vand.u32 2147483647, %v2038_v36  ;;  %vm2044_vm4 = vweird.f32 %v2038_v36 }
 0x7cc   : > { %v2001_v47 = vsub.f32 1.0, %v2000_v13  ;;  %v2028_v6 = vmul.f32 %v2027_v30, %v5720_v48  ;;  %v1804_v37 = vmul.f32 0.5, %v5693_v52  ;;  %v1805_v60 = vmul.f32 0.5, %v5712_v38 }
 0x7cd   : > { %v4289_v62 = vclamps-f32 %v1973_v1, 1.0  ;;  %v2051_v3 = vor.u32 1.1754944e-38, %v2050_v0  ;;  %vm2049_vm6 = vcmp.eq.f32.partialorder %v2048_v21, 8.507059e+37 }
 0x7ce   : > { %v2002_v57 = vmul.f32 %v4682_v14, %v2001_v47 }
 0x7cf   : > { %v2139_v53 = vadd.f32 1.0, %v4289_v62 }
 0x7d0   : > { %v2003_v23 = vadd.f32 %v4682_v14, %v2002_v57  ;;  %v4684_v12 = vpop.eup %4683 }
 0x7d1   : > { %v2147_v22 = vmul.f32 %v2139_v53, %v1803_v41  ;;  %v2040_v8 = vmul.f32 %v4684_v12, %v2038_v36  ;;  %vm2045_vm3 = vweird.f32 %v4684_v12 }
 0x7d2   : > { %v2007_v61 = vsel %vm2006_vm1, %v4682_v14, %v2003_v23  ;;  %vm2046_vm5 = vmor %vm2044_vm4, %vm2045_vm3 }
 0x7d3   : > { %v2153_v50 = vpack.c.bf16 %v2147_v22, %v2146_v24  ;;  %v2012_v63 = vsel %vm2009_vm2, %v2011_v39, %v2007_v61  ;;  %v2041_v56 = vsub.f32 1.0, %v2040_v8 }
 0x7d4   : > { %v2013_v42 = vmul.f32 %v2012_v63, %v1988_v58 }
 0x7d5   : > { %4311 = vmatmul.msk.bf16.gmra.mxu3 %vm1046_vm12, %v2153_v50  ;;  %v2042_v33 = vmul.f32 %v4684_v12, %v2041_v56 }
 0x7d6   : > { %v4290_v59 = vclamps-f32 %v2013_v42, 1.0 }
 0x7d7   : > { %v2043_v15 = vadd.f32 %v4684_v12, %v2042_v33 }
 0x7d8   : > { %v2140_v18 = vadd.f32 1.0, %v4290_v59 }
 0x7d9   : > { %v2047_v7 = vsel %vm2046_vm5, %v4684_v12, %v2043_v15 }
 0x7da   : > { %v2052_v9 = vsel %vm2049_vm6, %v2051_v3, %v2047_v7  ;;  %v2148_v29 = vmul.f32 %v2140_v18, %v1804_v37 }
 0x7db   : > { %v2053_v10 = vmul.f32 %v2052_v9, %v2028_v6 }
 0x7dd   : > { %v4291_v2 = vclamps-f32 %v2053_v10, 1.0 }
 0x7df   : > { %v2141_v49 = vadd.f32 1.0, %v4291_v2 }
 0x7e1   : > { %v2149_v35 = vmul.f32 %v2141_v49, %v1805_v60 }
 0x7e3   : > { %v2154_v32 = vpack.c.bf16 %v2149_v35, %v2148_v29 }
 0x7e5   : > { %4312 = vmatmul.msk.bf16.gmra.mxu3 %vm1046_vm12, %v2154_v32 }
 0x7e8   : > { %v1795_v5 = vpop.f32.mrf.mxu1 }
 0x7e9   : > { %v5760_v1 = vadd.f32 %v5634_v16, %v1795_v5 }
 0x7eb   : > { %v5764_v48 = vmul.f32 0.70710677, %v5760_v1 }
 0x7ed   : > { %v2056_v27 = vmul.f32 %v5764_v48, %v5764_v48 }
 0x7ef   : > { %v2057_v36 = vmin.f32 %v2056_v27, 16.0 }
 0x7f0   : > { %v1797_v52 = vpop.f32.mrf.mxu1 }
 0x7f1   : > { %v2058_v14 = vmul.f32 2.1237322e-06, %v2057_v36  ;;  %v2069_v38 = vmul.f32 3.8918573e-05, %v2057_v36  ;;  %v5769_v44 = vadd.f32 %v5634_v16, %v1797_v52 }
 0x7f3   : > { %v2059_v19 = vadd.f32 0.00028619796, %v2058_v14  ;;  %v2070_v62 = vadd.f32 0.001143296, %v2069_v38  ;;  %v5772_v13 = vmul.f32 0.70710677, %v5769_v44 }
 0x7f5   : > { %v2071_v54 = vmul.f32 %v2070_v62, %v2057_v36  ;;  %v2096_v41 = vmul.f32 %v5772_v13, %v5772_v13  ;;  %v2060_v53 = vmul.f32 %v2059_v19, %v2057_v36 }
 0x7f7   : > { %v2072_v40 = vadd.f32 0.014752088, %v2071_v54  ;;  %v2097_v47 = vmin.f32 %v2096_v41, 16.0  ;;  %v2061_v24 = vadd.f32 0.0036580483, %v2060_v53 }
 0x7f9   : > { %v2073_v26 = vmul.f32 %v2072_v40, %v2057_v36  ;;  %v2098_v46 = vmul.f32 2.1237322e-06, %v2097_v47  ;;  %v2109_v4 = vmul.f32 3.8918573e-05, %v2097_v47  ;;  %v2062_v12 = vmul.f32 %v2061_v24, %v2057_v36 }
 0x7fb   : > { %v2074_v22 = vadd.f32 0.112945676, %v2073_v26  ;;  %v2099_v57 = vadd.f32 0.00028619796, %v2098_v46  ;;  %v2110_v16 = vadd.f32 0.001143296, %v2109_v4 }
 0x7fc   : > { %v2063_v58 = vadd.f32 0.05243302, %v2062_v12 }
 0x7fd   : > { %v2075_v17 = vmul.f32 %v2074_v22, %v2057_v36  ;;  %v2100_v23 = vmul.f32 %v2099_v57, %v2097_v47  ;;  %v2111_v50 = vmul.f32 %v2110_v16, %v2097_v47 }
 0x7fe   : > { %v2064_v33 = vmul.f32 %v2063_v58, %v2057_v36 }
 0x7ff   : > { %v2076_v39 = vadd.f32 0.4994258, %v2075_v17  ;;  %v2101_v43 = vadd.f32 0.0036580483, %v2100_v23  ;;  %v2112_v61 = vadd.f32 0.014752088, %v2111_v50 }
 0x800   : > { %v2065_v6 = vadd.f32 0.18741608, %v2064_v33  ;;  %v1806_v23 = vmul.f32 0.5, %v5760_v1  ;;  %v1807_v50 = vmul.f32 0.5, %v5769_v44 }
 0x801   : > { %v2077_v8 = vmul.f32 %v2076_v39, %v2057_v36  ;;  %v2113_v63 = vmul.f32 %v2112_v61, %v2097_v47  ;;  %v2102_v30 = vmul.f32 %v2101_v43, %v2097_v47 }
 0x802   : > { %v2066_v2 = vmul.f32 %v2065_v6, %v2057_v36 }
 0x803   : > { %v2078_v56 = vadd.f32 1.0, %v2077_v8  ;;  %v2114_v0 = vadd.f32 0.112945676, %v2113_v63  ;;  %v2103_v21 = vadd.f32 0.05243302, %v2102_v30 }
 0x804   : > { %v2067_v32 = vadd.f32 1.1283791, %v2066_v2 }
 0x805   : > { %4685 = vrcp.f32 %v2078_v56  ;;  %v2115_v42 = vmul.f32 %v2114_v0, %v2097_v47  ;;  %v2104_v9 = vmul.f32 %v2103_v21, %v2097_v47  ;;  %v2090_v60 = vand.u32 2147483648, %v2078_v56 }
 0x806   : > { %v2088_v29 = vand.u32 2147483647, %v2078_v56  ;;  %vm2084_vm8 = vweird.f32 %v2078_v56  ;;  %v2068_v62 = vmul.f32 %v2067_v32, %v5764_v48 }
 0x807   : > { %v2116_v15 = vadd.f32 0.4994258, %v2115_v42  ;;  %v2105_v49 = vadd.f32 0.18741608, %v2104_v9  ;;  %v2091_v52 = vor.u32 1.1754944e-38, %v2090_v60 }
 0x808   : > { %vm2089_vm10 = vcmp.eq.f32.partialorder %v2088_v29, 8.507059e+37 }
 0x809   : > { %v2117_v3 = vmul.f32 %v2116_v15, %v2097_v47  ;;  %v2106_v14 = vmul.f32 %v2105_v49, %v2097_v47 }
 0x80b   : > { %v4686_v59 = vpop.eup %4685  ;;  %v2118_v10 = vadd.f32 1.0, %v2117_v3  ;;  %v2107_v36 = vadd.f32 1.1283791, %v2106_v14 }
 0x80c   : > { %v2080_v7 = vmul.f32 %v4686_v59, %v2078_v56  ;;  %vm2085_vm7 = vweird.f32 %v4686_v59 }
 0x80d   : > { %4687 = vrcp.f32 %v2118_v10  ;;  %vm2086_vm9 = vmor %vm2084_vm8, %vm2085_vm7  ;;  %v2130_v41 = vand.u32 2147483648, %v2118_v10  ;;  %v2128_v26 = vand.u32 2147483647, %v2118_v10  ;;  %vm2124_vm14 = vweird.f32 %v2118_v10 }
 0x80e   : > { %v2081_v18 = vsub.f32 1.0, %v2080_v7  ;;  %v2108_v22 = vmul.f32 %v2107_v36, %v5772_v13  ;;  %v4562_v13 = vld [vmem:[%s6721_s13] ss:$0 sm:$0xff] }
 0x80f   : > { %v2131_v4 = vor.u32 1.1754944e-38, %v2130_v41  ;;  %vm2129_vm1 = vcmp.eq.f32.partialorder %v2128_v26, 8.507059e+37 }
 0x810   : > { %v2082_v37 = vmul.f32 %v4686_v59, %v2081_v18 }
 0x812   : > { %v2083_v35 = vadd.f32 %v4686_v59, %v2082_v37 }
 0x813   : > { %v4688_v5 = vpop.eup %4687 }
 0x814   : > { %v2087_v27 = vsel %vm2086_vm9, %v4686_v59, %v2083_v35  ;;  %v2120_v38 = vmul.f32 %v4688_v5, %v2118_v10  ;;  %vm2125_vm13 = vweird.f32 %v4688_v5 }
 0x815   : > { %v2092_v19 = vsel %vm2089_vm10, %v2091_v52, %v2087_v27  ;;  %vm2126_vm15 = vmor %vm2124_vm14, %vm2125_vm13 }
 0x816   : > { %v2121_v54 = vsub.f32 1.0, %v2120_v38  ;;  %v2093_v53 = vmul.f32 %v2092_v19, %v2068_v62 }
 0x818   : > { %v2122_v40 = vmul.f32 %v4688_v5, %v2121_v54  ;;  %v4292_v24 = vclamps-f32 %v2093_v53, 1.0 }
 0x81a   : > { %v2123_v46 = vadd.f32 %v4688_v5, %v2122_v40  ;;  %v2142_v17 = vadd.f32 1.0, %v4292_v24 }
 0x81c   : > { %v2127_v47 = vsel %vm2126_vm15, %v4688_v5, %v2123_v46  ;;  %v2150_v39 = vmul.f32 %v2142_v17, %v1806_v23 }
 0x81d   : > { %v2132_v57 = vsel %vm2129_vm1, %v2131_v4, %v2127_v47 }
 0x81e   : > { %v2133_v16 = vmul.f32 %v2132_v57, %v2108_v22 }
 0x820   : > { %v4293_v48 = vclamps-f32 %v2133_v16, 1.0 }
 0x822   : > { %v2143_v12 = vadd.f32 1.0, %v4293_v48 }
 0x824   : > { %v2151_v43 = vmul.f32 %v2143_v12, %v1807_v50 }
 0x826   : > { %v2155_v61 = vpack.c.bf16 %v2151_v43, %v2150_v39 }
 0x828   : > { %4313 = vmatmul.msk.bf16.gmra.mxu3 %vm1046_vm12, %v2155_v61 }
 0x830   : > { %v2213_v8 = vpop.f32.mrf.mxu3 }
 0x831   : > { %v2214_v63 = vadd.f32 %v4562_v13, %v2213_v8 }
 0x833   : > { %v2233_v58 = vadd.f32 %v2214_v63, %v5579_v28 }
 0x835   : > { %v2243_v56 = vsel %vm661_vm0, %v2233_v58, 0.0 }
 0x836   : > { %2244 = vadd.xlane.f32.xlu1 %v2243_v56 }
 0x838   : > { %v2215_v1 = vpop.f32.mrf.mxu3 }
 0x839   : > { %v2216_v30 = vadd.f32 %v4562_v13, %v2215_v1 }
 0x83b   : > { %v2234_v44 = vadd.f32 %v2216_v30, %v5582_v51  ;;  %v4456_v30 = vld [vmem:[%s6755_s21 + $0x18] sm:$0xff] }
 0x83c   : > { %2485 = vmatpush.bf16.msra.mxu0 %v4456_v30 }
 0x83d   : > { %v2246_v0 = vsel %vm661_vm0, %v2234_v44, 0.0 }
 0x83e   : > { %2247 = vadd.xlane.f32.xlu2 %v2246_v0  ;;  %v4455_v0 = vld [vmem:[%s6755_s21 + $0x10] sm:$0xff] }
 0x840   : > { %2486 = vmatpush.bf16.msra.mxu0 %v4455_v0 }
 0x858   : > { %v2218_v42 = vpop.f32.mrf.mxu3 }
 0x859   : > { %v2219_v33 = vadd.f32 %v4562_v13, %v2218_v42 }
 0x85b   : > { %v2235_v21 = vadd.f32 %v2219_v33, %v5596_v34 }
 0x85d   : > { %v2249_v15 = vsel %vm661_vm0, %v2235_v21, 0.0 }
 0x85e   : > { %2250 = vadd.xlane.f32.xlu0 %v2249_v15 }
 0x860   : > { %v2220_v3 = vpop.f32.mrf.mxu3 }
 0x861   : > { %v2221_v59 = vadd.f32 %v4562_v13, %v2220_v3 }
 0x863   : > { %v2236_v28 = vadd.f32 %v2221_v59, %v5599_v55 }
 0x865   : > { %v2252_v6 = vsel %vm661_vm0, %v2236_v28, 0.0 }
 0x866   : > { %2253 = vadd.xlane.f32.xlu1 %v2252_v6 }
 0x868   : > { %v2223_v7 = vpop.f32.mrf.mxu3 }
 0x869   : > { %v2224_v9 = vadd.f32 %v4562_v13, %v2223_v7 }
 0x86b   : > { %v2237_v51 = vadd.f32 %v2224_v9, %v5609_v31 }
 0x86d   : > { %v2255_v10 = vsel %vm661_vm0, %v2237_v51, 0.0 }
 0x86e   : > { %2256 = vadd.xlane.f32.xlu2 %v2255_v10 }
 0x870   : > { %v2225_v18 = vpop.f32.mrf.mxu3 }
 0x871   : > { %v2226_v2 = vadd.f32 %v4562_v13, %v2225_v18 }
 0x873   : > { %v2238_v34 = vadd.f32 %v2226_v2, %v5612_v11 }
 0x875   : > { %v2258_v37 = vsel %vm661_vm0, %v2238_v34, 0.0 }
 0x876   : > { %2259 = vadd.xlane.f32.xlu0 %v2258_v37 }
 0x8a9   : > { %v2245_v60 = vpop.xlane.xlu1 %2244 }
 0x8aa   : > { %v2267_v55 = vmul.f32 %v2245_v60, %v5075_v20 }
 0x8ab   : > { %v2228_v49 = vpop.f32.mrf.mxu3 }
 0x8ac   : > { %v5797_v29 = vsub.f32 %v2233_v58, %v2267_v55  ;;  %v2229_v35 = vadd.f32 %v4562_v13, %v2228_v49 }
 0x8ae   : > { %v2239_v32 = vadd.f32 %v2229_v35, %v5624_v25  ;;  %v2283_v31 = vmul.f32 %v5797_v29, %v5797_v29 }
 0x8b0   : > { %v2261_v5 = vsel %vm661_vm0, %v2239_v32, 0.0  ;;  %v2291_v27 = vsel %vm661_vm0, %v2283_v31, 0.0  ;;  %v5859_v31 = vld [vmem:[%s6722_s14] ss:$0 sm:$0xff] }
 0x8b1   : > { %v2248_v11 = vpop.xlane.xlu2 %2247  ;;  %2262 = vadd.xlane.f32.xlu0 %v2261_v5  ;;  %2292 = vadd.xlane.f32.xlu1 %v2291_v27 }
 0x8b2   : > { %v2268_v52 = vmul.f32 %v2248_v11, %v5075_v20 }
 0x8b3   : > { %v2230_v14 = vpop.f32.mrf.mxu3 }
 0x8b4   : > { %v5805_v38 = vsub.f32 %v2234_v44, %v2268_v52  ;;  %v2231_v19 = vadd.f32 %v4562_v13, %v2230_v14  ;;  %v5865_v52 = vld [vmem:[%s6723_s15] ss:$0 sm:$0xff] }
 0x8b6   : > { %v2284_v62 = vmul.f32 %v5805_v38, %v5805_v38  ;;  %v2240_v25 = vadd.f32 %v2231_v19, %v5627_v45 }
 0x8b8   : > { %v2294_v54 = vsel %vm661_vm0, %v2284_v62, 0.0  ;;  %v2264_v36 = vsel %vm661_vm0, %v2240_v25, 0.0 }
 0x8b9   : > { %2295 = vadd.xlane.f32.xlu2 %v2294_v54  ;;  %2265 = vadd.xlane.f32.xlu1 %v2264_v36 }
 0x8d1   : > { %v2251_v41 = vpop.xlane.xlu0 %2250 }
 0x8d2   : > { %v2269_v53 = vmul.f32 %v2251_v41, %v5075_v20 }
 0x8d4   : > { %v5813_v40 = vsub.f32 %v2235_v21, %v2269_v53 }
 0x8d6   : > { %v2285_v26 = vmul.f32 %v5813_v40, %v5813_v40 }
 0x8d8   : > { %v2297_v46 = vsel %vm661_vm0, %v2285_v26, 0.0 }
 0x8d9   : > { %2298 = vadd.xlane.f32.xlu2 %v2297_v46  ;;  %v2254_v4 = vpop.xlane.xlu1 %2253 }
 0x8da   : > { %v2270_v45 = vmul.f32 %v2254_v4, %v5075_v20 }
 0x8dc   : > { %v5819_v24 = vsub.f32 %v2236_v28, %v2270_v45 }
 0x8de   : > { %v2286_v22 = vmul.f32 %v5819_v24, %v5819_v24 }
 0x8e0   : > { %v2300_v47 = vsel %vm661_vm0, %v2286_v22, 0.0 }
 0x8e1   : > { %2301 = vadd.xlane.f32.xlu0 %v2300_v47  ;;  %v2257_v57 = vpop.xlane.xlu2 %2256 }
 0x8e2   : > { %v2271_v16 = vmul.f32 %v2257_v57, %v5075_v20 }
 0x8e4   : > { %v5825_v17 = vsub.f32 %v2237_v51, %v2271_v16 }
 0x8e6   : > { %v2287_v48 = vmul.f32 %v5825_v17, %v5825_v17 }
 0x8e8   : > { %v2303_v23 = vsel %vm661_vm0, %v2287_v48, 0.0 }
 0x8e9   : > { %v2260_v50 = vpop.xlane.xlu0 %2259  ;;  %2304 = vadd.xlane.f32.xlu1 %v2303_v23 }
 0x8ea   : > { %v2272_v12 = vmul.f32 %v2260_v50, %v5075_v20 }
 0x8ec   : > { %v5831_v39 = vsub.f32 %v2238_v34, %v2272_v12 }
 0x8ee   : > { %v2288_v43 = vmul.f32 %v5831_v39, %v5831_v39 }
 0x8f0   : > { %v2306_v61 = vsel %vm661_vm0, %v2288_v43, 0.0 }
 0x8f1   : > { %2307 = vadd.xlane.f32.xlu2 %v2306_v61 }
 0x924   : > { %v2263_v13 = vpop.xlane.xlu0 %2262  ;;  %v2293_v8 = vpop.xlane.xlu1 %2292 }
 0x925   : > { %v2273_v63 = vmul.f32 %v2263_v13, %v5075_v20  ;;  %v2315_v58 = vmul.f32 %v2293_v8, %v5075_v20 }
 0x927   : > { %v5838_v56 = vsub.f32 %v2239_v32, %v2273_v63  ;;  %v2323_v1 = vadd.f32 1e-12, %v2315_v58 }
 0x929   : > { %4689 = vrsqrt.f32 %v2323_v1  ;;  %v2289_v44 = vmul.f32 %v5838_v56, %v5838_v56  ;;  %vm2337_vm3 = vweird.f32 %v2323_v1 }
 0x92b   : > { %v2309_v42 = vsel %vm661_vm0, %v2289_v44, 0.0 }
 0x92c   : > { %v2296_v33 = vpop.xlane.xlu2 %2295  ;;  %2310 = vadd.xlane.f32.xlu0 %v2309_v42  ;;  %v2266_v21 = vpop.xlane.xlu1 %2265 }
 0x92d   : > { %v2316_v15 = vmul.f32 %v2296_v33, %v5075_v20  ;;  %v2274_v3 = vmul.f32 %v2266_v21, %v5075_v20 }
 0x92f   : > { %v4690_v59 = vpop.eup %4689  ;;  %v2324_v28 = vadd.f32 1e-12, %v2316_v15  ;;  %v5851_v6 = vsub.f32 %v2240_v25, %v2274_v3 }
 0x930   : > { %v2332_v7 = vmul.f32 %v4690_v59, %v2323_v1  ;;  %vm2338_vm2 = vweird.f32 %v4690_v59 }
 0x931   : > { %4691 = vrsqrt.f32 %v2324_v28  ;;  %v2290_v9 = vmul.f32 %v5851_v6, %v5851_v6  ;;  %vm2339_vm4 = vmor %vm2337_vm3, %vm2338_vm2  ;;  %vm2347_vm6 = vweird.f32 %v2324_v28 }
 0x932   : > { %v2333_v51 = vmul.f32 %v4690_v59, %v2332_v7 }
 0x933   : > { %v2312_v10 = vsel %vm661_vm0, %v2290_v9, 0.0 }
 0x934   : > { %v2334_v18 = vmul.f32 0.5, %v2333_v51  ;;  %2313 = vadd.xlane.f32.xlu1 %v2312_v10 }
 0x936   : > { %v2335_v2 = vsub.f32 1.5, %v2334_v18 }
 0x937   : > { %v4692_v34 = vpop.eup %4691 }
 0x938   : > { %v2336_v37 = vmul.f32 %v4690_v59, %v2335_v2  ;;  %v2342_v60 = vmul.f32 %v4692_v34, %v2324_v28  ;;  %vm2348_vm5 = vweird.f32 %v4692_v34 }
 0x939   : > { %vm2349_vm7 = vmor %vm2347_vm6, %vm2348_vm5 }
 0x93a   : > { %v2343_v55 = vmul.f32 %v4692_v34, %v2342_v60  ;;  %v2340_v49 = vsel %vm2339_vm4, %v4690_v59, %v2336_v37 }
 0x93b   : > { %v2411_v5 = vmul.f32 %v2340_v49, %v5797_v29 }
 0x93c   : > { %v2344_v35 = vmul.f32 0.5, %v2343_v55 }
 0x93d   : > { %v2422_v14 = vmul.f32 %v5859_v31, %v2411_v5 }
 0x93e   : > { %v2345_v32 = vsub.f32 1.5, %v2344_v35 }
 0x93f   : > { %v5871_v25 = vadd.f32 %v5865_v52, %v2422_v14 }
 0x940   : > { %v2346_v27 = vmul.f32 %v4692_v34, %v2345_v32 }
 0x942   : > { %v2350_v11 = vsel %vm2349_vm7, %v4692_v34, %v2346_v27 }
 0x943   : > { %v2412_v19 = vmul.f32 %v2350_v11, %v5805_v38 }
 0x945   : > { %v2423_v62 = vmul.f32 %v5859_v31, %v2412_v19 }
 0x947   : > { %v5874_v29 = vadd.f32 %v5865_v52, %v2423_v62 }
 0x949   : > { %v2441_v54 = vpack.c.bf16 %v5874_v29, %v5871_v25 }
 0x94b   : > { %4327 = vmatmul.msk.bf16.vlgmr.msra.gmra.mxu0 %vm661_vm0, %v2441_v54 }
 0x94c   : > { %v2299_v36 = vpop.xlane.xlu2 %2298 }
 0x94d   : > { %v2317_v41 = vmul.f32 %v2299_v36, %v5075_v20 }
 0x94f   : > { %v2325_v53 = vadd.f32 1e-12, %v2317_v41 }
 0x951   : > { %4693 = vrsqrt.f32 %v2325_v53  ;;  %vm2357_vm9 = vweird.f32 %v2325_v53 }
 0x954   : > { %v2302_v26 = vpop.xlane.xlu0 %2301 }
 0x955   : > { %v2318_v38 = vmul.f32 %v2302_v26, %v5075_v20 }
 0x957   : > { %v4694_v46 = vpop.eup %4693  ;;  %v2326_v4 = vadd.f32 1e-12, %v2318_v38 }
 0x958   : > { %v2352_v45 = vmul.f32 %v4694_v46, %v2325_v53  ;;  %vm2358_vm8 = vweird.f32 %v4694_v46 }
 0x959   : > { %4695 = vrsqrt.f32 %v2326_v4  ;;  %vm2359_vm10 = vmor %vm2357_vm9, %vm2358_vm8  ;;  %vm2367_vm14 = vweird.f32 %v2326_v4 }
 0x95a   : > { %v2353_v22 = vmul.f32 %v4694_v46, %v2352_v45 }
 0x95c   : > { %v2354_v47 = vmul.f32 0.5, %v2353_v22  ;;  %v2305_v50 = vpop.xlane.xlu1 %2304 }
 0x95d   : > { %v2319_v12 = vmul.f32 %v2305_v50, %v5075_v20 }
 0x95e   : > { %v2355_v57 = vsub.f32 1.5, %v2354_v47 }
 0x95f   : > { %v4696_v16 = vpop.eup %4695  ;;  %v2327_v61 = vadd.f32 1e-12, %v2319_v12 }
 0x960   : > { %v2356_v48 = vmul.f32 %v4694_v46, %v2355_v57  ;;  %v2362_v23 = vmul.f32 %v4696_v16, %v2326_v4  ;;  %vm2368_vm13 = vweird.f32 %v4696_v16 }
 0x961   : > { %4697 = vrsqrt.f32 %v2327_v61  ;;  %vm2369_vm15 = vmor %vm2367_vm14, %vm2368_vm13  ;;  %vm2377_vm2 = vweird.f32 %v2327_v61 }
 0x962   : > { %v2363_v43 = vmul.f32 %v4696_v16, %v2362_v23  ;;  %v2360_v13 = vsel %vm2359_vm10, %v4694_v46, %v2356_v48 }
 0x963   : > { %v2413_v58 = vmul.f32 %v2360_v13, %v5813_v40 }
 0x964   : > { %v2364_v8 = vmul.f32 0.5, %v2363_v43  ;;  %v2308_v30 = vpop.xlane.xlu2 %2307 }
 0x965   : > { %v2320_v44 = vmul.f32 %v2308_v30, %v5075_v20  ;;  %v2424_v15 = vmul.f32 %v5859_v31, %v2413_v58 }
 0x966   : > { %v2365_v63 = vsub.f32 1.5, %v2364_v8 }
 0x967   : > { %v4698_v42 = vpop.eup %4697  ;;  %v2328_v21 = vadd.f32 1e-12, %v2320_v44  ;;  %v5888_v40 = vadd.f32 %v5865_v52, %v2424_v15 }
 0x968   : > { %v2366_v1 = vmul.f32 %v4696_v16, %v2365_v63  ;;  %v2372_v3 = vmul.f32 %v4698_v42, %v2327_v61  ;;  %vm2378_vm1 = vweird.f32 %v4698_v42 }
 0x969   : > { %4699 = vrsqrt.f32 %v2328_v21  ;;  %vm2379_vm3 = vmor %vm2377_vm2, %vm2378_vm1  ;;  %vm2387_vm5 = vweird.f32 %v2328_v21 }
 0x96a   : > { %v2370_v0 = vsel %vm2369_vm15, %v4696_v16, %v2366_v1  ;;  %v2373_v28 = vmul.f32 %v4698_v42, %v2372_v3 }
 0x96b   : > { %v2414_v33 = vmul.f32 %v2370_v0, %v5819_v24 }
 0x96c   : > { %v2374_v9 = vmul.f32 0.5, %v2373_v28 }
 0x96d   : > { %v2425_v59 = vmul.f32 %v5859_v31, %v2414_v33 }
 0x96e   : > { %v2375_v10 = vsub.f32 1.5, %v2374_v9 }
 0x96f   : > { %v5891_v7 = vadd.f32 %v5865_v52, %v2425_v59  ;;  %v4700_v24 = vpop.eup %4699 }
 0x970   : > { %v2376_v18 = vmul.f32 %v4698_v42, %v2375_v10  ;;  %v2382_v2 = vmul.f32 %v4700_v24, %v2328_v21  ;;  %vm2388_vm4 = vweird.f32 %v4700_v24 }
 0x971   : > { %v2442_v51 = vpack.c.bf16 %v5891_v7, %v5888_v40  ;;  %vm2389_vm6 = vmor %vm2387_vm5, %vm2388_vm4 }
 0x972   : > { %v2383_v34 = vmul.f32 %v4700_v24, %v2382_v2  ;;  %v2380_v37 = vsel %vm2379_vm3, %v4698_v42, %v2376_v18 }
 0x973   : > { %4328 = vmatmul.msk.bf16.gmra.mxu0 %vm661_vm0, %v2442_v51  ;;  %v2415_v49 = vmul.f32 %v2380_v37, %v5825_v17 }
 0x974   : > { %v2384_v60 = vmul.f32 0.5, %v2383_v34 }
 0x975   : > { %v2426_v27 = vmul.f32 %v5859_v31, %v2415_v49 }
 0x976   : > { %v2385_v55 = vsub.f32 1.5, %v2384_v60 }
 0x977   : > { %v5901_v14 = vadd.f32 %v5865_v52, %v2426_v27 }
 0x978   : > { %v2386_v35 = vmul.f32 %v4700_v24, %v2385_v55 }
 0x97a   : > { %v2390_v32 = vsel %vm2389_vm6, %v4700_v24, %v2386_v35 }
 0x97b   : > { %v2416_v5 = vmul.f32 %v2390_v32, %v5831_v39 }
 0x97d   : > { %v2427_v11 = vmul.f32 %v5859_v31, %v2416_v5 }
 0x97f   : > { %v5904_v19 = vadd.f32 %v5865_v52, %v2427_v11 }
 0x981   : > { %v2443_v62 = vpack.c.bf16 %v5904_v19, %v5901_v14 }
 0x983   : > { %4329 = vmatmul.msk.bf16.gmra.mxu0 %vm661_vm0, %v2443_v62 }
 0x99f   : > { %v2311_v17 = vpop.xlane.xlu0 %2310 }
 0x9a0   : > { %v2321_v54 = vmul.f32 %v2311_v17, %v5075_v20 }
 0x9a2   : > { %v2329_v36 = vadd.f32 1e-12, %v2321_v54 }
 0x9a4   : > { %4701 = vrsqrt.f32 %v2329_v36  ;;  %vm2397_vm8 = vweird.f32 %v2329_v36 }
 0x9a7   : > { %v2314_v39 = vpop.xlane.xlu1 %2313 }
 0x9a8   : > { %v2322_v41 = vmul.f32 %v2314_v39, %v5075_v20 }
 0x9aa   : > { %v4702_v53 = vpop.eup %4701  ;;  %v2330_v26 = vadd.f32 1e-12, %v2322_v41 }
 0x9ab   : > { %v2392_v38 = vmul.f32 %v4702_v53, %v2329_v36  ;;  %vm2398_vm7 = vweird.f32 %v4702_v53 }
 0x9ac   : > { %4703 = vrsqrt.f32 %v2330_v26  ;;  %vm2399_vm9 = vmor %vm2397_vm8, %vm2398_vm7  ;;  %vm2407_vm13 = vweird.f32 %v2330_v26 }
 0x9ad   : > { %v2393_v46 = vmul.f32 %v4702_v53, %v2392_v38 }
 0x9af   : > { %v2394_v4 = vmul.f32 0.5, %v2393_v46 }
 0x9b1   : > { %v2395_v45 = vsub.f32 1.5, %v2394_v4 }
 0x9b2   : > { %v4704_v22 = vpop.eup %4703 }
 0x9b3   : > { %v2396_v47 = vmul.f32 %v4702_v53, %v2395_v45  ;;  %v2402_v57 = vmul.f32 %v4704_v22, %v2330_v26  ;;  %vm2408_vm10 = vweird.f32 %v4704_v22 }
 0x9b4   : > { %vm2409_vm14 = vmor %vm2407_vm13, %vm2408_vm10 }
 0x9b5   : > { %v2403_v16 = vmul.f32 %v4704_v22, %v2402_v57  ;;  %v2400_v48 = vsel %vm2399_vm9, %v4702_v53, %v2396_v47 }
 0x9b6   : > { %v2417_v12 = vmul.f32 %v2400_v48, %v5838_v56 }
 0x9b7   : > { %v2404_v23 = vmul.f32 0.5, %v2403_v16 }
 0x9b8   : > { %v2428_v8 = vmul.f32 %v5859_v31, %v2417_v12 }
 0x9b9   : > { %v2405_v50 = vsub.f32 1.5, %v2404_v23 }
 0x9ba   : > { %v5916_v58 = vadd.f32 %v5865_v52, %v2428_v8 }
 0x9bb   : > { %v2406_v43 = vmul.f32 %v4704_v22, %v2405_v50 }
 0x9bd   : > { %v2410_v61 = vsel %vm2409_vm14, %v4704_v22, %v2406_v43 }
 0x9be   : > { %v2418_v13 = vmul.f32 %v2410_v61, %v5851_v6  ;;  %v4565_v6 = vld [vmem:[%s6760_s5 + $0x1] ss:$0 sm:$0xff] }
 0x9c0   : > { %v2429_v63 = vmul.f32 %v5859_v31, %v2418_v13 }
 0x9c2   : > { %v5919_v1 = vadd.f32 %v5865_v52, %v2429_v63 }
 0x9c4   : > { %v2444_v30 = vpack.c.bf16 %v5919_v1, %v5916_v58 }
 0x9c6   : > { %4330 = vmatmul.msk.bf16.gmra.mxu0 %vm661_vm0, %v2444_v30 }
 0x9c8   : > { %v2488_v56 = vpop.f32.mrf.mxu0 }
 0x9c9   : > { %v2489_v34 = vadd.f32 %v4565_v6, %v2488_v56 }
 0x9cb   : > { %v2508_v35 = vpack.c.bf16 %v2489_v34, %v2489_v34 }
 0x9cd   : > { %v2524_v5 = vunpack.c.l.b16 %v2508_v35 }
 0x9d0   : > { %v2490_v44 = vpop.f32.mrf.mxu0 }
 0x9d1   : > { %v2491_v18 = vadd.f32 %v4565_v6, %v2490_v44 }
 0x9d3   : > { %v2509_v55 = vpack.c.bf16 %v2491_v18, %v2491_v18 }
 0x9d5   : > { %v2525_v32 = vunpack.c.l.b16 %v2509_v55 }
 0x9d7   : > { %v5939_v27 = vpack.c.b16 %v2525_v32, %v2524_v5  ;;  %v4821_v32 = vld [vmem:[%s5283_s28 + $0x18] sm:$0xff] }
 0x9f0   : > { %v2493_v0 = vpop.f32.mrf.mxu0 }
 0x9f1   : > { %v2494_v42 = vadd.f32 %v4565_v6, %v2493_v0 }
 0x9f3   : > { %v2510_v33 = vpack.c.bf16 %v2494_v42, %v2494_v42 }
 0x9f5   : > { %v2526_v3 = vunpack.c.l.b16 %v2510_v33 }
 0x9f8   : > { %v2495_v31 = vpop.f32.mrf.mxu0 }
 0x9f9   : > { %v2496_v21 = vadd.f32 %v4565_v6, %v2495_v31 }
 0x9fb   : > { %v2511_v15 = vpack.c.bf16 %v2496_v21, %v2496_v21 }
 0x9fd   : > { %v2527_v52 = vunpack.c.l.b16 %v2511_v15 }
 0x9ff   : > { %v5927_v59 = vpack.c.b16 %v2527_v52, %v2526_v3  ;;  %v4819_v3 = vld [vmem:[%s5283_s28] sm:$0xff] }
 0xa00   : > { %v2498_v28 = vpop.f32.mrf.mxu0 }
 0xa01   : > { %2768 = vrot.lane.b32.xlu1 %v5927_v59, %s6767_s0  ;;  %v2499_v9 = vadd.f32 %v4565_v6, %v2498_v28 }
 0xa03   : > { %v2512_v10 = vpack.c.bf16 %v2499_v9, %v2499_v9 }
 0xa05   : > { %v2528_v37 = vunpack.c.l.b16 %v2512_v10  ;;  %v4820_v10 = vld [vmem:[%s5283_s28 + $0x8] sm:$0xff] }
 0xa08   : > { %v2500_v51 = vpop.f32.mrf.mxu0 }
 0xa09   : > { %2760 = vrot.lane.b32.xlu1 %v5927_v59, %s6768_s25  ;;  %v2501_v24 = vadd.f32 %v4565_v6, %v2500_v51 }
 0xa0b   : > { %v2513_v2 = vpack.c.bf16 %v2501_v24, %v2501_v24 }
 0xa0d   : > { %v2529_v60 = vunpack.c.l.b16 %v2513_v2 }
 0xa0f   : > { %v5933_v49 = vpack.c.b16 %v2529_v60, %v2528_v37 }
 0xa11   : > { %2762 = vrot.lane.b32.xlu1 %v5933_v49, %s6768_s25  ;;  %2770 = vrot.lane.b32.xlu0 %v5933_v49, %s6767_s0 }
 0xa19   : > { %2937 = vrot.lane.b32.xlu1 %v5927_v59, %s6769_s23  ;;  %2766 = vrot.lane.b32.xlu0 %v5939_v27, %s6767_s0 }
 0xa43   : > { %v2503_v11 = vpop.f32.mrf.mxu0 }
 0xa44   : > { %v2504_v62 = vadd.f32 %v4565_v6, %v2503_v11 }
 0xa46   : > { %v2514_v54 = vpack.c.bf16 %v2504_v62, %v2504_v62 }
 0xa48   : > { %v2530_v41 = vunpack.c.l.b16 %v2514_v54 }
 0xa4b   : > { %v2505_v17 = vpop.f32.mrf.mxu0 }
 0xa4c   : > { %v2506_v36 = vadd.f32 %v4565_v6, %v2505_v17 }
 0xa4e   : > { %v2515_v39 = vpack.c.bf16 %v2506_v36, %v2506_v36 }
 0xa50   : > { %v2531_v53 = vunpack.c.l.b16 %v2515_v39 }
 0xa52   : > { %v2535_v26 = vpack.c.b16 %v2531_v53, %v2530_v41  ;;  %v4822_v41 = vld [vmem:[%s5283_s28 + $0x10] sm:$0xff] }
 0xa54   : > { %2941 = vrot.lane.b32.xlu1 %v2535_v26, %s6769_s23  ;;  %2542 = vrot.lane.b32.xlu0 %v2535_v26, %s6770_s27 }
 0xa55   : > { %2772 = vrot.lane.b32.xlu2 %v2535_v26, %s6767_s0 }
 0xa5c   : > { %2538 = vrot.lane.b32.xlu0 %v5927_v59, %s6770_s27 }
 0xa5d   : > { %2758 = vrot.lane.b32.xlu2 %v5939_v27, %s6768_s25 }
 0xa64   : > { %2764 = vrot.lane.b32.xlu0 %v2535_v26, %s6768_s25 }
 0xa65   : > { %2540 = vrot.lane.b32.xlu2 %v5933_v49, %s6770_s27 }
 0xa6c   : > { %2935 = vrot.lane.b32.xlu0 %v5939_v27, %s6769_s23 }
 0xa6d   : > { %2536 = vrot.lane.b32.xlu2 %v5939_v27, %s6770_s27 }
 0xa73   : > { %v2769_v38 = vpop.permute.xlu1 %2768 }
 0xa74   : > { %2711 = vrot.lane.b32.xlu0 %v2535_v26, %s4895_s26  ;;  %v2790_v12 = vsel %vm976_vm11, %v2769_v38, 0 }
 0xa75   : > { %2939 = vrot.lane.b32.xlu2 %v5933_v49, %s6769_s23  ;;  %s636_s23 = sand.u32 1, %s4881_s22  }
 0xa76   : > { %s4229_s27 = sshll.u32 %s636_s23, 3 }
 0xa77   : > { %s638_s25 = scalar_lea.vmem [#allocation2], %s4229_s27 }
 0xa7b   : > { %v2761_v46 = vpop.permute.xlu1 %2760 }
 0xa83   : > { %v2771_v22 = vpop.permute.xlu0 %2770  ;;  %v2763_v47 = vpop.permute.xlu1 %2762 }
 0xa84   : > { %v2793_v16 = vsel %vm976_vm11, %v2771_v22, 0 }
 0xa8b   : > { %v2767_v48 = vpop.permute.xlu0 %2766  ;;  %v2938_v23 = vpop.permute.xlu1 %2937 }
 0xa8c   : > { %v2787_v63 = vsel %vm976_vm11, %v2767_v48, 0 }
 0xaaf   : > { %v2773_v4 = vpop.permute.xlu2 %2772 }
 0xab0   : > { %v2796_v45 = vsel %vm976_vm11, %v2773_v4, 0 }
 0xab1   : > { %2802 = vmatpush.bf16.xpose.msra.mxu3 %v2796_v45 }
 0xab7   : > { %v2759_v57 = vpop.permute.xlu2 %2758 }
 0xab9   : > { %2803 = vmatpush.bf16.xpose.msra.mxu3 %v2793_v16  ;;  %v4823_v16 = vld [vmem:[%s5283_s28 + $0x20] sm:$0xff] }
 0xabf   : > { %v2541_v50 = vpop.permute.xlu2 %2540 }
 0xac0   : > { %v2563_v44 = vsel %vm976_vm11, %v2541_v50, 0  ;;  %v4824_v50 = vld [vmem:[%s5283_s28 + $0x28] sm:$0xff] }
 0xac1   : > { %2804 = vmatpush.bf16.xpose.msra.mxu3 %v2790_v12 }
 0xac6   : > { %v2543_v43 = vpop.permute.xlu0 %2542  ;;  %v2942_v61 = vpop.permute.xlu1 %2941 }
 0xac7   : > { %v2566_v13 = vsel %vm976_vm11, %v2543_v43, 0  ;;  %v2537_v8 = vpop.permute.xlu2 %2536  ;;  %2963 = vmatpush.bf16.msrb.mxu0 %v2942_v61 }
 0xac8   : > { %2572 = vmatpush.bf16.xpose.msra.mxu2 %v2566_v13  ;;  %v2557_v31 = vsel %vm976_vm11, %v2537_v8, 0 }
 0xac9   : > { %2805 = vmatpush.bf16.xpose.msra.mxu3 %v2787_v63 }
 0xace   : > { %v2539_v30 = vpop.permute.xlu0 %2538 }
 0xacf   : > { %v2940_v56 = vpop.permute.xlu2 %2939  ;;  %v2560_v6 = vsel %vm976_vm11, %v2539_v30, 0 }
 0xad0   : > { %4339 = vmatmul.msk.bf16.vlgmr.msra.gmra.mxu3 %vm976_vm11, %v2759_v57  ;;  %2964 = vmatpush.bf16.msrb.mxu0 %v2940_v56 }
 0xad1   : > { %2573 = vmatpush.bf16.xpose.msra.mxu2 %v2563_v44 }
 0xad4   : > { %2965 = vmatpush.bf16.msrb.mxu0 %v2938_v23 }
 0xad6   : > { %v2765_v0 = vpop.permute.xlu0 %2764 }
 0xad9   : > { %2574 = vmatpush.bf16.xpose.msra.mxu2 %v2560_v6 }
 0xade   : > { %v2936_v42 = vpop.permute.xlu0 %2935 }
 0xadf   : > { %2966 = vmatpush.bf16.msrb.mxu0 %v2936_v42 }
 0xae0   : > { %4340 = vmatmul.msk.bf16.gmra.mxu3 %vm976_vm11, %v2761_v46 }
 0xae1   : > { %2575 = vmatpush.bf16.xpose.msra.mxu2 %v2557_v31 }
 0xae6   : > { %v2712_v33 = vpop.permute.xlu0 %2711 }
 0xae7   : > { %2733 = vmatpush.bf16.msra.mxu1 %v2712_v33 }
 0xae8   : > { %4331 = vmatmul.msk.bf16.vlgmr.msra.gmra.mxu2 %vm976_vm11, %v5939_v27 }
 0xaf0   : > { %4341 = vmatmul.msk.bf16.gmra.mxu3 %vm976_vm11, %v2763_v47 }
 0xaf8   : > { %4332 = vmatmul.msk.bf16.gmra.mxu2 %vm976_vm11, %v5927_v59 }
 0xb00   : > { %4342 = vmatmul.msk.bf16.gmra.mxu3 %vm976_vm11, %v2765_v0  ;;  %v4825_v0 = vld [vmem:[%s5283_s28 + $0x30] sm:$0xff] }
 0xb08   : > { %4333 = vmatmul.msk.bf16.gmra.mxu2 %vm976_vm11, %v5933_v49 }
 0xb18   : > { %4334 = vmatmul.msk.bf16.gmra.mxu2 %vm976_vm11, %v2535_v26 }
 0xb53   : > { %v2807_v21 = vpop.f32.mrf.mxu3 }
 0xb54   : > { %v2827_v15 = vmul.f32 0.25, %v2807_v21 }
 0xb56   : > { %v5982_v52 = vadd.f32 %v4819_v3, %v2827_v15 }
 0xb58   : > { %v2843_v28 = vsel %vm1046_vm12, %v5982_v52, -inf }
 0xb59   : > { %2844 = vmax.xlane.f32.xlu2 %v2843_v28 }
 0xb5b   : > { %v2809_v9 = vpop.f32.mrf.mxu3 }
 0xb5c   : > { %v2828_v51 = vmul.f32 0.25, %v2809_v9 }
 0xb5e   : > { %v5987_v24 = vadd.f32 %v4820_v10, %v2828_v51 }
 0xb60   : > { %v2846_v18 = vsel %vm1046_vm12, %v5987_v24, -inf }
 0xb61   : > { %2847 = vmax.xlane.f32.xlu1 %v2846_v18  ;;  %v4826_v18 = vld [vmem:[%s5283_s28 + $0x38] sm:$0xff] }
 0xb63   : > { %v2812_v2 = vpop.f32.mrf.mxu3 }
 0xb64   : > { %v2829_v11 = vmul.f32 0.25, %v2812_v2 }
 0xb66   : > { %v6001_v53 = vadd.f32 %v4822_v41, %v2829_v11 }
 0xb68   : > { %v2849_v4 = vsel %vm1046_vm12, %v6001_v53, -inf }
 0xb6b   : > { %v2577_v34 = vpop.f32.mrf.mxu2  ;;  %v2814_v37 = vpop.f32.mrf.mxu3 }
 0xb6c   : > { %v2597_v60 = vmul.f32 0.25, %v2577_v34  ;;  %v2830_v55 = vmul.f32 0.25, %v2814_v37 }
 0xb6e   : > { %v5991_v35 = vadd.f32 %v4819_v3, %v2597_v60  ;;  %v5994_v5 = vadd.f32 %v4821_v32, %v2830_v55 }
 0xb70   : > { %v2613_v62 = vsel %vm1046_vm12, %v5991_v35, -inf  ;;  %v2852_v17 = vsel %vm1046_vm12, %v5994_v5, -inf }
 0xb71   : > { %2614 = vmax.xlane.f32.xlu0 %v2613_v62  ;;  %2853 = vmax.xlane.f32.xlu2 %v2852_v17 }
 0xb73   : > { %v2579_v54 = vpop.f32.mrf.mxu2  ;;  %v2817_v36 = vpop.f32.mrf.mxu3 }
 0xb74   : > { %v2598_v39 = vmul.f32 0.25, %v2579_v54  ;;  %v2831_v38 = vmul.f32 0.25, %v2817_v36 }
 0xb76   : > { %v6003_v26 = vadd.f32 %v4820_v10, %v2598_v39  ;;  %v6010_v48 = vadd.f32 %v4823_v16, %v2831_v38 }
 0xb78   : > { %v2616_v46 = vsel %vm1046_vm12, %v6003_v26, -inf  ;;  %v2855_v61 = vsel %vm1046_vm12, %v6010_v48, -inf }
 0xb79   : > { %2617 = vmax.xlane.f32.xlu1 %v2616_v46  ;;  %2850 = vmax.xlane.f32.xlu0 %v2849_v4 }
 0xb7b   : > { %v2582_v45 = vpop.f32.mrf.mxu2  ;;  %v2819_v22 = vpop.f32.mrf.mxu3 }
 0xb7c   : > { %v2599_v47 = vmul.f32 0.25, %v2582_v45  ;;  %v2832_v57 = vmul.f32 0.25, %v2819_v22 }
 0xb7e   : > { %v6012_v23 = vadd.f32 %v4822_v41, %v2599_v47  ;;  %v6015_v12 = vadd.f32 %v4824_v50, %v2832_v57 }
 0xb80   : > { %v2619_v43 = vsel %vm1046_vm12, %v6012_v23, -inf  ;;  %v2858_v13 = vsel %vm1046_vm12, %v6015_v12, -inf }
 0xb81   : > { %2620 = vmax.xlane.f32.xlu0 %v2619_v43  ;;  %2856 = vmax.xlane.f32.xlu1 %v2855_v61 }
 0xb82   : > { %2859 = vmax.xlane.f32.xlu2 %v2858_v13 }
 0xb83   : > { %v2584_v8 = vpop.f32.mrf.mxu2  ;;  %v2822_v63 = vpop.f32.mrf.mxu3 }
 0xb84   : > { %v2600_v30 = vmul.f32 0.25, %v2584_v8  ;;  %v2833_v56 = vmul.f32 0.25, %v2822_v63 }
 0xb86   : > { %v6023_v44 = vadd.f32 %v4821_v32, %v2600_v30  ;;  %v6026_v6 = vadd.f32 %v4825_v0, %v2833_v56 }
 0xb88   : > { %v2622_v42 = vsel %vm1046_vm12, %v6023_v44, -inf  ;;  %v2861_v31 = vsel %vm1046_vm12, %v6026_v6, -inf }
 0xb89   : > { %2623 = vmax.xlane.f32.xlu0 %v2622_v42 }
 0xb8a   : > { %2862 = vmax.xlane.f32.xlu2 %v2861_v31 }
 0xb8b   : > { %v2587_v33 = vpop.f32.mrf.mxu2  ;;  %v2824_v15 = vpop.f32.mrf.mxu3 }
 0xb8c   : > { %v2601_v21 = vmul.f32 0.25, %v2587_v33  ;;  %v2834_v28 = vmul.f32 0.25, %v2824_v15 }
 0xb8e   : > { %v6032_v3 = vadd.f32 %v4823_v16, %v2601_v21  ;;  %v6037_v2 = vadd.f32 %v4826_v18, %v2834_v28 }
 0xb90   : > { %v2625_v9 = vsel %vm1046_vm12, %v6032_v3, -inf  ;;  %v2864_v60 = vsel %vm1046_vm12, %v6037_v2, -inf }
 0xb91   : > { %2626 = vmax.xlane.f32.xlu0 %v2625_v9 }
 0xb93   : > { %v2589_v51 = vpop.f32.mrf.mxu2 }
 0xb94   : > { %v2602_v10 = vmul.f32 0.25, %v2589_v51 }
 0xb96   : > { %v6039_v34 = vadd.f32 %v4824_v50, %v2602_v10 }
 0xb98   : > { %v2628_v37 = vsel %vm1046_vm12, %v6039_v34, -inf }
 0xb99   : > { %2629 = vmax.xlane.f32.xlu1 %v2628_v37  ;;  %2865 = vmax.xlane.f32.xlu0 %v2864_v60 }
 0xb9b   : > { %v2592_v55 = vpop.f32.mrf.mxu2 }
 0xb9c   : > { %v2603_v32 = vmul.f32 0.25, %v2592_v55 }
 0xb9e   : > { %v6045_v11 = vadd.f32 %v4825_v0, %v2603_v32 }
 0xba0   : > { %v2631_v62 = vsel %vm1046_vm12, %v6045_v11, -inf }
 0xba1   : > { %2632 = vmax.xlane.f32.xlu2 %v2631_v62 }
 0xba3   : > { %v2594_v17 = vpop.f32.mrf.mxu2 }
 0xba4   : > { %v2604_v54 = vmul.f32 0.25, %v2594_v17 }
 0xba6   : > { %v6049_v36 = vadd.f32 %v4826_v18, %v2604_v54 }
 0xba8   : > { %v2634_v39 = vsel %vm1046_vm12, %v6049_v36, -inf }
 0xba9   : > { %2635 = vmax.xlane.f32.xlu1 %v2634_v39 }
 0xbcc   : > { %v2845_v41 = vpop.xlane.xlu2 %2844 }
 0xbcd   : > { %v2867_v38 = vsub.f32 %v5982_v52, %v2845_v41 }
 0xbcf   : > { %v2875_v46 = vmul.f32 1.442695, %v2867_v38 }
 0xbd1   : > { %4705 = vpow2.f32 %v2875_v46 }
 0xbd4   : > { %v2848_v4 = vpop.xlane.xlu1 %2847 }
 0xbd5   : > { %v2868_v45 = vsub.f32 %v5987_v24, %v2848_v4 }
 0xbd7   : > { %v6055_v22 = vpop.eup %4705  ;;  %v2877_v47 = vmul.f32 1.442695, %v2868_v45 }
 0xbd8   : > { %v2891_v57 = vsel %vm1046_vm12, %v6055_v22, 0.0 }
 0xbd9   : > { %4707 = vpow2.f32 %v2877_v47  ;;  %2892 = vadd.xlane.f32.xlu2 %v2891_v57 }
 0xbdf   : > { %v6059_v16 = vpop.eup %4707 }
 0xbe0   : > { %v2894_v50 = vsel %vm1046_vm12, %v6059_v16, 0.0 }
 0xbe1   : > { %2895 = vadd.xlane.f32.xlu0 %v2894_v50 }
 0xbe4   : > { %v2615_v52 = vpop.xlane.xlu0 %2614  ;;  %v2854_v43 = vpop.xlane.xlu2 %2853 }
 0xbe5   : > { %v2637_v61 = vsub.f32 %v5991_v35, %v2615_v52  ;;  %v2870_v24 = vsub.f32 %v5994_v5, %v2854_v43 }
 0xbe7   : > { %v2645_v13 = vmul.f32 1.442695, %v2637_v61  ;;  %v2881_v8 = vmul.f32 1.442695, %v2870_v24 }
 0xbe9   : > { %4709 = vpow2.f32 %v2645_v13 }
 0xbea   : > { %4711 = vpow2.f32 %v2881_v8 }
 0xbec   : > { %v2618_v63 = vpop.xlane.xlu1 %2617  ;;  %v2851_v30 = vpop.xlane.xlu0 %2850 }
 0xbed   : > { %v2638_v56 = vsub.f32 %v6003_v26, %v2618_v63  ;;  %v2869_v31 = vsub.f32 %v6001_v53, %v2851_v30 }
 0xbef   : > { %v6066_v0 = vpop.eup %4709  ;;  %v2647_v42 = vmul.f32 1.442695, %v2638_v56  ;;  %v2879_v35 = vmul.f32 1.442695, %v2869_v31 }
 0xbf0   : > { %v2661_v33 = vsel %vm1046_vm12, %v6066_v0, 0.0  ;;  %v6071_v5 = vpop.eup %4711 }
 0xbf1   : > { %2662 = vadd.xlane.f32.xlu2 %v2661_v33  ;;  %4713 = vpow2.f32 %v2647_v42  ;;  %v2900_v51 = vsel %vm1046_vm12, %v6071_v5, 0.0 }
 0xbf2   : > { %4715 = vpow2.f32 %v2879_v35 }
 0xbf4   : > { %v2857_v21 = vpop.xlane.xlu1 %2856  ;;  %v2621_v55 = vpop.xlane.xlu0 %2620 }
 0xbf5   : > { %v2860_v15 = vpop.xlane.xlu2 %2859  ;;  %v2871_v28 = vsub.f32 %v6010_v48, %v2857_v21  ;;  %2705 = vrot.lane.b32.xlu0 %v5939_v27, %s4895_s26 }
 0xbf6   : > { %v2872_v53 = vsub.f32 %v6015_v12, %v2860_v15 }
 0xbf7   : > { %v2883_v26 = vmul.f32 1.442695, %v2871_v28  ;;  %v6076_v9 = vpop.eup %4713 }
 0xbf8   : > { %v2664_v10 = vsel %vm1046_vm12, %v6076_v9, 0.0  ;;  %v2885_v18 = vmul.f32 1.442695, %v2872_v53  ;;  %v6083_v48 = vpop.eup %4715 }
 0xbf9   : > { %2901 = vadd.xlane.f32.xlu2 %v2900_v51  ;;  %2665 = vadd.xlane.f32.xlu1 %v2664_v10  ;;  %4717 = vpow2.f32 %v2883_v26  ;;  %v2897_v37 = vsel %vm1046_vm12, %v6083_v48, 0.0 }
 0xbfa   : > { %4719 = vpow2.f32 %v2885_v18 }
 0xbfc   : > { %v2624_v39 = vpop.xlane.xlu0 %2623 }
 0xbfd   : > { %v2863_v62 = vpop.xlane.xlu2 %2862  ;;  %v2640_v41 = vsub.f32 %v6023_v44, %v2624_v39 }
 0xbfe   : > { %v2873_v17 = vsub.f32 %v6026_v6, %v2863_v62 }
 0xbff   : > { %v6085_v27 = vpop.eup %4717  ;;  %v2651_v38 = vmul.f32 1.442695, %v2640_v41 }
 0xc00   : > { %v2903_v12 = vsel %vm1046_vm12, %v6085_v27, 0.0  ;;  %v6091_v60 = vpop.eup %4719  ;;  %v2887_v54 = vmul.f32 1.442695, %v2873_v17 }
 0xc01   : > { %2898 = vadd.xlane.f32.xlu1 %v2897_v37  ;;  %2904 = vadd.xlane.f32.xlu2 %v2903_v12  ;;  %v2906_v32 = vsel %vm1046_vm12, %v6091_v60, 0.0 }
 0xc02   : > { %4721 = vpow2.f32 %v2887_v54 }
 0xc03   : > { %4723 = vpow2.f32 %v2651_v38 }
 0xc04   : > { %v2627_v44 = vpop.xlane.xlu0 %2626 }
 0xc05   : > { %v2641_v13 = vsub.f32 %v6032_v3, %v2627_v44 }
 0xc07   : > { %v2653_v24 = vmul.f32 1.442695, %v2641_v13 }
 0xc08   : > { %v6097_v4 = vpop.eup %4721 }
 0xc09   : > { %2907 = vadd.xlane.f32.xlu1 %v2906_v32  ;;  %v2909_v47 = vsel %vm1046_vm12, %v6097_v4, 0.0  ;;  %v6104_v57 = vpop.eup %4723 }
 0xc0a   : > { %v2670_v50 = vsel %vm1046_vm12, %v6104_v57, 0.0 }
 0xc0c   : > { %v2630_v46 = vpop.xlane.xlu1 %2629  ;;  %v2866_v52 = vpop.xlane.xlu0 %2865 }
 0xc0d   : > { %v2642_v45 = vsub.f32 %v6039_v34, %v2630_v46  ;;  %v2874_v43 = vsub.f32 %v6037_v2, %v2866_v52 }
 0xc0f   : > { %v2655_v6 = vmul.f32 1.442695, %v2642_v45  ;;  %v2889_v61 = vmul.f32 1.442695, %v2874_v43 }
 0xc11   : > { %4725 = vpow2.f32 %v2655_v6 }
 0xc12   : > { %4727 = vpow2.f32 %v2889_v61 }
 0xc13   : > { %4729 = vpow2.f32 %v2653_v24 }
 0xc14   : > { %v2633_v56 = vpop.xlane.xlu2 %2632 }
 0xc15   : > { %v2643_v31 = vsub.f32 %v6045_v11, %v2633_v56 }
 0xc17   : > { %v2657_v33 = vmul.f32 1.442695, %v2643_v31 }
 0xc19   : > { %2709 = vrot.lane.b32.xlu2 %v5933_v49, %s4895_s26  ;;  %v6110_v49 = vpop.eup %4725 }
 0xc1a   : > { %v2676_v34 = vsel %vm1046_vm12, %v6110_v49, 0.0  ;;  %v6117_v30 = vpop.eup %4727 }
 0xc1b   : > { %v2912_v2 = vsel %vm1046_vm12, %v6117_v30, 0.0  ;;  %v6123_v35 = vpop.eup %4729 }
 0xc1c   : > { %v2636_v63 = vpop.xlane.xlu1 %2635  ;;  %v2673_v21 = vsel %vm1046_vm12, %v6123_v35, 0.0 }
 0xc1d   : > { %v2644_v42 = vsub.f32 %v6049_v36, %v2636_v63 }
 0xc1f   : > { %2910 = vadd.xlane.f32.xlu0 %v2909_v47  ;;  %v2659_v3 = vmul.f32 1.442695, %v2644_v42 }
 0xc22   : > { %2707 = vrot.lane.b32.xlu1 %v5927_v59, %s4895_s26  ;;  %v2639_v59 = vsub.f32 %v6012_v23, %v2621_v55  ;;  %s4149_s26 = scalar_lea.hbm %s6728_s20, %s5052_s30 }
 0xc24   : > { %v2649_v8 = vmul.f32 1.442695, %v2639_v59 }
 0xc26   : > { %4731 = vpow2.f32 %v2649_v8 }
 0xc27   : > { %2671 = vadd.xlane.f32.xlu0 %v2670_v50  ;;  %4733 = vpow2.f32 %v2659_v3 }
 0xc28   : > { %4735 = vpow2.f32 %v2657_v33 }
 0xc2c   : > { %v6125_v23 = vpop.eup %4731 }
 0xc2d   : > { %v2667_v36 = vsel %vm1046_vm12, %v6125_v23, 0.0  ;;  %v6131_v11 = vpop.eup %4733 }
 0xc2e   : > { %v6133_v28 = vpop.eup %4735  ;;  %v2682_v26 = vsel %vm1046_vm12, %v6131_v11, 0.0 }
 0xc2f   : > { %2677 = vadd.xlane.f32.xlu0 %v2676_v34  ;;  %v2679_v51 = vsel %vm1046_vm12, %v6133_v28, 0.0 }
 0xc42   : > { %2913 = vadd.xlane.f32.xlu2 %v2912_v2 }
 0xc4a   : > { %2674 = vadd.xlane.f32.xlu2 %v2673_v21 }
 0xc4c   : > { %2668 = vadd.xlane.f32.xlu1 %v2667_v36  ;;  %v2893_v15 = vpop.xlane.xlu2 %2892 }
 0xc4d   : > { %4737 = vrcp.f32 %v2893_v15 }
 0xc52   : > { %2683 = vadd.xlane.f32.xlu2 %v2682_v26 }
 0xc53   : > { %v4738_v10 = vpop.eup %4737 }
 0xc54   : > { %v2896_v53 = vpop.xlane.xlu0 %2895  ;;  %2680 = vadd.xlane.f32.xlu1 %v2679_v51  ;;  %v2923_v37 = vmul.f32 %v4738_v10, %v6055_v22 }
 0xc55   : > { %4739 = vrcp.f32 %v2896_v53 }
 0xc5b   : > { %v4740_v18 = vpop.eup %4739 }
 0xc5c   : > { %v2924_v12 = vmul.f32 %v4740_v18, %v6059_v16 }
 0xc5e   : > { %v2931_v55 = vpack.c.bf16 %v2924_v12, %v2923_v37 }
 0xc60   : > { %4343 = vmatmul.msk.bf16.vlgmr.msrb.gmra.mxu0 %vm1046_vm12, %v2931_v55 }
 0xc64   : > { %v2663_v32 = vpop.xlane.xlu2 %2662 }
 0xc67   : > { %v2706_v59 = vpop.permute.xlu0 %2705 }
 0xc6c   : > { %v2902_v62 = vpop.xlane.xlu2 %2901  ;;  %v2666_v17 = vpop.xlane.xlu1 %2665 }
 0xc6d   : > { %4741 = vrcp.f32 %v2902_v62 }
 0xc73   : > { %v4742_v41 = vpop.eup %4741 }
 0xc74   : > { %v2899_v54 = vpop.xlane.xlu1 %2898  ;;  %v2905_v39 = vpop.xlane.xlu2 %2904  ;;  %v2926_v46 = vmul.f32 %v4742_v41, %v6071_v5 }
 0xc75   : > { %4743 = vrcp.f32 %v2899_v54 }
 0xc7b   : > { %v4744_v38 = vpop.eup %4743 }
 0xc7c   : > { %v2925_v45 = vmul.f32 %v4744_v38, %v6083_v48  ;;  %v2710_v47 = vpop.permute.xlu2 %2709  ;;  %v2908_v22 = vpop.xlane.xlu1 %2907 }
 0xc7d   : > { %2734 = vmatpush.bf16.msra.mxu1 %v2710_v47  ;;  %4745 = vrcp.f32 %v2908_v22 }
 0xc7e   : > { %v2932_v16 = vpack.c.bf16 %v2926_v46, %v2925_v45  ;;  %4747 = vrcp.f32 %v2905_v39 }
 0xc7f   : > { %4749 = vrcp.f32 %v2666_v17 }
 0xc80   : > { %4344 = vmatmul.msk.bf16.gmra.mxu0 %vm1046_vm12, %v2932_v16  ;;  %4751 = vrcp.f32 %v2663_v32 }
 0xc83   : > { %v4746_v6 = vpop.eup %4745 }
 0xc84   : > { %v4748_v44 = vpop.eup %4747  ;;  %v2928_v50 = vmul.f32 %v4746_v6, %v6091_v60 }
 0xc85   : > { %v2927_v34 = vmul.f32 %v4748_v44, %v6085_v27  ;;  %v4750_v5 = vpop.eup %4749 }
 0xc86   : > { %v4752_v43 = vpop.eup %4751  ;;  %v2694_v61 = vmul.f32 %v4750_v5, %v6076_v9 }
 0xc87   : > { %v2933_v52 = vpack.c.bf16 %v2928_v50, %v2927_v34  ;;  %v2693_v13 = vmul.f32 %v4752_v43, %v6066_v0 }
 0xc89   : > { %v2701_v24 = vpack.c.bf16 %v2694_v61, %v2693_v13 }
 0xc90   : > { %4345 = vmatmul.msk.bf16.gmra.mxu0 %vm1046_vm12, %v2933_v52 }
 0xc92   : > { %v2911_v60 = vpop.xlane.xlu0 %2910 }
 0xc93   : > { %4753 = vrcp.f32 %v2911_v60 }
 0xc94   : > { %v2708_v48 = vpop.permute.xlu1 %2707 }
 0xc95   : > { %2735 = vmatpush.bf16.msra.mxu1 %v2708_v48 }
 0xc99   : > { %2736 = vmatpush.bf16.msra.mxu1 %v2706_v59  ;;  %v4754_v8 = vpop.eup %4753 }
 0xc9a   : > { %v2672_v63 = vpop.xlane.xlu0 %2671  ;;  %v2929_v42 = vmul.f32 %v4754_v8, %v6097_v4 }
 0xc9c   : > { %4335 = vmatmul.msk.bf16.vlgmr.msra.gmra.mxu1 %vm1046_vm12, %v2701_v24 }
 0xca2   : > { %v2678_v26 = vpop.xlane.xlu0 %2677 }
 0xcb5   : > { %v2914_v27 = vpop.xlane.xlu2 %2913 }
 0xcb6   : > { %4755 = vrcp.f32 %v2914_v27 }
 0xcb7   : > { %4757 = vrcp.f32 %v2672_v63 }
 0xcbc   : > { %v4756_v56 = vpop.eup %4755 }
 0xcbd   : > { %v2930_v31 = vmul.f32 %v4756_v56, %v6117_v30  ;;  %v4758_v2 = vpop.eup %4757  ;;  %v2675_v36 = vpop.xlane.xlu2 %2674 }
 0xcbe   : > { %v2696_v21 = vmul.f32 %v4758_v2, %v6104_v57 }
 0xcbf   : > { %v2669_v9 = vpop.xlane.xlu1 %2668  ;;  %v2934_v0 = vpack.c.bf16 %v2930_v31, %v2929_v42 }
 0xcc0   : > { %4759 = vrcp.f32 %v2669_v9 }
 0xcc1   : > { %4346 = vmatmul.msk.bf16.gmra.mxu0 %vm1046_vm12, %v2934_v0  ;;  %4761 = vrcp.f32 %v2675_v36 }
 0xcc2   : > { %4763 = vrcp.f32 %v2678_v26 }
 0xcc5   : > { %v2684_v37 = vpop.xlane.xlu2 %2683 }
 0xcc6   : > { %v4760_v3 = vpop.eup %4759 }
 0xcc7   : > { %v2695_v33 = vmul.f32 %v4760_v3, %v6125_v23  ;;  %v4762_v4 = vpop.eup %4761  ;;  %v2681_v10 = vpop.xlane.xlu1 %2680 }
 0xcc8   : > { %v4764_v30 = vpop.eup %4763  ;;  %v2697_v53 = vmul.f32 %v4762_v4, %v6123_v35  ;;  %4765 = vrcp.f32 %v2681_v10 }
 0xcc9   : > { %v2702_v15 = vpack.c.bf16 %v2696_v21, %v2695_v33  ;;  %v2698_v51 = vmul.f32 %v4764_v30, %v6110_v49  ;;  %4767 = vrcp.f32 %v2684_v37 }
 0xccb   : > { %4336 = vmatmul.msk.bf16.gmra.mxu1 %vm1046_vm12, %v2702_v15  ;;  %v2703_v18 = vpack.c.bf16 %v2698_v51, %v2697_v53  ;;  %v4566_v51 = vld [vmem:[%s6763_s7 + $0x1] ss:$0 sm:$0xff]  ;;  %s4153_s7 = sshll.u32 %s4149_s26, 4  ;;  %s4154_s7 = int_to_ptr.hbm [resolvable:$true] %s4153_s7 }
 0xcce   : > { %v4766_v23 = vpop.eup %4765 }
 0xccf   : > { %v4768_v12 = vpop.eup %4767  ;;  %v2699_v62 = vmul.f32 %v4766_v23, %v6133_v28  ;;  %v4458_v28 = vld [vmem:[%s6762_s6 + $0x18] sm:$0xff] }
 0xcd0   : > { %v2700_v35 = vmul.f32 %v4768_v12, %v6131_v11  ;;  %3072 = vmatpush.bf16.msrb.mxu2 %v4458_v28  ;;  %v4457_v11 = vld [vmem:[%s6762_s6 + $0x10] sm:$0xff]  ;;  %s4847_s6 = scalar_lea.hbm %s6728_s20, 16 }
 0xcd2   : > { %v2704_v17 = vpack.c.bf16 %v2700_v35, %v2699_v62 }
 0xcd4   : > { %3073 = vmatpush.bf16.msrb.mxu2 %v4457_v11 }
 0xcdb   : > { %4337 = vmatmul.msk.bf16.gmra.mxu1 %vm1046_vm12, %v2703_v18 }
 0xcdd   : > { %v2968_v57 = vpop.f32.mrf.mxu0 }
 0xce5   : > { %v2970_v55 = vpop.f32.mrf.mxu0 }
 0xce6   : > { %v4535_v32 = vpack.i.bf16 %v2970_v55, %v2968_v57 }
 0xce8   : > { %4536 = vrot.lane.b32.xlu0 %v4535_v32, %s4897_s2 }
 0xceb   : > { %4338 = vmatmul.msk.bf16.gmra.mxu1 %vm1046_vm12, %v2704_v17 }
 0xcfd   : > { %v2973_v49 = vpop.f32.mrf.mxu0 }
 0xd05   : > { %v2975_v54 = vpop.f32.mrf.mxu0 }
 0xd06   : > { %v4540_v39 = vpack.i.bf16 %v2975_v54, %v2973_v49 }
 0xd08   : > { %4541 = vrot.lane.b32.xlu1 %v4540_v39, %s4897_s2 }
 0xd0d   : > { %v2978_v41 = vpop.f32.mrf.mxu0 }
 0xd15   : > { %v2980_v38 = vpop.f32.mrf.mxu0 }
 0xd16   : > { %v4545_v46 = vpack.i.bf16 %v2980_v38, %v2978_v41 }
 0xd18   : > { %4546 = vrot.lane.b32.xlu2 %v4545_v46, %s4897_s2 }
 0xd19   : > { %v2738_v16 = vpop.f32.mrf.mxu1 }
 0xd21   : > { %v2740_v34 = vpop.f32.mrf.mxu1 }
 0xd3e   : > { %v2983_v45 = vpop.f32.mrf.mxu0 }
 0xd46   : > { %v2985_v47 = vpop.f32.mrf.mxu0 }
 0xd47   : > { %v4550_v22 = vpack.i.bf16 %v2985_v47, %v2983_v45 }
 0xd48   : > { %v2743_v43 = vpop.f32.mrf.mxu1 }
 0xd49   : > { %4551 = vrot.lane.b32.xlu0 %v4550_v22, %s4897_s2  ;;  %s4151_s2 = sshll.u32 %s638_s25, 4  ;;  %s4152_s2 = int_to_ptr.vmem [resolvable:$true] %s4151_s2 }
 0xd50   : > { %v2745_v61 = vpop.f32.mrf.mxu1 }
 0xd58   : > { %v2748_v63 = vpop.f32.mrf.mxu1 }
 0xd5a   : > { %v4537_v6 = vpop.permute.xlu0 %4536 }
 0xd5b   : > { %v4539_v44 = vunpack.i.h.bf16 %v4537_v6  ;;  %v4538_v50 = vunpack.i.l.bf16 %v4537_v6 }
 0xd5d   : > { %v3020_v52 = vsel %vm976_vm11, %v2738_v16, %v4538_v50  ;;  %v3021_v5 = vsel %vm976_vm11, %v2740_v34, %v4539_v44 }
 0xd5e   : > { %v3028_v48 = vpack.c.bf16 %v3021_v5, %v3020_v52 }
 0xd60   : > { %4360 = vmatmul.msk.bf16.vlgmr.msrb.gmra.mxu2 %vm661_vm0, %v3028_v48  ;;  %v2750_v9 = vpop.f32.mrf.mxu1 }
 0xd68   : > { %v2753_v33 = vpop.f32.mrf.mxu1 }
 0xd70   : > { %v2755_v26 = vpop.f32.mrf.mxu1 }
 0xd72   : > { %v4547_v56 = vpop.permute.xlu2 %4546 }
 0xd73   : > { %v4549_v42 = vunpack.i.h.bf16 %v4547_v56  ;;  %v4548_v31 = vunpack.i.l.bf16 %v4547_v56 }
 0xd75   : > { %v3024_v0 = vsel %vm976_vm11, %v2748_v63, %v4548_v31  ;;  %v3025_v2 = vsel %vm976_vm11, %v2750_v9, %v4549_v42 }
 0xd76   : > { %v3030_v3 = vpack.c.bf16 %v3025_v2, %v3024_v0 }
 0xd7a   : > { %v4542_v13 = vpop.permute.xlu1 %4541 }
 0xd7b   : > { %v4544_v59 = vunpack.i.h.bf16 %v4542_v13  ;;  %v4543_v24 = vunpack.i.l.bf16 %v4542_v13 }
 0xd7d   : > { %v3023_v60 = vsel %vm976_vm11, %v2745_v61, %v4544_v59  ;;  %v3022_v27 = vsel %vm976_vm11, %v2743_v43, %v4543_v24 }
 0xd7e   : > { %v3029_v8 = vpack.c.bf16 %v3023_v60, %v3022_v27 }
 0xd80   : > { %4361 = vmatmul.msk.bf16.gmra.mxu2 %vm661_vm0, %v3029_v8 }
 0xd90   : > { %4362 = vmatmul.msk.bf16.gmra.mxu2 %vm661_vm0, %v3030_v3 }
 0xdbb   : > { %v4552_v21 = vpop.permute.xlu0 %4551 }
 0xdbc   : > { %v4554_v36 = vunpack.i.h.bf16 %v4552_v21  ;;  %v4553_v15 = vunpack.i.l.bf16 %v4552_v21 }
 0xdbe   : > { %v3026_v4 = vsel %vm976_vm11, %v2753_v33, %v4553_v15  ;;  %v3027_v30 = vsel %vm976_vm11, %v2755_v26, %v4554_v36 }
 0xdbf   : > { %v3031_v53 = vpack.c.bf16 %v3027_v30, %v3026_v4 }
 0xdc1   : > { %4363 = vmatmul.msk.bf16.gmra.mxu2 %vm661_vm0, %v3031_v53 }
 0xde3   : > { %v3075_v10 = vpop.f32.mrf.mxu2 }
 0xde4   : > { %v3076_v18 = vadd.f32 %v4566_v51, %v3075_v10 }
 0xde6   : > { %v3095_v37 = vadd.f32 %v3076_v18, %v5871_v25 }
 0xde8   : > { %v3107_v57 = vsel %vm661_vm0, %v3095_v37, 0.0 }
 0xde9   : > { %3108 = vadd.xlane.f32.xlu0 %v3107_v57 }
 0xdeb   : > { %v3077_v23 = vpop.f32.mrf.mxu2 }
 0xdec   : > { %v3078_v12 = vadd.f32 %v4566_v51, %v3077_v23 }
 0xdee   : > { %v3096_v55 = vadd.f32 %v3078_v12, %v5874_v29 }
 0xdf0   : > { %v3110_v32 = vsel %vm661_vm0, %v3096_v55, 0.0 }
 0xdf1   : > { %3111 = vadd.xlane.f32.xlu1 %v3110_v32 }
 0xe03   : > { %v3080_v62 = vpop.f32.mrf.mxu2 }
 0xe04   : > { %v3081_v35 = vadd.f32 %v4566_v51, %v3080_v62  ;;  %v4459_v62 = vld [vmem:[%s6764_s10 + $0x10] sm:$0xff] }
 0xe06   : > { %v3097_v17 = vadd.f32 %v3081_v35, %v5888_v40 }
 0xe08   : > { %v3113_v49 = vsel %vm661_vm0, %v3097_v17, 0.0 }
 0xe09   : > { %3114 = vadd.xlane.f32.xlu2 %v3113_v49 }
 0xe0b   : > { %v3082_v54 = vpop.f32.mrf.mxu2 }
 0xe0c   : > { %v3083_v39 = vadd.f32 %v4566_v51, %v3082_v54 }
 0xe0e   : > { %v3098_v25 = vadd.f32 %v3083_v39, %v5891_v7 }
 0xe10   : > { %v3116_v41 = vsel %vm661_vm0, %v3098_v25, 0.0 }
 0xe11   : > { %3117 = vadd.xlane.f32.xlu0 %v3116_v41 }
 0xe13   : > { %v3085_v38 = vpop.f32.mrf.mxu2 }
 0xe14   : > { %v3086_v46 = vadd.f32 %v4566_v51, %v3085_v38 }
 0xe16   : > { %v3099_v29 = vadd.f32 %v3086_v46, %v5901_v14 }
 0xe18   : > { %v3119_v28 = vsel %vm661_vm0, %v3099_v29, 0.0 }
 0xe19   : > { %3120 = vadd.xlane.f32.xlu1 %v3119_v28 }
 0xe1b   : > { %v3087_v11 = vpop.f32.mrf.mxu2 }
 0xe1c   : > { %v3088_v45 = vadd.f32 %v4566_v51, %v3087_v11 }
 0xe1e   : > { %v3100_v40 = vadd.f32 %v3088_v45, %v5904_v19 }
 0xe20   : > { %v3122_v47 = vsel %vm661_vm0, %v3100_v40, 0.0 }
 0xe21   : > { %3123 = vadd.xlane.f32.xlu2 %v3122_v47 }
 0xe44   : > { %v3090_v22 = vpop.f32.mrf.mxu2 }
 0xe45   : > { %v3091_v16 = vadd.f32 %v4566_v51, %v3090_v22 }
 0xe47   : > { %v3101_v7 = vadd.f32 %v3091_v16, %v5916_v58 }
 0xe49   : > { %v3125_v6 = vsel %vm661_vm0, %v3101_v7, 0.0 }
 0xe4a   : > { %3126 = vadd.xlane.f32.xlu2 %v3125_v6 }
 0xe4c   : > { %v3092_v34 = vpop.f32.mrf.mxu2 }
 0xe4d   : > { %v3093_v19 = vadd.f32 %v4566_v51, %v3092_v34 }
 0xe4f   : > { %v3102_v58 = vadd.f32 %v3093_v19, %v5919_v1 }
 0xe51   : > { %v3128_v24 = vsel %vm661_vm0, %v3102_v58, 0.0 }
 0xe5c   : > { %v3109_v44 = vpop.xlane.xlu0 %3108 }
 0xe5d   : > { %v3131_v14 = vmul.f32 %v3109_v44, %v5075_v20 }
 0xe5f   : > { %v6203_v50 = vsub.f32 %v3095_v37, %v3131_v14  ;;  %v6263_v14 = vld [vmem:[%s6765_s8 + $0x1] ss:$0 sm:$0xff]  ;;  %s4139_s8 = scalar_lea.sflag [#allocation3], %s636_s23 }
 0xe61   : > { %v3147_v52 = vmul.f32 %v6203_v50, %v6203_v50 }
 0xe63   : > { %v3155_v5 = vsel %vm661_vm0, %v3147_v52, 0.0 }
 0xe64   : > { %v3112_v48 = vpop.xlane.xlu1 %3111  ;;  %3156 = vadd.xlane.f32.xlu0 %v3155_v5  ;;  %v6269_v5 = vld [vmem:[%s6766_s9 + $0x1] ss:$0 sm:$0xff]  ;;  %s4841_s9 = sshra.s32 %s4154_s7, 4  ;;  %s4842_s9 = int_to_ptr.hbm [resolvable:$true] %s4841_s9 }
 0xe65   : > { %v3132_v43 = vmul.f32 %v3112_v48, %v5075_v20  ;;  %p4848_p1 = scmp.lt.s32.totalorder %s4842_s9, %s6728_s20 }
 0xe67   : > { %v6210_v61 = vsub.f32 %v3096_v55, %v3132_v43  ;;  %v4460_v55 = vld [vmem:[%s6764_s10 + $0x18] sm:$0xff]  ;;  %s4843_s10 = scalar_lea.hbm %s4842_s9, 8 }
 0xe68   : > { %3349 = vmatpush.bf16.msrb.mxu1 %v4460_v55  ;;  %p4844_p12 = scmp.ne.s32.totalorder %s4842_s9, %s4843_s10  ;;  %p4849_p2 = scmp.lt.s32.totalorder %s4847_s6, %s4843_s10 }
 0xe69   : > { %v3148_v13 = vmul.f32 %v6210_v61, %v6210_v61 }
 0xe6a   : > { %p4845_p13 = pnand %p4844_p12, %p5041_p5  ;;  %p4850_p3 = por %p4849_p2, %p4848_p1 }
 0xe6b   : > { %v3158_v59 = vsel %vm661_vm0, %v3148_v13, 0.0 }
 0xe6c   : > { %3159 = vadd.xlane.f32.xlu1 %v3158_v59  ;;  %3129 = vadd.xlane.f32.xlu0 %v3128_v24  ;;  %p4846_p0 = pneg %p4845_p13 }
 0xe6d   : > { %3350 = vmatpush.bf16.msrb.mxu1 %v4459_v62 }
 0xe6e   : > { %p4851_p4 = pnand %p4850_p3, %p4846_p0 }
 0xe7c   : > { %v3115_v60 = vpop.xlane.xlu2 %3114 }
 0xe7d   : > { %v3133_v27 = vmul.f32 %v3115_v60, %v5075_v20 }
 0xe7f   : > { %v6217_v8 = vsub.f32 %v3097_v17, %v3133_v27 }
 0xe81   : > { %v3149_v63 = vmul.f32 %v6217_v8, %v6217_v8 }
 0xe83   : > { %v3161_v1 = vsel %vm661_vm0, %v3149_v63, 0.0 }
 0xe84   : > { %v3118_v56 = vpop.xlane.xlu0 %3117  ;;  %3162 = vadd.xlane.f32.xlu1 %v3161_v1 }
 0xe85   : > { %v3134_v42 = vmul.f32 %v3118_v56, %v5075_v20 }
 0xe87   : > { %v6223_v31 = vsub.f32 %v3098_v25, %v3134_v42 }
 0xe89   : > { %v3150_v9 = vmul.f32 %v6223_v31, %v6223_v31 }
 0xe8b   : > { %v3164_v0 = vsel %vm661_vm0, %v3150_v9, 0.0 }
 0xe8c   : > { %v3121_v2 = vpop.xlane.xlu1 %3120  ;;  %3165 = vadd.xlane.f32.xlu2 %v3164_v0 }
 0xe8d   : > { %v3135_v3 = vmul.f32 %v3121_v2, %v5075_v20 }
 0xe8f   : > { %v6229_v33 = vsub.f32 %v3099_v29, %v3135_v3 }
 0xe91   : > { %v3151_v21 = vmul.f32 %v6229_v33, %v6229_v33 }
 0xe93   : > { %v3167_v36 = vsel %vm661_vm0, %v3151_v21, 0.0 }
 0xe94   : > { %3168 = vadd.xlane.f32.xlu0 %v3167_v36  ;;  %v3124_v15 = vpop.xlane.xlu2 %3123 }
 0xe95   : > { %v3136_v26 = vmul.f32 %v3124_v15, %v5075_v20 }
 0xe97   : > { %v6235_v4 = vsub.f32 %v3100_v40, %v3136_v26 }
 0xe99   : > { %v3152_v30 = vmul.f32 %v6235_v4, %v6235_v4 }
 0xe9b   : > { %v3170_v53 = vsel %vm661_vm0, %v3152_v30, 0.0 }
 0xe9c   : > { %3171 = vadd.xlane.f32.xlu1 %v3170_v53 }
 0xebd   : > { %v3127_v51 = vpop.xlane.xlu2 %3126 }
 0xebe   : > { %v3137_v10 = vmul.f32 %v3127_v51, %v5075_v20 }
 0xec0   : > { %v6241_v18 = vsub.f32 %v3101_v7, %v3137_v10 }
 0xec2   : > { %v3153_v37 = vmul.f32 %v6241_v18, %v6241_v18 }
 0xec4   : > { %v3173_v57 = vsel %vm661_vm0, %v3153_v37, 0.0 }
 0xec5   : > { %3174 = vadd.xlane.f32.xlu2 %v3173_v57 }
 0xed7   : > { %v3157_v23 = vpop.xlane.xlu0 %3156 }
 0xed8   : > { %v3179_v12 = vmul.f32 %v3157_v23, %v5075_v20 }
 0xeda   : > { %v3187_v32 = vadd.f32 1e-12, %v3179_v12 }
 0xedc   : > { %4769 = vrsqrt.f32 %v3187_v32  ;;  %vm3201_vm15 = vweird.f32 %v3187_v32 }
 0xedf   : > { %v3160_v35 = vpop.xlane.xlu1 %3159  ;;  %v3130_v17 = vpop.xlane.xlu0 %3129 }
 0xee0   : > { %v3180_v49 = vmul.f32 %v3160_v35, %v5075_v20  ;;  %v3138_v54 = vmul.f32 %v3130_v17, %v5075_v20 }
 0xee2   : > { %v4770_v39 = vpop.eup %4769  ;;  %v3188_v25 = vadd.f32 1e-12, %v3180_v49  ;;  %v6255_v41 = vsub.f32 %v3102_v58, %v3138_v54 }
 0xee3   : > { %v3196_v38 = vmul.f32 %v4770_v39, %v3187_v32  ;;  %vm3202_vm11 = vweird.f32 %v4770_v39 }
 0xee4   : > { %4771 = vrsqrt.f32 %v3188_v25  ;;  %v3154_v46 = vmul.f32 %v6255_v41, %v6255_v41  ;;  %vm3203_vm1 = vmor %vm3201_vm15, %vm3202_vm11  ;;  %vm3211_vm3 = vweird.f32 %v3188_v25 }
 0xee5   : > { %v3197_v29 = vmul.f32 %v4770_v39, %v3196_v38 }
 0xee6   : > { %v3176_v28 = vsel %vm661_vm0, %v3154_v46, 0.0 }
 0xee7   : > { %v3198_v11 = vmul.f32 0.5, %v3197_v29  ;;  %3177 = vadd.xlane.f32.xlu0 %v3176_v28 }
 0xee9   : > { %v3199_v45 = vsub.f32 1.5, %v3198_v11 }
 0xeea   : > { %v4772_v40 = vpop.eup %4771 }
 0xeeb   : > { %v3200_v47 = vmul.f32 %v4770_v39, %v3199_v45  ;;  %v3206_v22 = vmul.f32 %v4772_v40, %v3188_v25  ;;  %vm3212_vm2 = vweird.f32 %v4772_v40 }
 0xeec   : > { %vm3213_vm4 = vmor %vm3211_vm3, %vm3212_vm2 }
 0xeed   : > { %v3207_v16 = vmul.f32 %v4772_v40, %v3206_v22  ;;  %v3204_v7 = vsel %vm3203_vm1, %v4770_v39, %v3200_v47 }
 0xeee   : > { %v3275_v34 = vmul.f32 %v3204_v7, %v6203_v50 }
 0xeef   : > { %v3208_v6 = vmul.f32 0.5, %v3207_v16 }
 0xef0   : > { %v3286_v48 = vmul.f32 %v6263_v14, %v3275_v34 }
 0xef1   : > { %v3209_v44 = vsub.f32 1.5, %v3208_v6 }
 0xef2   : > { %v6276_v50 = vadd.f32 %v6269_v5, %v3286_v48 }
 0xef3   : > { %v3210_v52 = vmul.f32 %v4772_v40, %v3209_v44 }
 0xef5   : > { %v3214_v19 = vsel %vm3213_vm4, %v4772_v40, %v3210_v52 }
 0xef6   : > { %v3276_v43 = vmul.f32 %v3214_v19, %v6210_v61 }
 0xef7   : > { %v3163_v13 = vpop.xlane.xlu1 %3162 }
 0xef8   : > { %v3287_v58 = vmul.f32 %v6263_v14, %v3276_v43  ;;  %v3181_v59 = vmul.f32 %v3163_v13, %v5075_v20 }
 0xefa   : > { %v6279_v24 = vadd.f32 %v6269_v5, %v3287_v58  ;;  %v3189_v60 = vadd.f32 1e-12, %v3181_v59 }
 0xefc   : > { %v3305_v27 = vpack.c.bf16 %v6279_v24, %v6276_v50  ;;  %4773 = vrsqrt.f32 %v3189_v60  ;;  %vm3221_vm6 = vweird.f32 %v3189_v60 }
 0xefe   : > { %4379 = vmatmul.msk.bf16.vlgmr.msrb.gmra.mxu1 %vm661_vm0, %v3305_v27 }
 0xeff   : > { %v3166_v63 = vpop.xlane.xlu2 %3165 }
 0xf00   : > { %v3182_v61 = vmul.f32 %v3166_v63, %v5075_v20 }
 0xf02   : > { %v4774_v1 = vpop.eup %4773  ;;  %v3190_v56 = vadd.f32 1e-12, %v3182_v61 }
 0xf03   : > { %v3216_v42 = vmul.f32 %v4774_v1, %v3189_v60  ;;  %vm3222_vm5 = vweird.f32 %v4774_v1 }
 0xf04   : > { %4775 = vrsqrt.f32 %v3190_v56  ;;  %vm3223_vm7 = vmor %vm3221_vm6, %vm3222_vm5  ;;  %vm3231_vm9 = vweird.f32 %v3190_v56 }
 0xf05   : > { %v3217_v9 = vmul.f32 %v4774_v1, %v3216_v42 }
 0xf07   : > { %v3218_v0 = vmul.f32 0.5, %v3217_v9  ;;  %v3169_v2 = vpop.xlane.xlu0 %3168 }
 0xf08   : > { %v3183_v3 = vmul.f32 %v3169_v2, %v5075_v20 }
 0xf09   : > { %v3219_v21 = vsub.f32 1.5, %v3218_v0 }
 0xf0a   : > { %v4776_v36 = vpop.eup %4775  ;;  %v3191_v15 = vadd.f32 1e-12, %v3183_v3 }
 0xf0b   : > { %v3220_v26 = vmul.f32 %v4774_v1, %v3219_v21  ;;  %v3226_v30 = vmul.f32 %v4776_v36, %v3190_v56  ;;  %vm3232_vm8 = vweird.f32 %v4776_v36 }
 0xf0c   : > { %4777 = vrsqrt.f32 %v3191_v15  ;;  %vm3233_vm10 = vmor %vm3231_vm9, %vm3232_vm8  ;;  %vm3241_vm14 = vweird.f32 %v3191_v15 }
 0xf0d   : > { %v3227_v53 = vmul.f32 %v4776_v36, %v3226_v30  ;;  %v3224_v51 = vsel %vm3223_vm7, %v4774_v1, %v3220_v26 }
 0xf0e   : > { %v3277_v55 = vmul.f32 %v3224_v51, %v6217_v8 }
 0xf0f   : > { %v3228_v10 = vmul.f32 0.5, %v3227_v53  ;;  %v3172_v37 = vpop.xlane.xlu1 %3171 }
 0xf10   : > { %v3184_v57 = vmul.f32 %v3172_v37, %v5075_v20  ;;  %v3288_v39 = vmul.f32 %v6263_v14, %v3277_v55 }
 0xf11   : > { %v3229_v23 = vsub.f32 1.5, %v3228_v10 }
 0xf12   : > { %v4778_v12 = vpop.eup %4777  ;;  %v3192_v32 = vadd.f32 1e-12, %v3184_v57  ;;  %v6292_v28 = vadd.f32 %v6269_v5, %v3288_v39 }
 0xf13   : > { %v3230_v62 = vmul.f32 %v4776_v36, %v3229_v23  ;;  %v3236_v35 = vmul.f32 %v4778_v12, %v3191_v15  ;;  %vm3242_vm13 = vweird.f32 %v4778_v12 }
 0xf14   : > { %4779 = vrsqrt.f32 %v3192_v32  ;;  %vm3243_vm11 = vmor %vm3241_vm14, %vm3242_vm13  ;;  %vm3251_vm1 = vweird.f32 %v3192_v32 }
 0xf15   : > { %v3234_v17 = vsel %vm3233_vm10, %v4776_v36, %v3230_v62  ;;  %v3237_v49 = vmul.f32 %v4778_v12, %v3236_v35 }
 0xf16   : > { %v3278_v54 = vmul.f32 %v3234_v17, %v6223_v31 }
 0xf17   : > { %v3238_v25 = vmul.f32 0.5, %v3237_v49 }
 0xf18   : > { %v3289_v38 = vmul.f32 %v6263_v14, %v3278_v54 }
 0xf19   : > { %v3239_v46 = vsub.f32 1.5, %v3238_v25 }
 0xf1a   : > { %v4780_v29 = vpop.eup %4779  ;;  %v6295_v8 = vadd.f32 %v6269_v5, %v3289_v38 }
 0xf1b   : > { %v3240_v11 = vmul.f32 %v4778_v12, %v3239_v46  ;;  %v3246_v45 = vmul.f32 %v4780_v29, %v3192_v32  ;;  %vm3252_vm15 = vweird.f32 %v4780_v29 }
 0xf1c   : > { %v3306_v40 = vpack.c.bf16 %v6295_v8, %v6292_v28  ;;  %vm3253_vm2 = vmor %vm3251_vm1, %vm3252_vm15 }
 0xf1d   : > { %v3247_v31 = vmul.f32 %v4780_v29, %v3246_v45  ;;  %v3244_v47 = vsel %vm3243_vm11, %v4778_v12, %v3240_v11 }
 0xf1e   : > { %4380 = vmatmul.msk.bf16.gmra.mxu1 %vm661_vm0, %v3306_v40  ;;  %v3279_v7 = vmul.f32 %v3244_v47, %v6229_v33 }
 0xf1f   : > { %v3248_v22 = vmul.f32 0.5, %v3247_v31 }
 0xf20   : > { %v3290_v52 = vmul.f32 %v6263_v14, %v3279_v7 }
 0xf21   : > { %v3249_v16 = vsub.f32 1.5, %v3248_v22 }
 0xf22   : > { %v6305_v48 = vadd.f32 %v6269_v5, %v3290_v52 }
 0xf23   : > { %v3250_v6 = vmul.f32 %v4780_v29, %v3249_v16 }
 0xf25   : > { %v3254_v44 = vsel %vm3253_vm2, %v4780_v29, %v3250_v6 }
 0xf26   : > { %v3280_v34 = vmul.f32 %v3254_v44, %v6235_v4 }
 0xf28   : > { %v3291_v19 = vmul.f32 %v6263_v14, %v3280_v34 }
 0xf2a   : > { %v6308_v43 = vadd.f32 %v6269_v5, %v3291_v19  ;;  %v4464_v19 = vld [vmem:[%s6720_s12 + $0x38] sm:$0xff] }
 0xf2b   : > { %3782 = vmatpush.bf16.msrb.mxu3 %v4464_v19 }
 0xf2c   : > { %v3307_v58 = vpack.c.bf16 %v6308_v43, %v6305_v48 }
 0xf2e   : > { %4381 = vmatmul.msk.bf16.gmra.mxu1 %vm661_vm0, %v3307_v58 }
 0xf38   : > { %v3175_v33 = vpop.xlane.xlu2 %3174 }
 0xf39   : > { %v3185_v13 = vmul.f32 %v3175_v33, %v5075_v20 }
 0xf3b   : > { %v3193_v59 = vadd.f32 1e-12, %v3185_v13 }
 0xf3d   : > { %4781 = vrsqrt.f32 %v3193_v59  ;;  %vm3261_vm4 = vweird.f32 %v3193_v59 }
 0xf43   : > { %v4782_v4 = vpop.eup %4781 }
 0xf44   : > { %v3256_v60 = vmul.f32 %v4782_v4, %v3193_v59  ;;  %vm3262_vm3 = vweird.f32 %v4782_v4 }
 0xf45   : > { %vm3263_vm5 = vmor %vm3261_vm4, %vm3262_vm3 }
 0xf46   : > { %v3257_v27 = vmul.f32 %v4782_v4, %v3256_v60 }
 0xf48   : > { %v3258_v56 = vmul.f32 0.5, %v3257_v27 }
 0xf4a   : > { %v3259_v42 = vsub.f32 1.5, %v3258_v56 }
 0xf4c   : > { %v3260_v0 = vmul.f32 %v4782_v4, %v3259_v42 }
 0xf4e   : > { %v3264_v21 = vsel %vm3263_vm5, %v4782_v4, %v3260_v0 }
 0xf4f   : > { %v3281_v26 = vmul.f32 %v3264_v21, %v6241_v18  ;;  %v6330_v18 = vld [vmem:[%s6719_s11 + $0x1] ss:$0 sm:$0xff] }
 0xf51   : > { %v3292_v10 = vmul.f32 %v6263_v14, %v3281_v26 }
 0xf53   : > { %v6320_v57 = vadd.f32 %v6269_v5, %v3292_v10 }
 0xf5a   : > { %v3178_v63 = vpop.xlane.xlu0 %3177 }
 0xf5b   : > { %v3186_v61 = vmul.f32 %v3178_v63, %v5075_v20  ;;  %v4463_v63 = vld [vmem:[%s6720_s12 + $0x30] sm:$0xff] }
 0xf5c   : > { %3783 = vmatpush.bf16.msrb.mxu3 %v4463_v63 }
 0xf5d   : > { %v3194_v1 = vadd.f32 1e-12, %v3186_v61 }
 0xf5f   : > { %4783 = vrsqrt.f32 %v3194_v1  ;;  %vm3271_vm7 = vweird.f32 %v3194_v1 }
 0xf65   : > { %v4784_v9 = vpop.eup %4783 }
 0xf66   : > { %v3266_v2 = vmul.f32 %v4784_v9, %v3194_v1  ;;  %vm3272_vm6 = vweird.f32 %v4784_v9 }
 0xf67   : > { %vm3273_vm8 = vmor %vm3271_vm7, %vm3272_vm6 }
 0xf68   : > { %v3267_v3 = vmul.f32 %v4784_v9, %v3266_v2  ;;  %v4462_v2 = vld [vmem:[%s6720_s12 + $0x28] sm:$0xff] }
 0xf69   : > { %3784 = vmatpush.bf16.msrb.mxu3 %v4462_v2 }
 0xf6a   : > { %v3268_v36 = vmul.f32 0.5, %v3267_v3 }
 0xf6c   : > { %v3269_v15 = vsub.f32 1.5, %v3268_v36 }
 0xf6e   : > { %v3270_v30 = vmul.f32 %v4784_v9, %v3269_v15 }
 0xf70   : > { %v3274_v53 = vsel %vm3273_vm8, %v4784_v9, %v3270_v30 }
 0xf71   : > { %v3282_v51 = vmul.f32 %v3274_v53, %v6255_v41 }
 0xf73   : > { %v3293_v37 = vmul.f32 %v6263_v14, %v3282_v51  ;;  %v4461_v51 = vld [vmem:[%s6720_s12 + $0x20] sm:$0xff] }
 0xf74   : > { %3785 = vmatpush.bf16.msrb.mxu3 %v4461_v51 }
 0xf75   : > { %v6323_v23 = vadd.f32 %v6269_v5, %v3293_v37 }
 0xf77   : > { %v3308_v12 = vpack.c.bf16 %v6323_v23, %v6320_v57 }
 0xf79   : > { %4382 = vmatmul.msk.bf16.gmra.mxu1 %vm661_vm0, %v3308_v12 }
 0xf7b   : > { %v3352_v41 = vpop.f32.mrf.mxu1 }
 0xf7c   : > { %v6334_v55 = vadd.f32 %v6330_v18, %v3352_v41 }
 0xf7e   : > { %v6337_v14 = vmul.f32 0.70710677, %v6334_v55 }
 0xf80   : > { %v3388_v5 = vmul.f32 %v6337_v14, %v6337_v14 }
 0xf82   : > { %v3389_v32 = vmin.f32 %v3388_v5, 16.0 }
 0xf83   : > { %v3354_v62 = vpop.f32.mrf.mxu1 }
 0xf84   : > { %v3390_v35 = vmul.f32 2.1237322e-06, %v3389_v32  ;;  %v3401_v17 = vmul.f32 3.8918573e-05, %v3389_v32  ;;  %v6342_v49 = vadd.f32 %v6330_v18, %v3354_v62 }
 0xf86   : > { %v3391_v54 = vadd.f32 0.00028619796, %v3390_v35  ;;  %v3402_v39 = vadd.f32 0.001143296, %v3401_v17  ;;  %v6345_v25 = vmul.f32 0.70710677, %v6342_v49 }
 0xf88   : > { %v3403_v38 = vmul.f32 %v3402_v39, %v3389_v32  ;;  %v3428_v46 = vmul.f32 %v6345_v25, %v6345_v25  ;;  %v3392_v29 = vmul.f32 %v3391_v54, %v3389_v32 }
 0xf8a   : > { %v3404_v11 = vadd.f32 0.014752088, %v3403_v38  ;;  %v3429_v45 = vmin.f32 %v3428_v46, 16.0  ;;  %v3393_v22 = vadd.f32 0.0036580483, %v3392_v29 }
 0xf8c   : > { %v3405_v40 = vmul.f32 %v3404_v11, %v3389_v32  ;;  %v3430_v31 = vmul.f32 2.1237322e-06, %v3429_v45  ;;  %v3441_v47 = vmul.f32 3.8918573e-05, %v3429_v45  ;;  %v3394_v58 = vmul.f32 %v3393_v22, %v3389_v32 }
 0xf8e   : > { %v3406_v16 = vadd.f32 0.112945676, %v3405_v40  ;;  %v3431_v7 = vadd.f32 0.00028619796, %v3430_v31  ;;  %v3442_v6 = vadd.f32 0.001143296, %v3441_v47 }
 0xf8f   : > { %v3395_v61 = vadd.f32 0.05243302, %v3394_v58 }
 0xf90   : > { %v3407_v44 = vmul.f32 %v3406_v16, %v3389_v32  ;;  %v3432_v34 = vmul.f32 %v3431_v7, %v3429_v45  ;;  %v3443_v52 = vmul.f32 %v3442_v6, %v3429_v45 }
 0xf91   : > { %v3396_v0 = vmul.f32 %v3395_v61, %v3389_v32 }
 0xf92   : > { %v3408_v33 = vadd.f32 0.4994258, %v3407_v44  ;;  %v3433_v13 = vadd.f32 0.0036580483, %v3432_v34  ;;  %v3444_v59 = vadd.f32 0.014752088, %v3443_v52 }
 0xf93   : > { %v3397_v53 = vadd.f32 0.18741608, %v3396_v0 }
 0xf94   : > { %v3409_v4 = vmul.f32 %v3408_v33, %v3389_v32  ;;  %v3434_v60 = vmul.f32 %v3433_v13, %v3429_v45  ;;  %v3445_v27 = vmul.f32 %v3444_v59, %v3429_v45 }
 0xf95   : > { %v3398_v62 = vmul.f32 %v3397_v53, %v3389_v32 }
 0xf96   : > { %v3410_v1 = vadd.f32 1.0, %v3409_v4  ;;  %v3446_v56 = vadd.f32 0.112945676, %v3445_v27  ;;  %v3435_v42 = vadd.f32 0.05243302, %v3434_v60 }
 0xf97   : > { %v3399_v31 = vadd.f32 1.1283791, %v3398_v62 }
 0xf98   : > { %4785 = vrcp.f32 %v3410_v1  ;;  %v3447_v9 = vmul.f32 %v3446_v56, %v3429_v45  ;;  %v3436_v36 = vmul.f32 %v3435_v42, %v3429_v45  ;;  %v3422_v54 = vand.u32 2147483648, %v3410_v1 }
 0xf99   : > { %v3420_v39 = vand.u32 2147483647, %v3410_v1  ;;  %vm3416_vm10 = vweird.f32 %v3410_v1  ;;  %v3400_v33 = vmul.f32 %v3399_v31, %v6337_v14 }
 0xf9a   : > { %v3448_v3 = vadd.f32 0.4994258, %v3447_v9  ;;  %v3437_v5 = vadd.f32 0.18741608, %v3436_v36  ;;  %v3423_v7 = vor.u32 1.1754944e-38, %v3422_v54 }
 0xf9b   : > { %v3357_v21 = vpop.f32.mrf.mxu1  ;;  %vm3421_vm14 = vcmp.eq.f32.partialorder %v3420_v39, 8.507059e+37 }
 0xf9c   : > { %v3449_v15 = vmul.f32 %v3448_v3, %v3429_v45  ;;  %v6359_v26 = vadd.f32 %v6330_v18, %v3357_v21  ;;  %v3438_v11 = vmul.f32 %v3437_v5, %v3429_v45 }
 0xf9e   : > { %v4786_v30 = vpop.eup %4785  ;;  %v3450_v37 = vadd.f32 1.0, %v3449_v15  ;;  %v6365_v12 = vmul.f32 0.70710677, %v6359_v26  ;;  %v3439_v45 = vadd.f32 1.1283791, %v3438_v11 }
 0xf9f   : > { %v3412_v10 = vmul.f32 %v4786_v30, %v3410_v1  ;;  %vm3417_vm9 = vweird.f32 %v4786_v30 }
 0xfa0   : > { %4787 = vrcp.f32 %v3450_v37  ;;  %v3468_v35 = vmul.f32 %v6365_v12, %v6365_v12  ;;  %vm3418_vm13 = vmor %vm3416_vm10, %vm3417_vm9  ;;  %v3460_v4 = vand.u32 2147483647, %v3450_v37  ;;  %v3462_v60 = vand.u32 2147483648, %v3450_v37 }
 0xfa1   : > { %v3413_v41 = vsub.f32 1.0, %v3412_v10  ;;  %v3440_v9 = vmul.f32 %v3439_v45, %v6345_v25  ;;  %vm3456_vm15 = vweird.f32 %v3450_v37 }
 0xfa2   : > { %v6369_v38 = vmin.f32 %v3468_v35, 16.0  ;;  %vm3461_vm2 = vcmp.eq.f32.partialorder %v3460_v4, 8.507059e+37  ;;  %v3463_v15 = vor.u32 1.1754944e-38, %v3462_v60 }
 0xfa3   : > { %v3414_v17 = vmul.f32 %v4786_v30, %v3413_v41  ;;  %v3359_v46 = vpop.f32.mrf.mxu1 }
 0xfa4   : > { %v6372_v40 = vadd.f32 %v6330_v18, %v3359_v46  ;;  %v3470_v32 = vmul.f32 2.1237322e-06, %v6369_v38  ;;  %v3481_v47 = vmul.f32 3.8918573e-05, %v6369_v38 }
 0xfa5   : > { %v3415_v29 = vadd.f32 %v4786_v30, %v3414_v17 }
 0xfa6   : > { %v4788_v22 = vpop.eup %4787  ;;  %v6377_v6 = vmul.f32 0.70710677, %v6372_v40  ;;  %v3471_v34 = vadd.f32 0.00028619796, %v3470_v32  ;;  %v3482_v19 = vadd.f32 0.001143296, %v3481_v47 }
 0xfa7   : > { %v3419_v16 = vsel %vm3418_vm13, %v4786_v30, %v3415_v29  ;;  %v3452_v44 = vmul.f32 %v4788_v22, %v3450_v37  ;;  %vm3457_vm11 = vweird.f32 %v4788_v22 }
 0xfa8   : > { %v3424_v52 = vsel %vm3421_vm14, %v3423_v7, %v3419_v16  ;;  %v3508_v58 = vmul.f32 %v6377_v6, %v6377_v6  ;;  %v3472_v59 = vmul.f32 %v3471_v34, %v6369_v38  ;;  %v3483_v27 = vmul.f32 %v3482_v19, %v6369_v38  ;;  %vm3458_vm1 = vmor %vm3456_vm15, %vm3457_vm11 }
 0xfa9   : > { %v3453_v13 = vsub.f32 1.0, %v3452_v44  ;;  %v3425_v61 = vmul.f32 %v3424_v52, %v3400_v33  ;;  %v3372_v16 = vmul.f32 0.5, %v6334_v55  ;;  %v3373_v34 = vmul.f32 0.5, %v6342_v49 }
 0xfaa   : > { %v6384_v63 = vmin.f32 %v3508_v58, 16.0  ;;  %v3473_v56 = vadd.f32 0.0036580483, %v3472_v59  ;;  %v3484_v0 = vadd.f32 0.014752088, %v3483_v27 }
 0xfab   : > { %v3454_v1 = vmul.f32 %v4788_v22, %v3453_v13  ;;  %v3362_v42 = vpop.f32.mrf.mxu1  ;;  %v4383_v51 = vclamps-f32 %v3425_v61, 1.0 }
 0xfac   : > { %v3510_v2 = vmul.f32 2.1237322e-06, %v6384_v63  ;;  %v6389_v14 = vadd.f32 %v6330_v18, %v3362_v42  ;;  %v3474_v21 = vmul.f32 %v3473_v56, %v6369_v38  ;;  %v3521_v36 = vmul.f32 3.8918573e-05, %v6384_v63 }
 0xfad   : > { %v3455_v3 = vadd.f32 %v4788_v22, %v3454_v1  ;;  %v3485_v30 = vmul.f32 %v3484_v0, %v6369_v38  ;;  %v3708_v11 = vadd.f32 1.0, %v4383_v51 }
 0xfae   : > { %v3511_v53 = vadd.f32 0.00028619796, %v3510_v2  ;;  %v3522_v10 = vadd.f32 0.001143296, %v3521_v36  ;;  %v6395_v41 = vmul.f32 0.70710677, %v6389_v14 }
 0xfaf   : > { %v3459_v25 = vsel %vm3458_vm1, %v4788_v22, %v3455_v3  ;;  %v3486_v62 = vadd.f32 0.112945676, %v3485_v30  ;;  %v3475_v17 = vadd.f32 0.05243302, %v3474_v21  ;;  %v3716_v55 = vmul.f32 %v3708_v11, %v3372_v16 }
 0xfb0   : > { %v3464_v5 = vsel %vm3461_vm2, %v3463_v15, %v3459_v25  ;;  %v3512_v37 = vmul.f32 %v3511_v53, %v6384_v63  ;;  %v3523_v54 = vmul.f32 %v3522_v10, %v6384_v63  ;;  %v3548_v39 = vmul.f32 %v6395_v41, %v6395_v41 }
 0xfb1   : > { %v3465_v35 = vmul.f32 %v3464_v5, %v3440_v9  ;;  %v3487_v46 = vmul.f32 %v3486_v62, %v6369_v38  ;;  %v3476_v45 = vmul.f32 %v3475_v17, %v6369_v38 }
 0xfb2   : > { %v3513_v29 = vadd.f32 0.0036580483, %v3512_v37  ;;  %v3524_v32 = vadd.f32 0.014752088, %v3523_v54  ;;  %v6402_v47 = vmin.f32 %v3548_v39, 16.0 }
 0xfb3   : > { %v4384_v31 = vclamps-f32 %v3465_v35, 1.0  ;;  %v3364_v22 = vpop.f32.mrf.mxu1  ;;  %v3488_v7 = vadd.f32 0.4994258, %v3487_v46  ;;  %v3477_v42 = vadd.f32 0.18741608, %v3476_v45 }
 0xfb4   : > { %v6406_v44 = vadd.f32 %v6330_v18, %v3364_v22  ;;  %v3525_v19 = vmul.f32 %v3524_v32, %v6384_v63  ;;  %v3514_v33 = vmul.f32 %v3513_v29, %v6384_v63  ;;  %v3550_v13 = vmul.f32 2.1237322e-06, %v6402_v47 }
 0xfb5   : > { %v3709_v52 = vadd.f32 1.0, %v4384_v31  ;;  %v3489_v58 = vmul.f32 %v3488_v7, %v6369_v38  ;;  %v3561_v59 = vmul.f32 3.8918573e-05, %v6402_v47  ;;  %v3478_v30 = vmul.f32 %v3477_v42, %v6369_v38 }
 0xfb6   : > { %v3526_v60 = vadd.f32 0.112945676, %v3525_v19  ;;  %v6416_v49 = vmul.f32 0.70710677, %v6406_v44  ;;  %v3515_v9 = vadd.f32 0.05243302, %v3514_v33 }
 0xfb7   : > { %v3717_v4 = vmul.f32 %v3709_v52, %v3373_v34  ;;  %v3490_v27 = vadd.f32 1.0, %v3489_v58  ;;  %v3562_v61 = vadd.f32 0.001143296, %v3561_v59  ;;  %v3551_v0 = vadd.f32 0.00028619796, %v3550_v13 }
 0xfb8   : > { %v3527_v56 = vmul.f32 %v3526_v60, %v6384_v63  ;;  %v3588_v21 = vmul.f32 %v6416_v49, %v6416_v49  ;;  %v3516_v53 = vmul.f32 %v3515_v9, %v6384_v63  ;;  %v3479_v54 = vadd.f32 1.1283791, %v3478_v30 }
 0xfb9   : > { %v3724_v1 = vpack.c.bf16 %v3717_v4, %v3716_v55  ;;  %4789 = vrcp.f32 %v3490_v27  ;;  %v3563_v3 = vmul.f32 %v3562_v61, %v6402_v47  ;;  %v3552_v51 = vmul.f32 %v3551_v0, %v6402_v47 }
 0xfba   : > { %v3528_v2 = vadd.f32 0.4994258, %v3527_v56  ;;  %v6427_v25 = vmin.f32 %v3588_v21, 16.0  ;;  %v3517_v39 = vadd.f32 0.18741608, %v3516_v53  ;;  %v3502_v32 = vand.u32 2147483648, %v3490_v27 }
 0xfbb   : > { %4416 = vmatmul.msk.bf16.vlgmr.msrb.gmra.mxu3 %vm1046_vm12, %v3724_v1  ;;  %v3564_v15 = vadd.f32 0.014752088, %v3563_v3  ;;  %v3553_v46 = vadd.f32 0.0036580483, %v3552_v51  ;;  %v3500_v31 = vand.u32 2147483647, %v3490_v27  ;;  %vm3496_vm4 = vweird.f32 %v3490_v27 }
 0xfbc   : > { %v3529_v36 = vmul.f32 %v3528_v2, %v6384_v63  ;;  %v3590_v37 = vmul.f32 2.1237322e-06, %v6427_v25  ;;  %v3601_v35 = vmul.f32 3.8918573e-05, %v6427_v25  ;;  %v3518_v52 = vmul.f32 %v3517_v39, %v6384_v63 }
 0xfbd   : > { %v3565_v5 = vmul.f32 %v3564_v15, %v6402_v47  ;;  %v3554_v33 = vmul.f32 %v3553_v46, %v6402_v47  ;;  %v3480_v59 = vmul.f32 %v3479_v54, %v6365_v12  ;;  %v3503_v55 = vor.u32 1.1754944e-38, %v3502_v32 }
 0xfbe   : > { %v3530_v10 = vadd.f32 1.0, %v3529_v36  ;;  %v3591_v11 = vadd.f32 0.00028619796, %v3590_v37  ;;  %v3602_v22 = vadd.f32 0.001143296, %v3601_v35  ;;  %vm3501_vm6 = vcmp.eq.f32.partialorder %v3500_v31, 8.507059e+37 }
 0xfbf   : > { %v4790_v62 = vpop.eup %4789  ;;  %v3566_v29 = vadd.f32 0.112945676, %v3565_v5  ;;  %v3519_v42 = vadd.f32 1.1283791, %v3518_v52  ;;  %v3555_v3 = vadd.f32 0.05243302, %v3554_v33 }
 0xfc0   : > { %v3492_v17 = vmul.f32 %v4790_v62, %v3490_v27  ;;  %4791 = vrcp.f32 %v3530_v10  ;;  %vm3497_vm3 = vweird.f32 %v4790_v62  ;;  %v3592_v34 = vmul.f32 %v3591_v11, %v6427_v25 }
 0xfc1   : > { %v3567_v7 = vmul.f32 %v3566_v29, %v6402_v47  ;;  %v3603_v45 = vmul.f32 %v3602_v22, %v6427_v25  ;;  %vm3498_vm5 = vmor %vm3496_vm4, %vm3497_vm3  ;;  %v3540_v27 = vand.u32 2147483647, %v3530_v10  ;;  %v3542_v2 = vand.u32 2147483648, %v3530_v10 }
 0xfc2   : > { %v3493_v38 = vsub.f32 1.0, %v3492_v17  ;;  %v3593_v56 = vadd.f32 0.0036580483, %v3592_v34  ;;  %vm3536_vm8 = vweird.f32 %v3530_v10  ;;  %v3520_v5 = vmul.f32 %v3519_v42, %v6377_v6 }
 0xfc3   : > { %v3568_v13 = vadd.f32 0.4994258, %v3567_v7  ;;  %v3604_v60 = vadd.f32 0.014752088, %v3603_v45  ;;  %v3556_v37 = vmul.f32 %v3555_v3, %v6402_v47  ;;  %vm3541_vm10 = vcmp.eq.f32.partialorder %v3540_v27, 8.507059e+37 }
 0xfc4   : > { %v3494_v16 = vmul.f32 %v4790_v62, %v3493_v38  ;;  %v3594_v30 = vmul.f32 %v3593_v56, %v6427_v25  ;;  %v3374_v7 = vmul.f32 0.5, %v6359_v26  ;;  %v3375_v34 = vmul.f32 0.5, %v6372_v40 }
 0xfc5   : > { %v3569_v1 = vmul.f32 %v3568_v13, %v6402_v47  ;;  %v3605_v0 = vmul.f32 %v3604_v60, %v6427_v25  ;;  %v3557_v31 = vadd.f32 0.18741608, %v3556_v37  ;;  %v3376_v37 = vmul.f32 0.5, %v6389_v14 }
 0xfc6   : > { %v4792_v19 = vpop.eup %4791  ;;  %v3495_v58 = vadd.f32 %v4790_v62, %v3494_v16  ;;  %v3595_v46 = vadd.f32 0.05243302, %v3594_v30 }
 0xfc7   : > { %v3532_v4 = vmul.f32 %v4792_v19, %v3530_v10  ;;  %v3570_v21 = vadd.f32 1.0, %v3569_v1  ;;  %vm3537_vm7 = vweird.f32 %v4792_v19  ;;  %v3606_v15 = vadd.f32 0.112945676, %v3605_v0 }
 0xfc8   : > { %v3499_v61 = vsel %vm3498_vm5, %v4790_v62, %v3495_v58  ;;  %vm3538_vm9 = vmor %vm3536_vm8, %vm3537_vm7  ;;  %v3543_v62 = vor.u32 1.1754944e-38, %v3542_v2  ;;  %v3596_v6 = vmul.f32 %v3595_v46, %v6427_v25 }
 0xfc9   : > { %v3504_v63 = vsel %vm3501_vm6, %v3503_v55, %v3499_v61  ;;  %v3533_v9 = vsub.f32 1.0, %v3532_v4  ;;  %4793 = vrcp.f32 %v3570_v21  ;;  %v3607_v51 = vmul.f32 %v3606_v15, %v6427_v25 }
 0xfca   : > { %v3505_v36 = vmul.f32 %v3504_v63, %v3480_v59  ;;  %v3582_v59 = vand.u32 2147483648, %v3570_v21  ;;  %v3597_v55 = vadd.f32 0.18741608, %v3596_v6  ;;  %vm3576_vm14 = vweird.f32 %v3570_v21 }
 0xfcb   : > { %v3534_v12 = vmul.f32 %v4792_v19, %v3533_v9  ;;  %v3608_v54 = vadd.f32 0.4994258, %v3607_v51  ;;  %v3580_v61 = vand.u32 2147483647, %v3570_v21 }
 0xfcc   : > { %v4385_v35 = vclamps-f32 %v3505_v36, 1.0  ;;  %v3583_v56 = vor.u32 1.1754944e-38, %v3582_v59 }
 0xfcd   : > { %v3535_v53 = vadd.f32 %v4792_v19, %v3534_v12  ;;  %v3609_v29 = vmul.f32 %v3608_v54, %v6427_v25  ;;  %vm3581_vm15 = vcmp.eq.f32.partialorder %v3580_v61, 8.507059e+37 }
 0xfce   : > { %v3710_v10 = vadd.f32 1.0, %v4385_v35  ;;  %v3377_v35 = vmul.f32 0.5, %v6406_v44 }
 0xfcf   : > { %v3539_v17 = vsel %vm3538_vm9, %v4792_v19, %v3535_v53  ;;  %v4794_v11 = vpop.eup %4793  ;;  %v3610_v16 = vadd.f32 1.0, %v3609_v29  ;;  %v3558_v19 = vmul.f32 %v3557_v31, %v6402_v47  ;;  %v3598_v47 = vmul.f32 %v3597_v55, %v6427_v25 }
 0xfd0   : > { %v3544_v39 = vsel %vm3541_vm10, %v3543_v62, %v3539_v17  ;;  %v3572_v22 = vmul.f32 %v4794_v11, %v3570_v21  ;;  %v3718_v58 = vmul.f32 %v3710_v10, %v3374_v7  ;;  %vm3577_vm13 = vweird.f32 %v4794_v11 }
 0xfd1   : > { %v3545_v38 = vmul.f32 %v3544_v39, %v3520_v5  ;;  %4795 = vrcp.f32 %v3610_v16  ;;  %vm3578_vm11 = vmor %vm3576_vm14, %vm3577_vm13  ;;  %v3559_v1 = vadd.f32 1.1283791, %v3558_v19  ;;  %v3599_v27 = vadd.f32 1.1283791, %v3598_v47 }
 0xfd2   : > { %v3573_v45 = vsub.f32 1.0, %v3572_v22  ;;  %v3622_v2 = vand.u32 2147483648, %v3610_v16  ;;  %v3620_v21 = vand.u32 2147483647, %v3610_v16  ;;  %vm3616_vm2 = vweird.f32 %v3610_v16 }
 0xfd3   : > { %v4386_v32 = vclamps-f32 %v3545_v38, 1.0  ;;  %v3560_v9 = vmul.f32 %v3559_v1, %v6395_v41  ;;  %v3600_v53 = vmul.f32 %v3599_v27, %v6416_v49 }
 0xfd4   : > { %v3574_v13 = vmul.f32 %v4794_v11, %v3573_v45  ;;  %v3623_v15 = vor.u32 1.1754944e-38, %v3622_v2  ;;  %vm3621_vm4 = vcmp.eq.f32.partialorder %v3620_v21, 8.507059e+37 }
 0xfd5   : > { %v3711_v52 = vadd.f32 1.0, %v4386_v32 }
 0xfd6   : > { %v3575_v60 = vadd.f32 %v4794_v11, %v3574_v13 }
 0xfd7   : > { %v3719_v33 = vmul.f32 %v3711_v52, %v3375_v34  ;;  %v4796_v40 = vpop.eup %4795 }
 0xfd8   : > { %v3579_v26 = vsel %vm3578_vm11, %v4794_v11, %v3575_v60  ;;  %v3612_v63 = vmul.f32 %v4796_v40, %v3610_v16  ;;  %vm3617_vm1 = vweird.f32 %v4796_v40 }
 0xfd9   : > { %v3725_v4 = vpack.c.bf16 %v3719_v33, %v3718_v58  ;;  %v3584_v42 = vsel %vm3581_vm15, %v3583_v56, %v3579_v26  ;;  %vm3618_vm3 = vmor %vm3616_vm2, %vm3617_vm1 }
 0xfda   : > { %v3613_v0 = vsub.f32 1.0, %v3612_v63  ;;  %v3585_v3 = vmul.f32 %v3584_v42, %v3560_v9 }
 0xfdb   : > { %4417 = vmatmul.msk.bf16.gmra.mxu3 %vm1046_vm12, %v3725_v4 }
 0xfdc   : > { %v3614_v36 = vmul.f32 %v4796_v40, %v3613_v0  ;;  %v4387_v30 = vclamps-f32 %v3585_v3, 1.0 }
 0xfde   : > { %v3615_v12 = vadd.f32 %v4796_v40, %v3614_v36  ;;  %v3712_v62 = vadd.f32 1.0, %v4387_v30 }
 0xfe0   : > { %v3619_v25 = vsel %vm3618_vm3, %v4796_v40, %v3615_v12  ;;  %v3720_v54 = vmul.f32 %v3712_v62, %v3376_v37 }
 0xfe1   : > { %v3624_v51 = vsel %vm3621_vm4, %v3623_v15, %v3619_v25 }
 0xfe2   : > { %v3625_v5 = vmul.f32 %v3624_v51, %v3600_v53 }
 0xfe4   : > { %v4388_v41 = vclamps-f32 %v3625_v5, 1.0 }
 0xfe6   : > { %v3713_v17 = vadd.f32 1.0, %v4388_v41 }
 0xfe8   : > { %v3721_v39 = vmul.f32 %v3713_v17, %v3377_v35 }
 0xfea   : > { %v3726_v46 = vpack.c.bf16 %v3721_v39, %v3720_v54 }
 0xfec   : > { %4418 = vmatmul.msk.bf16.gmra.mxu3 %vm1046_vm12, %v3726_v46 }
 0xff6   : > { %v3367_v38 = vpop.f32.mrf.mxu1 }
 0xff7   : > { %v6457_v29 = vadd.f32 %v6330_v18, %v3367_v38 }
 0xff9   : > { %v6460_v49 = vmul.f32 0.70710677, %v6457_v29 }
 0xffb   : > { %v3628_v11 = vmul.f32 %v6460_v49, %v6460_v49 }
 0xffd   : > { %v3629_v31 = vmin.f32 %v3628_v11, 16.0 }
 0xffe   : > { %v3369_v14 = vpop.f32.mrf.mxu1 }
 0xfff   : > { %v3630_v10 = vmul.f32 2.1237322e-06, %v3629_v31  ;;  %v3641_v44 = vmul.f32 3.8918573e-05, %v3629_v31  ;;  %v6465_v32 = vadd.f32 %v6330_v18, %v3369_v14 }
0x1001   : > { %v3631_v22 = vadd.f32 0.00028619796, %v3630_v10  ;;  %v3642_v6 = vadd.f32 0.001143296, %v3641_v44  ;;  %v6468_v16 = vmul.f32 0.70710677, %v6465_v32 }
0x1003   : > { %v3643_v7 = vmul.f32 %v3642_v6, %v3629_v31  ;;  %v3668_v34 = vmul.f32 %v6468_v16, %v6468_v16  ;;  %v3632_v52 = vmul.f32 %v3631_v22, %v3629_v31 }
0x1005   : > { %v3644_v45 = vadd.f32 0.014752088, %v3643_v7  ;;  %v3669_v19 = vmin.f32 %v3668_v34, 16.0  ;;  %v3633_v59 = vadd.f32 0.0036580483, %v3632_v52 }
0x1007   : > { %v3645_v58 = vmul.f32 %v3644_v45, %v3629_v31  ;;  %v3670_v33 = vmul.f32 2.1237322e-06, %v3669_v19  ;;  %v3681_v13 = vmul.f32 3.8918573e-05, %v3669_v19  ;;  %v3634_v26 = vmul.f32 %v3633_v59, %v3629_v31 }
0x1009   : > { %v3646_v55 = vadd.f32 0.112945676, %v3645_v58  ;;  %v3671_v4 = vadd.f32 0.00028619796, %v3670_v33  ;;  %v3682_v18 = vadd.f32 0.001143296, %v3681_v13 }
0x100a   : > { %v3635_v9 = vadd.f32 0.05243302, %v3634_v26 }
0x100b   : > { %v3647_v60 = vmul.f32 %v3646_v55, %v3629_v31  ;;  %v3672_v61 = vmul.f32 %v3671_v4, %v3669_v19  ;;  %v3683_v1 = vmul.f32 %v3682_v18, %v3669_v19 }
0x100c   : > { %v3636_v36 = vmul.f32 %v3635_v9, %v3629_v31 }
0x100d   : > { %v3648_v40 = vadd.f32 0.4994258, %v3647_v60  ;;  %v3673_v56 = vadd.f32 0.0036580483, %v3672_v61  ;;  %v3684_v47 = vadd.f32 0.014752088, %v3683_v1 }
0x100e   : > { %v3637_v53 = vadd.f32 0.18741608, %v3636_v36  ;;  %v3378_v61 = vmul.f32 0.5, %v6457_v29  ;;  %v3379_v1 = vmul.f32 0.5, %v6465_v32 }
0x100f   : > { %v3649_v63 = vmul.f32 %v3648_v40, %v3629_v31  ;;  %v3685_v42 = vmul.f32 %v3684_v47, %v3669_v19  ;;  %v3674_v27 = vmul.f32 %v3673_v56, %v3669_v19 }
0x1010   : > { %v3638_v41 = vmul.f32 %v3637_v53, %v3629_v31 }
0x1011   : > { %v3650_v0 = vadd.f32 1.0, %v3649_v63  ;;  %v3686_v2 = vadd.f32 0.112945676, %v3685_v42  ;;  %v3675_v21 = vadd.f32 0.05243302, %v3674_v27 }
0x1012   : > { %v3639_v46 = vadd.f32 1.1283791, %v3638_v41 }
0x1013   : > { %4797 = vrcp.f32 %v3650_v0  ;;  %v3687_v3 = vmul.f32 %v3686_v2, %v3669_v19  ;;  %v3676_v51 = vmul.f32 %v3675_v21, %v3669_v19  ;;  %v3662_v35 = vand.u32 2147483648, %v3650_v0 }
0x1014   : > { %v3660_v54 = vand.u32 2147483647, %v3650_v0  ;;  %vm3656_vm6 = vweird.f32 %v3650_v0  ;;  %v3640_v6 = vmul.f32 %v3639_v46, %v6460_v49 }
0x1015   : > { %v3688_v12 = vadd.f32 0.4994258, %v3687_v3  ;;  %v3677_v17 = vadd.f32 0.18741608, %v3676_v51  ;;  %v3663_v14 = vor.u32 1.1754944e-38, %v3662_v35 }
0x1016   : > { %vm3661_vm8 = vcmp.eq.f32.partialorder %v3660_v54, 8.507059e+37 }
0x1017   : > { %v3689_v15 = vmul.f32 %v3688_v12, %v3669_v19  ;;  %v3678_v10 = vmul.f32 %v3677_v17, %v3669_v19 }
0x1019   : > { %v4798_v30 = vpop.eup %4797  ;;  %v3690_v5 = vadd.f32 1.0, %v3689_v15  ;;  %v3679_v31 = vadd.f32 1.1283791, %v3678_v10 }
0x101a   : > { %v3652_v25 = vmul.f32 %v4798_v30, %v3650_v0  ;;  %vm3657_vm5 = vweird.f32 %v4798_v30 }
0x101b   : > { %4799 = vrcp.f32 %v3690_v5  ;;  %vm3658_vm7 = vmor %vm3656_vm6, %vm3657_vm5  ;;  %v3702_v34 = vand.u32 2147483648, %v3690_v5  ;;  %v3700_v58 = vand.u32 2147483647, %v3690_v5  ;;  %vm3696_vm10 = vweird.f32 %v3690_v5 }
0x101c   : > { %v3653_v62 = vsub.f32 1.0, %v3652_v25  ;;  %v3680_v55 = vmul.f32 %v3679_v31, %v6468_v16  ;;  %v4570_v16 = vld [vmem:[%s6721_s13 + $0x1] ss:$0 sm:$0xff] }
0x101d   : > { %v3703_v13 = vor.u32 1.1754944e-38, %v3702_v34  ;;  %vm3701_vm14 = vcmp.eq.f32.partialorder %v3700_v58, 8.507059e+37 }
0x101e   : > { %v3654_v37 = vmul.f32 %v4798_v30, %v3653_v62 }
0x1020   : > { %v3655_v39 = vadd.f32 %v4798_v30, %v3654_v37 }
0x1021   : > { %v4800_v38 = vpop.eup %4799 }
0x1022   : > { %v3659_v11 = vsel %vm3658_vm7, %v4798_v30, %v3655_v39  ;;  %v3692_v44 = vmul.f32 %v4800_v38, %v3690_v5  ;;  %vm3697_vm9 = vweird.f32 %v4800_v38 }
0x1023   : > { %v3664_v22 = vsel %vm3661_vm8, %v3663_v14, %v3659_v11  ;;  %vm3698_vm13 = vmor %vm3696_vm10, %vm3697_vm9 }
0x1024   : > { %v3693_v7 = vsub.f32 1.0, %v3692_v44  ;;  %v3665_v52 = vmul.f32 %v3664_v22, %v3640_v6 }
0x1026   : > { %v3694_v45 = vmul.f32 %v4800_v38, %v3693_v7  ;;  %v4389_v59 = vclamps-f32 %v3665_v52, 1.0 }
0x1028   : > { %v3695_v33 = vadd.f32 %v4800_v38, %v3694_v45  ;;  %v3714_v60 = vadd.f32 1.0, %v4389_v59 }
0x102a   : > { %v3699_v19 = vsel %vm3698_vm13, %v4800_v38, %v3695_v33  ;;  %v3722_v40 = vmul.f32 %v3714_v60, %v3378_v61 }
0x102b   : > { %v3704_v4 = vsel %vm3701_vm14, %v3703_v13, %v3699_v19 }
0x102c   : > { %v3705_v18 = vmul.f32 %v3704_v4, %v3680_v55 }
0x102e   : > { %v4390_v49 = vclamps-f32 %v3705_v18, 1.0 }
0x1030   : > { %v3715_v26 = vadd.f32 1.0, %v4390_v49 }
0x1032   : > { %v3723_v56 = vmul.f32 %v3715_v26, %v3379_v1 }
0x1034   : > { %v3727_v47 = vpack.c.bf16 %v3723_v56, %v3722_v40 }
0x1036   : > { %4419 = vmatmul.msk.bf16.gmra.mxu3 %vm1046_vm12, %v3727_v47 }
0x103e   : > { %v3787_v63 = vpop.f32.mrf.mxu3 }
0x103f   : > { %v3788_v42 = vadd.f32 %v4570_v16, %v3787_v63 }
0x1041   : > { %v3807_v9 = vadd.f32 %v3788_v42, %v6276_v50 }
0x1043   : > { %v3819_v0 = vsel %vm661_vm0, %v3807_v9, 0.0 }
0x1044   : > { %3820 = vadd.xlane.f32.xlu0 %v3819_v0 }
0x1046   : > { %v3789_v29 = vpop.f32.mrf.mxu3 }
0x1047   : > { %v3790_v27 = vadd.f32 %v4570_v16, %v3789_v29 }
0x1049   : > { %v3808_v32 = vadd.f32 %v3790_v27, %v6279_v24 }
0x104b   : > { %v3822_v2 = vsel %vm661_vm0, %v3808_v32, 0.0 }
0x104c   : > { %3823 = vadd.xlane.f32.xlu1 %v3822_v2 }
0x105e   : > { %v3792_v3 = vpop.f32.mrf.mxu3 }
0x105f   : > { %v3793_v36 = vadd.f32 %v4570_v16, %v3792_v3 }
0x1061   : > { %v3809_v21 = vadd.f32 %v3793_v36, %v6292_v28 }
0x1063   : > { %v3825_v12 = vsel %vm661_vm0, %v3809_v21, 0.0 }
0x1064   : > { %3826 = vadd.xlane.f32.xlu2 %v3825_v12 }
0x1066   : > { %v3794_v15 = vpop.f32.mrf.mxu3 }
0x1067   : > { %v3795_v30 = vadd.f32 %v4570_v16, %v3794_v15 }
0x1069   : > { %v3810_v50 = vadd.f32 %v3795_v30, %v6295_v8 }
0x106b   : > { %v3828_v53 = vsel %vm661_vm0, %v3810_v50, 0.0 }
0x106c   : > { %3829 = vadd.xlane.f32.xlu1 %v3828_v53 }
0x106f   : > { %v3797_v25 = vpop.f32.mrf.mxu3 }
0x1070   : > { %v3798_v51 = vadd.f32 %v4570_v16, %v3797_v25 }
0x1072   : > { %v3811_v24 = vadd.f32 %v3798_v51, %v6305_v48 }
0x1074   : > { %v3831_v5 = vsel %vm661_vm0, %v3811_v24, 0.0 }
0x1075   : > { %3832 = vadd.xlane.f32.xlu2 %v3831_v5 }
0x1077   : > { %v3799_v62 = vpop.f32.mrf.mxu3 }
0x1078   : > { %v3800_v41 = vadd.f32 %v4570_v16, %v3799_v62 }
0x107a   : > { %v3812_v28 = vadd.f32 %v3800_v41, %v6308_v43 }
0x107c   : > { %v3834_v37 = vsel %vm661_vm0, %v3812_v28, 0.0 }
0x107d   : > { %3835 = vadd.xlane.f32.xlu0 %v3834_v37 }
0x10b7   : > { %v3821_v39 = vpop.xlane.xlu0 %3820 }
0x10b8   : > { %v3843_v11 = vmul.f32 %v3821_v39, %v5075_v20 }
0x10b9   : > { %v3802_v35 = vpop.f32.mrf.mxu3 }
0x10ba   : > { %v3803_v17 = vadd.f32 %v4570_v16, %v3802_v35  ;;  %v6501_v22 = vsub.f32 %v3807_v9, %v3843_v11 }
0x10bc   : > { %v3813_v8 = vadd.f32 %v3803_v17, %v6320_v57  ;;  %v3859_v7 = vmul.f32 %v6501_v22, %v6501_v22 }
0x10be   : > { %v3837_v54 = vsel %vm661_vm0, %v3813_v8, 0.0  ;;  %v3867_v31 = vsel %vm661_vm0, %v3859_v7, 0.0 }
0x10bf   : > { %v3824_v46 = vpop.xlane.xlu1 %3823  ;;  %3838 = vadd.xlane.f32.xlu1 %v3837_v54 }
0x10c0   : > { %v3844_v48 = vmul.f32 %v3824_v46, %v5075_v20 }
0x10c1   : > { %v3804_v38 = vpop.f32.mrf.mxu3 }
0x10c2   : > { %v6496_v14 = vsub.f32 %v3808_v32, %v3844_v48  ;;  %v3805_v43 = vadd.f32 %v4570_v16, %v3804_v38 }
0x10c4   : > { %v3814_v10 = vadd.f32 %v3805_v43, %v6323_v23  ;;  %v3860_v44 = vmul.f32 %v6496_v14, %v6496_v14 }
0x10c6   : > { %v3870_v57 = vsel %vm661_vm0, %v3860_v44, 0.0  ;;  %v3840_v6 = vsel %vm661_vm0, %v3814_v10, 0.0 }
0x10c7   : > { %3871 = vadd.xlane.f32.xlu0 %v3870_v57  ;;  %3841 = vadd.xlane.f32.xlu2 %v3840_v6 }
0x10cf   : > { %3868 = vadd.xlane.f32.xlu2 %v3867_v31 }
0x10d7   : > { %v3827_v34 = vpop.xlane.xlu2 %3826 }
0x10d8   : > { %v3845_v23 = vmul.f32 %v3827_v34, %v5075_v20 }
0x10da   : > { %v6509_v52 = vsub.f32 %v3809_v21, %v3845_v23 }
0x10dc   : > { %v3861_v45 = vmul.f32 %v6509_v52, %v6509_v52 }
0x10de   : > { %v3873_v58 = vsel %vm661_vm0, %v3861_v45, 0.0 }
0x10df   : > { %v3830_v33 = vpop.xlane.xlu1 %3829  ;;  %3874 = vadd.xlane.f32.xlu1 %v3873_v58 }
0x10e0   : > { %v3846_v13 = vmul.f32 %v3830_v33, %v5075_v20 }
0x10e2   : > { %v6515_v59 = vsub.f32 %v3810_v50, %v3846_v13 }
0x10e4   : > { %v3862_v55 = vmul.f32 %v6515_v59, %v6515_v59 }
0x10e6   : > { %v3876_v19 = vsel %vm661_vm0, %v3862_v55, 0.0 }
0x10e7   : > { %3877 = vadd.xlane.f32.xlu0 %v3876_v19 }
0x10e8   : > { %v3833_v4 = vpop.xlane.xlu2 %3832 }
0x10e9   : > { %v3847_v18 = vmul.f32 %v3833_v4, %v5075_v20 }
0x10eb   : > { %v6521_v60 = vsub.f32 %v3811_v24, %v3847_v18 }
0x10ed   : > { %v3863_v49 = vmul.f32 %v6521_v60, %v6521_v60 }
0x10ef   : > { %v3879_v61 = vsel %vm661_vm0, %v3863_v49, 0.0 }
0x10f0   : > { %v3836_v1 = vpop.xlane.xlu0 %3835  ;;  %3880 = vadd.xlane.f32.xlu1 %v3879_v61 }
0x10f1   : > { %v3848_v26 = vmul.f32 %v3836_v1, %v5075_v20 }
0x10f3   : > { %v6527_v40 = vsub.f32 %v3812_v28, %v3848_v26 }
0x10f5   : > { %v3864_v56 = vmul.f32 %v6527_v40, %v6527_v40 }
0x10f7   : > { %v3882_v47 = vsel %vm661_vm0, %v3864_v56, 0.0 }
0x10f8   : > { %3883 = vadd.xlane.f32.xlu2 %v3882_v47 }
0x1132   : > { %v3839_v16 = vpop.xlane.xlu1 %3838 }
0x1133   : > { %v3849_v63 = vmul.f32 %v3839_v16, %v5075_v20 }
0x1135   : > { %v6533_v42 = vsub.f32 %v3813_v8, %v3849_v63 }
0x1137   : > { %v3865_v9 = vmul.f32 %v6533_v42, %v6533_v42 }
0x1139   : > { %v3885_v0 = vsel %vm661_vm0, %v3865_v9, 0.0 }
0x113a   : > { %3886 = vadd.xlane.f32.xlu0 %v3885_v0  ;;  %v3842_v29 = vpop.xlane.xlu2 %3841  ;;  %v3872_v36 = vpop.xlane.xlu0 %3871 }
0x113b   : > { %v3850_v27 = vmul.f32 %v3842_v29, %v5075_v20  ;;  %v3892_v15 = vmul.f32 %v3872_v36, %v5075_v20 }
0x113d   : > { %v6539_v32 = vsub.f32 %v3814_v10, %v3850_v27  ;;  %v3900_v5 = vadd.f32 1e-12, %v3892_v15 }
0x113f   : > { %v3866_v2 = vmul.f32 %v6539_v32, %v6539_v32  ;;  %4801 = vrsqrt.f32 %v3900_v5  ;;  %vm3923_vm15 = vweird.f32 %v3900_v5 }
0x1141   : > { %v3888_v3 = vsel %vm661_vm0, %v3866_v2, 0.0 }
0x1142   : > { %3889 = vadd.xlane.f32.xlu1 %v3888_v3  ;;  %v3869_v12 = vpop.xlane.xlu2 %3868 }
0x1143   : > { %v3891_v50 = vmul.f32 %v3869_v12, %v5075_v20 }
0x1145   : > { %v3899_v41 = vadd.f32 1e-12, %v3891_v50  ;;  %v6559_v54 = vpop.eup %4801 }
0x1146   : > { %v3918_v10 = vmul.f32 %v6559_v54, %v3900_v5  ;;  %vm3924_vm12 = vweird.f32 %v6559_v54 }
0x1147   : > { %4803 = vrsqrt.f32 %v3899_v41  ;;  %vm6595_vm2 = vmor %vm3923_vm15, %vm3924_vm12  ;;  %vm3913_vm3 = vweird.f32 %v3899_v41 }
0x1148   : > { %v3919_v34 = vmul.f32 %v6559_v54, %v3918_v10 }
0x114a   : > { %v3920_v55 = vmul.f32 0.5, %v3919_v34 }
0x114c   : > { %v3921_v47 = vsub.f32 1.5, %v3920_v55 }
0x114d   : > { %v6561_v39 = vpop.eup %4803 }
0x114e   : > { %v3908_v6 = vmul.f32 %v6561_v39, %v3899_v41  ;;  %vm3914_vm11 = vweird.f32 %v6561_v39  ;;  %v3922_v27 = vmul.f32 %v6559_v54, %v3921_v47 }
0x114f   : > { %vm6601_vm5 = vmor %vm3913_vm3, %vm3914_vm11 }
0x1150   : > { %v3909_v58 = vmul.f32 %v6561_v39, %v3908_v6  ;;  %v3926_v41 = vsel %vm6595_vm2, %v6559_v54, %v3922_v27 }
0x1152   : > { %v3875_v21 = vpop.xlane.xlu1 %3874  ;;  %v3910_v61 = vmul.f32 0.5, %v3909_v58 }
0x1153   : > { %v3893_v25 = vmul.f32 %v3875_v21, %v5075_v20 }
0x1154   : > { %v3911_v9 = vsub.f32 1.5, %v3910_v61 }
0x1155   : > { %v3901_v37 = vadd.f32 1e-12, %v3893_v25 }
0x1156   : > { %v3912_v50 = vmul.f32 %v6561_v39, %v3911_v9 }
0x1157   : > { %4805 = vrsqrt.f32 %v3901_v37  ;;  %vm3933_vm6 = vweird.f32 %v3901_v37 }
0x115a   : > { %v3878_v30 = vpop.xlane.xlu0 %3877 }
0x115b   : > { %v3894_v24 = vmul.f32 %v3878_v30, %v5075_v20  ;;  %v4466_v30 = vld [vmem:[%s6724_s16 + $0x8] sm:$0xff] }
0x115c   : > { %4092 = vmatpush.bf16.msra.mxu0 %v4466_v30 }
0x115d   : > { %v6550_v35 = vadd.f32 1e-12, %v3894_v24  ;;  %v6563_v46 = vpop.eup %4805 }
0x115e   : > { %v3928_v43 = vmul.f32 %v6563_v46, %v3901_v37  ;;  %vm3934_vm1 = vweird.f32 %v6563_v46 }
0x115f   : > { %4807 = vrsqrt.f32 %v6550_v35  ;;  %vm6612_vm8 = vmor %vm3933_vm6, %vm3934_vm1  ;;  %vm3943_vm9 = vweird.f32 %v6550_v35 }
0x1160   : > { %v3929_v31 = vmul.f32 %v6563_v46, %v3928_v43  ;;  %v4468_v43 = vld [vmem:[%s6726_s18 + $0x8] sm:$0xff] }
0x1161   : > { %4130 = vmatpush.bf16.msra.mxu2 %v4468_v43 }
0x1162   : > { %v3930_v13 = vmul.f32 0.5, %v3929_v31  ;;  %v4572_v31 = vld [vmem:[%s6723_s15 + $0x1] ss:$0 sm:$0xff] }
0x1163   : > { %v3881_v53 = vpop.xlane.xlu1 %3880 }
0x1164   : > { %v3895_v62 = vmul.f32 %v3881_v53, %v5075_v20  ;;  %v3931_v26 = vsub.f32 1.5, %v3930_v13 }
0x1165   : > { %v6565_v48 = vpop.eup %4807 }
0x1166   : > { %v6552_v17 = vadd.f32 1e-12, %v3895_v62  ;;  %v3938_v44 = vmul.f32 %v6565_v48, %v6550_v35  ;;  %v3932_v29 = vmul.f32 %v6563_v46, %v3931_v26  ;;  %vm3944_vm4 = vweird.f32 %v6565_v48  ;;  %v4465_v62 = vld [vmem:[%s6724_s16] sm:$0xff] }
0x1167   : > { %vm6624_vm13 = vmor %vm3943_vm9, %vm3944_vm4  ;;  %4093 = vmatpush.bf16.msra.mxu0 %v4465_v62  ;;  %vm4056_vm9 = vcmask 1043459  }
0x1168   : > { %4809 = vrsqrt.f32 %v6552_v17  ;;  %v3939_v23 = vmul.f32 %v6565_v48, %v3938_v44  ;;  %vm3953_vm14 = vweird.f32 %v6552_v17 }
0x116a   : > { %v3940_v19 = vmul.f32 0.5, %v3939_v23 }
0x116b   : > { %v3884_v51 = vpop.xlane.xlu2 %3883 }
0x116c   : > { %v3896_v28 = vmul.f32 %v3884_v51, %v5075_v20  ;;  %v3941_v16 = vsub.f32 1.5, %v3940_v19 }
0x116e   : > { %v6554_v8 = vadd.f32 1e-12, %v3896_v28  ;;  %v6567_v38 = vpop.eup %4809  ;;  %v3942_v3 = vmul.f32 %v6565_v48, %v3941_v16 }
0x116f   : > { %v3948_v57 = vmul.f32 %v6567_v38, %v6552_v17  ;;  %vm3954_vm7 = vweird.f32 %v6567_v38  ;;  %v3916_v17 = vsel %vm6601_vm5, %v6561_v39, %v3912_v50 }
0x1170   : > { %4811 = vrsqrt.f32 %v6554_v8  ;;  %v3946_v28 = vsel %vm6624_vm13, %v6565_v48, %v3942_v3  ;;  %vm3955_vm12 = vmor %vm3953_vm14, %vm3954_vm7  ;;  %vm3963_vm11 = vweird.f32 %v6554_v8  ;;  %vm4050_vm7 = vcmask 1041409  }
0x1171   : > { %v3949_v45 = vmul.f32 %v6567_v38, %v3948_v57  ;;  %v3990_v10 = vmul.f32 %v3946_v28, %v6515_v59  ;;  %vm4062_vm13 = vcmask 1045509   ;;  %vm4065_vm14 = vcmask 1046534  }
0x1173   : > { %v3950_v18 = vmul.f32 0.5, %v3949_v45 }
0x1175   : > { %v3951_v63 = vsub.f32 1.5, %v3950_v18 }
0x1176   : > { %v6569_v11 = vpop.eup %4811 }
0x1177   : > { %v3958_v7 = vmul.f32 %v6569_v11, %v6554_v8  ;;  %v3952_v12 = vmul.f32 %v6567_v38, %v3951_v63  ;;  %vm3964_vm10 = vweird.f32 %v6569_v11  ;;  %v4571_v8 = vld [vmem:[%s6722_s14 + $0x1] ss:$0 sm:$0xff] }
0x1178   : > { %vm3965_vm15 = vmor %vm3963_vm11, %vm3964_vm10  ;;  %v4001_v34 = vmul.f32 %v4571_v8, %v3990_v10  ;;  %vm4059_vm10 = vcmask 1044484  }
0x1179   : > { %v3959_v33 = vmul.f32 %v6569_v11, %v3958_v7  ;;  %v3956_v35 = vsel %vm3955_vm12, %v6567_v38, %v3952_v12  ;;  %v3988_v38 = vmul.f32 %v3926_v41, %v6496_v14  ;;  %vm4068_vm12 = vcmask 1047559  }
0x117a   : > { %v3991_v39 = vmul.f32 %v3956_v35, %v6521_v60  ;;  %v4012_v55 = vadd.f32 %v4572_v31, %v4001_v34 }
0x117b   : > { %v3960_v1 = vmul.f32 0.5, %v3959_v33  ;;  %v3999_v14 = vmul.f32 %v4571_v8, %v3988_v38 }
0x117c   : > { %v4002_v59 = vmul.f32 %v4571_v8, %v3991_v39  ;;  %v4020_v16 = vpack.c.bf16 %v4012_v55, %v4012_v55  ;;  %v4467_v39 = vld [vmem:[%s6726_s18] sm:$0xff] }
0x117d   : > { %v3961_v0 = vsub.f32 1.5, %v3960_v1  ;;  %v4010_v13 = vadd.f32 %v4572_v31, %v3999_v14  ;;  %4131 = vmatpush.bf16.msra.mxu2 %v4467_v39 }
0x117e   : > { %v4044_v21 = vunpack.c.l.b16 %v4020_v16 }
0x117f   : > { %v3962_v25 = vmul.f32 %v6569_v11, %v3961_v0 }
0x1180   : > { %v4055_v24 = vrot.slane %v4044_v21, 5 }
0x11ad   : > { %v3887_v4 = vpop.xlane.xlu0 %3886 }
0x11ae   : > { %v3897_v49 = vmul.f32 %v3887_v4, %v5075_v20  ;;  %v4013_v4 = vadd.f32 %v4572_v31, %v4002_v59 }
0x11b0   : > { %v6587_v56 = vadd.f32 1e-12, %v3897_v49  ;;  %v4021_v9 = vpack.c.bf16 %v4013_v4, %v4013_v4 }
0x11b2   : > { %4813 = vrsqrt.f32 %v6587_v56  ;;  %vm3973_vm2 = vweird.f32 %v6587_v56 }
0x11b5   : > { %v3890_v36 = vpop.xlane.xlu1 %3889 }
0x11b6   : > { %v3898_v15 = vmul.f32 %v3890_v36, %v5075_v20  ;;  %v3936_v20 = vsel %vm6612_vm8, %v6563_v46, %v3932_v29  ;;  %v3966_v46 = vsel %vm3965_vm15, %v6569_v11, %v3962_v25  ;;  %vm4053_vm8 = vcmask 1042434  }
0x11b7   : > { %v3989_v54 = vmul.f32 %v3936_v20, %v6509_v52  ;;  %v3987_v52 = vmul.f32 %v3916_v17, %v6501_v22  ;;  %v3992_v11 = vmul.f32 %v3966_v46, %v6527_v40 }
0x11b8   : > { %v4814_v51 = vpop.eup %4813  ;;  %v3906_v5 = vadd.f32 1e-12, %v3898_v15  ;;  %v4045_v15 = vunpack.c.l.b16 %v4021_v9 }
0x11b9   : > { %v3968_v37 = vmul.f32 %v4814_v51, %v6587_v56  ;;  %v4000_v57 = vmul.f32 %v4571_v8, %v3989_v54  ;;  %vm3974_vm1 = vweird.f32 %v4814_v51  ;;  %v3998_v45 = vmul.f32 %v4571_v8, %v3987_v52 }
0x11ba   : > { %4815 = vrsqrt.f32 %v3906_v5  ;;  %v4003_v58 = vmul.f32 %v4571_v8, %v3992_v11  ;;  %vm3975_vm3 = vmor %vm3973_vm2, %vm3974_vm1  ;;  %v4018_v56 = vpack.c.bf16 %v4010_v13, %v4010_v13  ;;  %vm3983_vm5 = vweird.f32 %v3906_v5 }
0x11bb   : > { %v3969_v48 = vmul.f32 %v4814_v51, %v3968_v37  ;;  %v4011_v22 = vadd.f32 %v4572_v31, %v4000_v57  ;;  %v4009_v49 = vadd.f32 %v4572_v31, %v3998_v45  ;;  %v4058_v62 = vrot.slane %v4045_v15, 4 }
0x11bc   : > { %v4014_v61 = vadd.f32 %v4572_v31, %v4003_v58  ;;  %v4042_v36 = vunpack.c.l.b16 %v4018_v56 }
0x11bd   : > { %v3970_v44 = vmul.f32 0.5, %v3969_v48  ;;  %v4019_v26 = vpack.c.bf16 %v4011_v22, %v4011_v22  ;;  %v4017_v29 = vpack.c.bf16 %v4009_v49, %v4009_v49 }
0x11be   : > { %v4022_v27 = vpack.c.bf16 %v4014_v61, %v4014_v61  ;;  %v4049_v20 = vrot.slane %v4042_v36, 7 }
0x11bf   : > { %v3971_v6 = vsub.f32 1.5, %v3970_v44  ;;  %v4043_v2 = vunpack.c.l.b16 %v4019_v26  ;;  %v4041_v30 = vunpack.c.l.b16 %v4017_v29  ;;  %v4573_v44 = vld [vmem:[%s6725_s17] ss:$0 sm:$0xff] }
0x11c0   : > { %v4816_v7 = vpop.eup %4815  ;;  %v4046_v50 = vunpack.c.l.b16 %v4022_v27 }
0x11c1   : > { %v3972_v23 = vmul.f32 %v4814_v51, %v3971_v6  ;;  %v3978_v60 = vmul.f32 %v4816_v7, %v3906_v5  ;;  %vm3984_vm4 = vweird.f32 %v4816_v7  ;;  %v4052_v25 = vrot.slane %v4043_v2, 6 }
0x11c2   : > { %vm3985_vm6 = vmor %vm3983_vm5, %vm3984_vm4  ;;  %v4051_v41 = vsel %vm4050_vm7, %v4049_v20, %v4041_v30  ;;  %v4061_v28 = vrot.slane %v4046_v50, 3 }
0x11c3   : > { %v3976_v40 = vsel %vm3975_vm3, %v4814_v51, %v3972_v23  ;;  %v3979_v33 = vmul.f32 %v4816_v7, %v3978_v60  ;;  %v4054_v35 = vsel %vm4053_vm8, %v4052_v25, %v4051_v41 }
0x11c4   : > { %v3993_v19 = vmul.f32 %v3976_v40, %v6533_v42  ;;  %v4057_v17 = vsel %vm4056_vm9, %v4055_v24, %v4054_v35 }
0x11c5   : > { %v3980_v18 = vmul.f32 0.5, %v3979_v33  ;;  %v4060_v46 = vsel %vm4059_vm10, %v4058_v62, %v4057_v17 }
0x11c6   : > { %v4004_v1 = vmul.f32 %v4571_v8, %v3993_v19  ;;  %v4063_v48 = vsel %vm4062_vm13, %v4061_v28, %v4060_v46 }
0x11c7   : > { %v3981_v47 = vsub.f32 1.5, %v3980_v18 }
0x11c8   : > { %v4015_v63 = vadd.f32 %v4572_v31, %v4004_v1 }
0x11c9   : > { %v3982_v0 = vmul.f32 %v4816_v7, %v3981_v47 }
0x11ca   : > { %v4023_v3 = vpack.c.bf16 %v4015_v63, %v4015_v63 }
0x11cb   : > { %v3986_v42 = vsel %vm3985_vm6, %v4816_v7, %v3982_v0 }
0x11cc   : > { %v3994_v12 = vmul.f32 %v3986_v42, %v6539_v32  ;;  %v4047_v51 = vunpack.c.l.b16 %v4023_v3 }
0x11ce   : > { %v4005_v53 = vmul.f32 %v4571_v8, %v3994_v12  ;;  %v4064_v32 = vrot.slane %v4047_v51, 2 }
0x11d0   : > { %v4016_v5 = vadd.f32 %v4572_v31, %v4005_v53  ;;  %v4066_v8 = vsel %vm4065_vm14, %v4064_v32, %v4063_v48  ;;  %v4574_v31 = vld [vmem:[%s6727_s19] ss:$0 sm:$0xff] }
0x11d2   : > { %v4024_v37 = vpack.c.bf16 %v4016_v5, %v4016_v5 }
0x11d4   : > { %v4048_v54 = vunpack.c.l.b16 %v4024_v37 }
0x11d6   : > { %v4067_v43 = vrot.slane %v4048_v54, 1 }
0x11d8   : > { %v4069_v38 = vsel %vm4068_vm12, %v4067_v43, %v4066_v8 }
0x11d9   : > { %v4070_v10 = vpack.c.b16 %v4069_v38, %v4069_v38 }
0x11db   : > { %4430 = vmatmul.msk.bf16.vlgmr.msra.gmra.mxu0 %vm661_vm0, %v4070_v10 }
0x1258   : > { %v4095_v52 = vpop.f32.mrf.mxu0 }
0x1259   : > { %v4096_v11 = vadd.f32 %v4573_v44, %v4095_v52 }
0x125b   : > { %4817 = vtanh.f32 %v4096_v11 }
0x1260   : > { %v4097_v57 = vpop.f32.mrf.mxu0 }
0x1261   : > { %v4818_v6 = vpop.eup %4817 }
0x1262   : > { %v4100_v7 = vpack.c.bf16 %v4818_v6, %v4818_v6 }
0x1264   : > { %4439 = vmatmul.msk.bf16.vlgmr.msra.gmra.mxu2 %vm661_vm0, %v4100_v7 }
0x12e7   : > { %v4133_v14 = vpop.f32.mrf.mxu2 }
0x12e8   : > { %v4134_v34 = vadd.f32 %v4574_v31, %v4133_v14 }
0x12ea   : > { %4137 = vst [vmem:[%s638_s25] sm:$0xff] %v4134_v34 }
0x12eb   : > { %4854 = shalt.err (!%p4851_p4)
}
0x12ec   : > { %4469 = dma.vmem_to_hbm [thread:$0]  (%p5041_p5), %s4152_s2, 128, %s4154_s7, %s4139_s8  }
0x12ef   : > { %v4135_v59 = vpop.f32.mrf.mxu2 }
0x12f0 PF: > { %p4475_p7 = scmp.ge.s32.totalorder %s4889_s24, 2  ;;  %s4165_s23 = sand.u32 1, %s4877_s1  }
0x12f1   : > { %s4166_s26 = scalar_lea.sflag [#allocation3], %s4165_s23 }
0x12f2   : > { %p4472_p8 = pnand %p4475_p7, %p5045_p6 }
0x12f4   : > { %p4473_p9 = pneg %p4472_p8 }
0x12f6   : > { %4872 = dma.done.wait (%p4473_p9), %s4166_s26, 128  }
0x12f7   : > { %4874 = vsyncadd (%p4473_p9), %s4166_s26, 4294967168  ;;  %s6779_s9 = sld [smem:[#allocation5_spill]]  ;;  %p30_p10 = scmp.ge.s32.totalorder %s5028_s3, 4  }
0x12f8   : > { %s6780_s23 = sld [smem:[#allocation6_spill]]  ;;  %s6781_s1 = smov %s4881_s22 }
0x12f9   : > { %s6783_s24 = smov %s5028_s3  ;;  %32 = sbr.rel (!%p30_p10) target bundleno = 15 (0xf), region = 150 }
0x12fd   : > { %s6782_s22 = smov %s6779_s9 }
0x12fe   :  { %4172 = vsyncpa [#allocation3], 1 }
0x12ff   :  { %4174 = vsyncpa [#allocation3 + $0x1], 1 }

</bundles_post_ra>
